<compile_context>
chip_gen: v5e
topology: v5e:2x2
jax: 0.10.0
libtpu: 0.0.40
codegen_flags: <defaults>
</compile_context>

<pallas_src>
import functools

import jax
import jax.numpy as jnp
import numpy as np
from jax import lax
from jax.experimental import pallas as pl
from jax.experimental.pallas import tpu as pltpu


def _leaky_relu(x, slope=0.1):
    return jnp.where(x > 0, x, slope * x)


def mfa_kernel(rc_ref, x_ref, w1_ref, b1_ref, w2_ref, b2_ref, w3_ref, b3_ref,
               out_ref, s_halo, s_taps, *, C, H, W):
    """Fused MFA forward for one batch image.

    Layout: channels on sublanes, the full-resolution flattened spatial index
    q = h*W + w on lanes (a free view of NCHW).

    rc_ref : (2, Q) int32       row 0 = full-res row index h, row 1 = col w
    x_ref  : (1, C, Q) f32      input image
    w*_ref : (Cout, 9*Cin) bf16 tap-stacked conv weights (tap-major columns)
    b*_ref : (Cout, 1) f32
    out_ref: (1, C, Q)          (upsampled attention) * x
    s_halo : VMEM (4C, Q+2*PAD) f32   halo-padded activation scratch
    s_taps : VMEM (9*4C, Q) bf16      sublane-stacked 9-tap matmul operand
    """
    Q = H * W
    PAD = 2 * W + 2              # covers the largest tap offset |2*dy*W + 2*dx|
    HB = PAD + Q                 # end of the body region inside s_halo

    # ---- hoisted (1, Q) lane masks (shared by convs and the upsample) ----
    hrow = rc_ref[0:1, :]
    wcol = rc_ref[1:2, :]
    col_ok_l = wcol >= 2         # half-res column k-1 exists
    col_ok_r = wcol < W - 2      # half-res column k+1 exists
    h_even = (hrow & 1) == 0
    w_even = (wcol & 1) == 0
    h_first = hrow < 2           # clamp a[j-1] -> a[j]   (even output rows)
    h_last = hrow >= H - 1       # clamp a[j+1] -> a[j]   (odd output rows)
    w_first = wcol < 2           # clamp r[k-1] -> r[k]   (even output cols)
    w_last = wcol >= W - 1       # clamp r[k+1] -> r[k]   (odd output cols)

    # ---- zero the halo bands once: pure row taps (dx == 0) then need no mask.
    zeros_pad = jnp.zeros((4 * C, PAD), jnp.float32)
    s_halo[:, 0:PAD] = zeros_pad
    s_halo[:, HB:HB + PAD] = zeros_pad

    # ---- Haar DWT (standard orthogonal 2x2), valid at even (h, w) lanes ----
    xv = x_ref[0]                                   # (C, Q) f32
    s_halo[0:C, PAD:HB] = xv
    x01 = s_halo[0:C, PAD + 1:HB + 1]               # x at (h,   w+1)
    x10 = s_halo[0:C, PAD + W:HB + W]               # x at (h+1, w)
    x11 = s_halo[0:C, PAD + W + 1:HB + W + 1]       # x at (h+1, w+1)
    ll = (xv + x10 + x01 + x11) * 0.5
    hl = (x01 + x11 - xv - x10) * 0.5
    lh = (x10 + x11 - xv - x01) * 0.5
    hh = (xv + x11 - x10 - x01) * 0.5
    s_halo[0 * C:1 * C, PAD:HB] = ll
    s_halo[1 * C:2 * C, PAD:HB] = hl
    s_halo[2 * C:3 * C, PAD:HB] = lh
    s_halo[3 * C:4 * C, PAD:HB] = hh

    def conv3x3(cin, w_ref, b_ref):
        # Input = s_halo[0:cin, PAD:HB] (zero halo).  The 9 shifted taps are
        # stacked on sublanes (bf16) and contracted with one big-K MXU matmul,
        # f32 accumulation.  Only the 6 dx != 0 taps need a lane mask (column
        # wrap of the flattened layout); dy-only taps land in the zeroed halo.
        for t in range(9):
            dy = t // 3 - 1
            dx = t % 3 - 1
            off = 2 * dy * W + 2 * dx
            tap = s_halo[0:cin, PAD + off:HB + off]
            if dx == -1:
                tap = jnp.where(col_ok_l, tap, 0.0)
            elif dx == 1:
                tap = jnp.where(col_ok_r, tap, 0.0)
            s_taps[t * cin:(t + 1) * cin, :] = tap.astype(jnp.bfloat16)
        acc = jnp.dot(w_ref[...], s_taps[0:9 * cin, :],
                      preferred_element_type=jnp.float32)
        return acc + b_ref[...]

    a = _leaky_relu(conv3x3(4 * C, w1_ref, b1_ref))
    s_halo[0:C, PAD:HB] = a
    a = _leaky_relu(conv3x3(C, w2_ref, b2_ref))
    s_halo[0:C, PAD:HB] = a
    a = jnp.clip(conv3x3(C, w3_ref, b3_ref), 0.0, 1.0)    # Hardtanh(0, 1)

    # ---- bilinear x2 upsample (align_corners=False) + gating multiply ----
    # Row blend: valid at every (h, even w) lane.
    s_halo[0:C, PAD:HB] = a
    a_up = s_halo[0:C, PAD - 2 * W:HB - 2 * W]   # a[j-1, k] (even output rows)
    a_ct = s_halo[0:C, PAD - W:HB - W]           # a[j,   k] (odd output rows)
    a_dn = s_halo[0:C, PAD + W:HB + W]           # a[j+1, k] (odd output rows)
    r = jnp.where(h_even,
                  0.75 * a + 0.25 * jnp.where(h_first, a, a_up),
                  0.75 * a_ct + 0.25 * jnp.where(h_last, a_ct, a_dn))

    # Column blend: produces the full-resolution gate at every lane.
    s_halo[0:C, PAD:HB] = r
    r_l2 = s_halo[0:C, PAD - 2:HB - 2]           # r[., k-1] (even output cols)
    r_l1 = s_halo[0:C, PAD - 1:HB - 1]           # r[., k]   (odd output cols)
    r_r1 = s_halo[0:C, PAD + 1:HB + 1]           # r[., k+1] (odd output cols)
    gate = jnp.where(w_even,
                     0.75 * r + 0.25 * jnp.where(w_first, r, r_l2),
                     0.75 * r_l1 + 0.25 * jnp.where(w_last, r_l1, r_r1))

    out_ref[0] = (gate * x_ref[0]).astype(out_ref.dtype)


def make_mfa_forward(single_buffer_consts=True):
    """Builds the jitted MFA forward.  `single_buffer_consts` requests
    pl.Buffered(1) (no double buffering) for constant weight/bias/index operands."""
    const_kw = ({"pipeline_mode": pl.Buffered(1)} if single_buffer_consts else {})

    @jax.jit
    def mfa_forward(x_nchw, w1, b1, w2, b2, w3, b3):
        N, C, H, W = x_nchw.shape
        assert H % 2 == 0 and W % 2 == 0, "Haar downsample needs even H, W"
        Q = H * W
        PAD = 2 * W + 2
        Qp = Q + 2 * PAD

        # Free view (no HBM traffic): the kernel consumes x and produces the
        # output directly in (N, C, H*W) layout.
        x_flat = x_nchw.reshape(N, C, Q)

        # Tap-stacked conv weights (Cout, 9*Cin), tap-major columns, bf16.
        def prep(w, cin):
            cout = w.shape[-1]
            return (jnp.transpose(w, (3, 0, 1, 2))
                    .reshape(cout, 9 * cin).astype(jnp.bfloat16))

        w1m = prep(w1, 4 * C)
        w2m = prep(w2, C)
        w3m = prep(w3, C)
        b1c = b1.reshape(C, 1).astype(jnp.float32)
        b2c = b2.reshape(C, 1).astype(jnp.float32)
        b3c = b3.reshape(C, 1).astype(jnp.float32)

        # Tiny constant (2, Q) int32 table: full-res row / column index per lane
        # (avoids in-kernel integer div/mod; works for any even H, W).
        rows = np.repeat(np.arange(H, dtype=np.int32), W)
        cols = np.tile(np.arange(W, dtype=np.int32), H)
        rc = jnp.asarray(np.stack([rows, cols], axis=0))

        # Generation-aware VMEM budget: actual need + ~30% headroom, capped at
        # 75% of this chip's physical VMEM.
        itemsize = x_nchw.dtype.itemsize
        need = (2 * 2 * C * Q * itemsize          # x + out blocks (double buffered)
                + 2 * Q * 4                       # index table
                + 2 * 9 * C * (4 * C + 2 * C)     # bf16 weights
                + 3 * C * 4                       # biases
                + 4 * 4 * C * Qp                  # f32 halo scratch
                + 2 * 9 * 4 * C * Q)              # bf16 tap scratch
        try:
            vmem_cap = pltpu.get_tpu_info().vmem_capacity_bytes
        except Exception:
            vmem_cap = 128 * 1024 * 1024
        vmem_limit = int(min(0.75 * vmem_cap,
                             max(16 * 1024 * 1024, int(1.3 * need))))

        kern = functools.partial(mfa_kernel, C=C, H=H, W=W)

        # TODO(synk): add row tiling (grid (N, Hh//Th) with a +-4 half-res-row
        # halo) so production resolutions fit v7x's 64 MiB VMEM; the small test
        # shapes here fit comfortably as one image per grid step.
        out_flat = pl.pallas_call(
            kern,
            out_shape=jax.ShapeDtypeStruct((N, C, Q), x_nchw.dtype),
            grid=(N,),
            in_specs=[
                pl.BlockSpec((2, Q), lambda b: (0, 0), **const_kw),          # rc
                pl.BlockSpec((1, C, Q), lambda b: (b, 0, 0)),                # x
                pl.BlockSpec((C, 9 * 4 * C), lambda b: (0, 0), **const_kw),  # w1
                pl.BlockSpec((C, 1), lambda b: (0, 0), **const_kw),          # b1
                pl.BlockSpec((C, 9 * C), lambda b: (0, 0), **const_kw),      # w2
                pl.BlockSpec((C, 1), lambda b: (0, 0), **const_kw),          # b2
                pl.BlockSpec((C, 9 * C), lambda b: (0, 0), **const_kw),      # w3
                pl.BlockSpec((C, 1), lambda b: (0, 0), **const_kw),          # b3
            ],
            out_specs=pl.BlockSpec((1, C, Q), lambda b: (b, 0, 0)),
            scratch_shapes=[
                pltpu.VMEM((4 * C, Qp), jnp.float32),      # halo scratch
                pltpu.VMEM((9 * 4 * C, Q), jnp.bfloat16),  # tap-stacked operand
            ],
            compiler_params=pltpu.CompilerParams(
                dimension_semantics=("parallel",),   # batch is independent
                vmem_limit_bytes=vmem_limit,
            ),
        )(rc, x_flat, w1m, b1c, w2m, b2c, w3m, b3c)

        return out_flat.reshape(N, C, H, W)

    return mfa_forward


# ---------------- pure-JAX reference (numerical sanity check) ----------------
def haar_trans_nhwc(x):
    """Standard Haar DWT downsample, NHWC -> (N, H/2, W/2, 4C), order [LL,HL,LH,HH]."""
    N, H, W, C = x.shape
    Hh, Wh = H // 2, W // 2
    xr = x.reshape(N, Hh, 2, Wh, 2, C) * 0.5
    x1 = xr[:, :, 0, :, 0, :]   # even row, even col
    x2 = xr[:, :, 1, :, 0, :]   # odd row,  even col
    x3 = xr[:, :, 0, :, 1, :]   # even row, odd col
    x4 = xr[:, :, 1, :, 1, :]   # odd row,  odd col
    ll = x1 + x2 + x3 + x4
    hl = -x1 - x2 + x3 + x4
    lh = -x1 + x2 - x3 + x4
    hh = x1 - x2 - x3 + x4
    return jnp.concatenate([ll, hl, lh, hh], axis=-1)


def _up2_bilinear(a):
    """Bilinear x2 upsample, align_corners=False (matches F.interpolate)."""
    N, Hh, Wh, C = a.shape
    up = jnp.concatenate([a[:, :1], a[:, :-1]], axis=1)
    dn = jnp.concatenate([a[:, 1:], a[:, -1:]], axis=1)
    r0 = 0.25 * up + 0.75 * a
    r1 = 0.75 * a + 0.25 * dn
    rows = jnp.stack([r0, r1], axis=2).reshape(N, 2 * Hh, Wh, C)
    lf = jnp.concatenate([rows[:, :, :1], rows[:, :, :-1]], axis=2)
    rt = jnp.concatenate([rows[:, :, 1:], rows[:, :, -1:]], axis=2)
    c0 = 0.25 * lf + 0.75 * rows
    c1 = 0.75 * rows + 0.25 * rt
    return jnp.stack([c0, c1], axis=3).reshape(N, 2 * Hh, 2 * Wh, C)


def mfa_reference(x_nchw, w1, b1, w2, b2, w3, b3, *, bf16_convs=False):
    """Pure-JAX MFA.  bf16_convs=True quantizes the conv operands to bf16 the
    same way the kernel feeds the MXU (f32 accumulation everywhere)."""
    x = jnp.transpose(x_nchw, (0, 2, 3, 1))
    h = haar_trans_nhwc(x)
    dn = ('NHWC', 'HWIO', 'NHWC')

    def conv(inp, w):
        if bf16_convs:
            inp = inp.astype(jnp.bfloat16)
            w = w.astype(jnp.bfloat16)
        return lax.conv_general_dilated(inp, w, (1, 1), 'SAME',
                                        dimension_numbers=dn,
                                        preferred_element_type=jnp.float32)

    a = _leaky_relu(conv(h, w1) + b1[0])
    a = _leaky_relu(conv(a, w2) + b2[0])
    a = jnp.clip(conv(a, w3) + b3[0], 0.0, 1.0)
    out = _up2_bilinear(a) * x
    return jnp.transpose(out, (0, 3, 1, 2))


if __name__ == "__main__":
    N, C, H, W = 2, 4, 16, 16
    key = jax.random.PRNGKey(0)
    kx, k1, k2, k3, k4, k5, k6 = jax.random.split(key, 7)

    x = jax.random.normal(kx, (N, C, H, W), jnp.float32)

    # Deterministic synthetic parameters (HWIO layout, PyTorch-style biases).
    w1 = jax.random.normal(k1, (3, 3, 4 * C, C), jnp.float32) * 0.1
    b1 = jax.random.normal(k2, (1, C), jnp.float32) * 0.1
    w2 = jax.random.normal(k3, (3, 3, C, C), jnp.float32) * 0.1
    b2 = jax.random.normal(k4, (1, C), jnp.float32) * 0.1
    w3 = jax.random.normal(k5, (3, 3, C, C), jnp.float32) * 0.1
    b3 = jax.random.normal(k6, (1, C), jnp.float32) * 0.1

    args = (x, w1, b1, w2, b2, w3, b3)
    try:
        fwd = make_mfa_forward(single_buffer_consts=True)
        out = fwd(*args)
        jax.block_until_ready(out)
    except Exception:
        # pl.Buffered(1) single-buffering not available on this JAX build:
        # fall back to default double-buffered constants (perf-only change).
        fwd = make_mfa_forward(single_buffer_consts=False)
        out = fwd(*args)
        jax.block_until_ready(out)

    # Tight check vs. a reference with the same bf16 MXU operand quantization.
    ref_bf16 = mfa_reference(*args, bf16_convs=True)
    np.testing.assert_allclose(np.asarray(out), np.asarray(ref_bf16),
                               rtol=5e-3, atol=5e-3)
    # Looser check vs. the pure-f32 module semantics (bf16 quantization noise).
    ref_f32 = mfa_reference(*args, bf16_convs=False)
    np.testing.assert_allclose(np.asarray(out), np.asarray(ref_f32),
                               rtol=5e-2, atol=5e-2)

    print("KERNEL_OK")
</pallas_src>

<mosaic_0001>
module attributes {stable_mosaic.version = 11 : i64} {
  func.func @mfa_kernel(%arg0: i32, %arg1: memref<2x256xi32, #tpu.memory_space<vmem>>, %arg2: memref<1x4x256xf32, #tpu.memory_space<vmem>>, %arg3: memref<4x144xbf16, #tpu.memory_space<vmem>>, %arg4: memref<4x1xf32, #tpu.memory_space<vmem>>, %arg5: memref<4x36xbf16, #tpu.memory_space<vmem>>, %arg6: memref<4x1xf32, #tpu.memory_space<vmem>>, %arg7: memref<4x36xbf16, #tpu.memory_space<vmem>>, %arg8: memref<4x1xf32, #tpu.memory_space<vmem>>, %arg9: memref<1x4x256xf32, #tpu.memory_space<vmem>>, %arg10: memref<16x324xf32, #tpu.memory_space<vmem>>, %arg11: memref<144x256xbf16, #tpu.memory_space<vmem>>) attributes {dimension_semantics = [#tpu.dimension_semantics<parallel>], iteration_bounds = array<i64: 2>, scalar_prefetch = 0 : i64, scratch_operands = 2 : i64, tpu.core_type = #tpu.core_type<tc>, window_params = [{pipeline_mode = #tpu.pipeline_mode<synchronous>, transform_indices = @transform_0, window_bounds = array<i64: 2, 256>}, {transform_indices = @transform_1, window_bounds = array<i64: 1, 4, 256>}, {pipeline_mode = #tpu.pipeline_mode<synchronous>, transform_indices = @transform_2, window_bounds = array<i64: 4, 144>}, {pipeline_mode = #tpu.pipeline_mode<synchronous>, transform_indices = @transform_3, window_bounds = array<i64: 4, 1>}, {pipeline_mode = #tpu.pipeline_mode<synchronous>, transform_indices = @transform_4, window_bounds = array<i64: 4, 36>}, {pipeline_mode = #tpu.pipeline_mode<synchronous>, transform_indices = @transform_5, window_bounds = array<i64: 4, 1>}, {pipeline_mode = #tpu.pipeline_mode<synchronous>, transform_indices = @transform_6, window_bounds = array<i64: 4, 36>}, {pipeline_mode = #tpu.pipeline_mode<synchronous>, transform_indices = @transform_7, window_bounds = array<i64: 4, 1>}, {transform_indices = @transform_8, window_bounds = array<i64: 1, 4, 256>}]} {
    %c0 = arith.constant 0 : index
    %c0_0 = arith.constant 0 : index
    %0 = vector.load %arg1[%c0, %c0_0] : memref<2x256xi32, #tpu.memory_space<vmem>>, vector<1x256xi32>
    %c1 = arith.constant 1 : index
    %c0_1 = arith.constant 0 : index
    %1 = vector.load %arg1[%c1, %c0_1] : memref<2x256xi32, #tpu.memory_space<vmem>>, vector<1x256xi32>
    %c2_i32 = arith.constant 2 : i32
    %2 = vector.broadcast %c2_i32 : i32 to vector<1x256xi32>
    %3 = arith.cmpi sge, %1, %2 : vector<1x256xi32>
    %c14_i32 = arith.constant 14 : i32
    %4 = vector.broadcast %c14_i32 : i32 to vector<1x256xi32>
    %5 = arith.cmpi slt, %1, %4 : vector<1x256xi32>
    %c1_i32 = arith.constant 1 : i32
    %6 = vector.broadcast %c1_i32 : i32 to vector<1x256xi32>
    %7 = arith.andi %0, %6 : vector<1x256xi32>
    %c0_i32 = arith.constant 0 : i32
    %8 = vector.broadcast %c0_i32 : i32 to vector<1x256xi32>
    %9 = arith.cmpi eq, %7, %8 : vector<1x256xi32>
    %c1_i32_2 = arith.constant 1 : i32
    %10 = vector.broadcast %c1_i32_2 : i32 to vector<1x256xi32>
    %11 = arith.andi %1, %10 : vector<1x256xi32>
    %c0_i32_3 = arith.constant 0 : i32
    %12 = vector.broadcast %c0_i32_3 : i32 to vector<1x256xi32>
    %13 = arith.cmpi eq, %11, %12 : vector<1x256xi32>
    %c2_i32_4 = arith.constant 2 : i32
    %14 = vector.broadcast %c2_i32_4 : i32 to vector<1x256xi32>
    %15 = arith.cmpi slt, %0, %14 : vector<1x256xi32>
    %c15_i32 = arith.constant 15 : i32
    %16 = vector.broadcast %c15_i32 : i32 to vector<1x256xi32>
    %17 = arith.cmpi sge, %0, %16 : vector<1x256xi32>
    %c2_i32_5 = arith.constant 2 : i32
    %18 = vector.broadcast %c2_i32_5 : i32 to vector<1x256xi32>
    %19 = arith.cmpi slt, %1, %18 : vector<1x256xi32>
    %c15_i32_6 = arith.constant 15 : i32
    %20 = vector.broadcast %c15_i32_6 : i32 to vector<1x256xi32>
    %21 = arith.cmpi sge, %1, %20 : vector<1x256xi32>
    %cst = arith.constant 0.000000e+00 : f32
    %22 = vector.broadcast %cst : f32 to vector<16x34xf32>
    %c0_7 = arith.constant 0 : index
    %c0_8 = arith.constant 0 : index
    %23 = vector.load %arg10[%c0_7, %c0_8] : memref<16x324xf32, #tpu.memory_space<vmem>>, vector<16x34xf32>
    tpu.vector_store %arg10[%c0_7, %c0_8], %22 {strides = array<i32>} : memref<16x324xf32, #tpu.memory_space<vmem>>, vector<16x34xf32>,
    %c0_9 = arith.constant 0 : index
    %c290 = arith.constant 290 : index
    %24 = vector.load %arg10[%c0_9, %c290] : memref<16x324xf32, #tpu.memory_space<vmem>>, vector<16x34xf32>
    tpu.vector_store %arg10[%c0_9, %c290], %22 {strides = array<i32>} : memref<16x324xf32, #tpu.memory_space<vmem>>, vector<16x34xf32>,
    %c0_10 = arith.constant 0 : index
    %c0_11 = arith.constant 0 : index
    %c0_12 = arith.constant 0 : index
    %25 = vector.load %arg2[%c0_10, %c0_11, %c0_12] : memref<1x4x256xf32, #tpu.memory_space<vmem>>, vector<1x4x256xf32>
    %26 = vector.shape_cast %25 : vector<1x4x256xf32> to vector<4x256xf32>
    %c0_13 = arith.constant 0 : index
    %c34 = arith.constant 34 : index
    %27 = vector.load %arg10[%c0_13, %c34] : memref<16x324xf32, #tpu.memory_space<vmem>>, vector<4x256xf32>
    tpu.vector_store %arg10[%c0_13, %c34], %26 {strides = array<i32>} : memref<16x324xf32, #tpu.memory_space<vmem>>, vector<4x256xf32>,
    %c0_14 = arith.constant 0 : index
    %c35 = arith.constant 35 : index
    %28 = vector.load %arg10[%c0_14, %c35] : memref<16x324xf32, #tpu.memory_space<vmem>>, vector<4x256xf32>
    %c0_15 = arith.constant 0 : index
    %c50 = arith.constant 50 : index
    %29 = vector.load %arg10[%c0_15, %c50] : memref<16x324xf32, #tpu.memory_space<vmem>>, vector<4x256xf32>
    %c0_16 = arith.constant 0 : index
    %c51 = arith.constant 51 : index
    %30 = vector.load %arg10[%c0_16, %c51] : memref<16x324xf32, #tpu.memory_space<vmem>>, vector<4x256xf32>
    %31 = arith.addf %26, %29 : vector<4x256xf32>
    %32 = arith.addf %31, %28 : vector<4x256xf32>
    %33 = arith.addf %32, %30 : vector<4x256xf32>
    %cst_17 = arith.constant 5.000000e-01 : f32
    %34 = vector.broadcast %cst_17 : f32 to vector<4x256xf32>
    %35 = arith.mulf %33, %34 : vector<4x256xf32>
    %36 = arith.addf %28, %30 : vector<4x256xf32>
    %37 = arith.subf %36, %26 : vector<4x256xf32>
    %38 = arith.subf %37, %29 : vector<4x256xf32>
    %cst_18 = arith.constant 5.000000e-01 : f32
    %39 = vector.broadcast %cst_18 : f32 to vector<4x256xf32>
    %40 = arith.mulf %38, %39 : vector<4x256xf32>
    %41 = arith.addf %29, %30 : vector<4x256xf32>
    %42 = arith.subf %41, %26 : vector<4x256xf32>
    %43 = arith.subf %42, %28 : vector<4x256xf32>
    %cst_19 = arith.constant 5.000000e-01 : f32
    %44 = vector.broadcast %cst_19 : f32 to vector<4x256xf32>
    %45 = arith.mulf %43, %44 : vector<4x256xf32>
    %46 = arith.addf %26, %30 : vector<4x256xf32>
    %47 = arith.subf %46, %29 : vector<4x256xf32>
    %48 = arith.subf %47, %28 : vector<4x256xf32>
    %cst_20 = arith.constant 5.000000e-01 : f32
    %49 = vector.broadcast %cst_20 : f32 to vector<4x256xf32>
    %50 = arith.mulf %48, %49 : vector<4x256xf32>
    %c0_21 = arith.constant 0 : index
    %c34_22 = arith.constant 34 : index
    %51 = vector.load %arg10[%c0_21, %c34_22] : memref<16x324xf32, #tpu.memory_space<vmem>>, vector<4x256xf32>
    tpu.vector_store %arg10[%c0_21, %c34_22], %35 {strides = array<i32>} : memref<16x324xf32, #tpu.memory_space<vmem>>, vector<4x256xf32>,
    %c4 = arith.constant 4 : index
    %c34_23 = arith.constant 34 : index
    %52 = vector.load %arg10[%c4, %c34_23] : memref<16x324xf32, #tpu.memory_space<vmem>>, vector<4x256xf32>
    tpu.vector_store %arg10[%c4, %c34_23], %40 {strides = array<i32>} : memref<16x324xf32, #tpu.memory_space<vmem>>, vector<4x256xf32>,
    %c8 = arith.constant 8 : index
    %c34_24 = arith.constant 34 : index
    %53 = vector.load %arg10[%c8, %c34_24] : memref<16x324xf32, #tpu.memory_space<vmem>>, vector<4x256xf32>
    tpu.vector_store %arg10[%c8, %c34_24], %45 {strides = array<i32>} : memref<16x324xf32, #tpu.memory_space<vmem>>, vector<4x256xf32>,
    %c12 = arith.constant 12 : index
    %c34_25 = arith.constant 34 : index
    %54 = vector.load %arg10[%c12, %c34_25] : memref<16x324xf32, #tpu.memory_space<vmem>>, vector<4x256xf32>
    tpu.vector_store %arg10[%c12, %c34_25], %50 {strides = array<i32>} : memref<16x324xf32, #tpu.memory_space<vmem>>, vector<4x256xf32>,
    %c0_26 = arith.constant 0 : index
    %c0_27 = arith.constant 0 : index
    %55 = vector.load %arg10[%c0_26, %c0_27] : memref<16x324xf32, #tpu.memory_space<vmem>>, vector<16x256xf32>
    %cst_28 = arith.constant 0.000000e+00 : f32
    %56 = vector.shape_cast %3 : vector<1x256xi1> to vector<1x256xi1>
    %57 = vector.broadcast %56 : vector<1x256xi1> to vector<16x256xi1>
    %58 = vector.broadcast %cst_28 : f32 to vector<16x256xf32>
    %59 = arith.select %57, %55, %58 : vector<16x256xi1>, vector<16x256xf32>
    %60 = arith.truncf %59 : vector<16x256xf32> to vector<16x256xbf16>
    %c0_29 = arith.constant 0 : index
    %c0_30 = arith.constant 0 : index
    %61 = vector.load %arg11[%c0_29, %c0_30] : memref<144x256xbf16, #tpu.memory_space<vmem>>, vector<16x256xbf16>
    tpu.vector_store %arg11[%c0_29, %c0_30], %60 {strides = array<i32>} : memref<144x256xbf16, #tpu.memory_space<vmem>>, vector<16x256xbf16>,
    %c0_31 = arith.constant 0 : index
    %c2 = arith.constant 2 : index
    %62 = vector.load %arg10[%c0_31, %c2] : memref<16x324xf32, #tpu.memory_space<vmem>>, vector<16x256xf32>
    %63 = arith.truncf %62 : vector<16x256xf32> to vector<16x256xbf16>
    %c16 = arith.constant 16 : index
    %c0_32 = arith.constant 0 : index
    %64 = vector.load %arg11[%c16, %c0_32] : memref<144x256xbf16, #tpu.memory_space<vmem>>, vector<16x256xbf16>
    tpu.vector_store %arg11[%c16, %c0_32], %63 {strides = array<i32>} : memref<144x256xbf16, #tpu.memory_space<vmem>>, vector<16x256xbf16>,
    %c0_33 = arith.constant 0 : index
    %c4_34 = arith.constant 4 : index
    %65 = vector.load %arg10[%c0_33, %c4_34] : memref<16x324xf32, #tpu.memory_space<vmem>>, vector<16x256xf32>
    %cst_35 = arith.constant 0.000000e+00 : f32
    %66 = vector.shape_cast %5 : vector<1x256xi1> to vector<1x256xi1>
    %67 = vector.broadcast %66 : vector<1x256xi1> to vector<16x256xi1>
    %68 = vector.broadcast %cst_35 : f32 to vector<16x256xf32>
    %69 = arith.select %67, %65, %68 : vector<16x256xi1>, vector<16x256xf32>
    %70 = arith.truncf %69 : vector<16x256xf32> to vector<16x256xbf16>
    %c32 = arith.constant 32 : index
    %c0_36 = arith.constant 0 : index
    %71 = vector.load %arg11[%c32, %c0_36] : memref<144x256xbf16, #tpu.memory_space<vmem>>, vector<16x256xbf16>
    tpu.vector_store %arg11[%c32, %c0_36], %70 {strides = array<i32>} : memref<144x256xbf16, #tpu.memory_space<vmem>>, vector<16x256xbf16>,
    %c0_37 = arith.constant 0 : index
    %c32_38 = arith.constant 32 : index
    %72 = vector.load %arg10[%c0_37, %c32_38] : memref<16x324xf32, #tpu.memory_space<vmem>>, vector<16x256xf32>
    %cst_39 = arith.constant 0.000000e+00 : f32
    %73 = vector.shape_cast %3 : vector<1x256xi1> to vector<1x256xi1>
    %74 = vector.broadcast %73 : vector<1x256xi1> to vector<16x256xi1>
    %75 = vector.broadcast %cst_39 : f32 to vector<16x256xf32>
    %76 = arith.select %74, %72, %75 : vector<16x256xi1>, vector<16x256xf32>
    %77 = arith.truncf %76 : vector<16x256xf32> to vector<16x256xbf16>
    %c48 = arith.constant 48 : index
    %c0_40 = arith.constant 0 : index
    %78 = vector.load %arg11[%c48, %c0_40] : memref<144x256xbf16, #tpu.memory_space<vmem>>, vector<16x256xbf16>
    tpu.vector_store %arg11[%c48, %c0_40], %77 {strides = array<i32>} : memref<144x256xbf16, #tpu.memory_space<vmem>>, vector<16x256xbf16>,
    %c0_41 = arith.constant 0 : index
    %c34_42 = arith.constant 34 : index
    %79 = vector.load %arg10[%c0_41, %c34_42] : memref<16x324xf32, #tpu.memory_space<vmem>>, vector<16x256xf32>
    %80 = arith.truncf %79 : vector<16x256xf32> to vector<16x256xbf16>
    %c64 = arith.constant 64 : index
    %c0_43 = arith.constant 0 : index
    %81 = vector.load %arg11[%c64, %c0_43] : memref<144x256xbf16, #tpu.memory_space<vmem>>, vector<16x256xbf16>
    tpu.vector_store %arg11[%c64, %c0_43], %80 {strides = array<i32>} : memref<144x256xbf16, #tpu.memory_space<vmem>>, vector<16x256xbf16>,
    %c0_44 = arith.constant 0 : index
    %c36 = arith.constant 36 : index
    %82 = vector.load %arg10[%c0_44, %c36] : memref<16x324xf32, #tpu.memory_space<vmem>>, vector<16x256xf32>
    %cst_45 = arith.constant 0.000000e+00 : f32
    %83 = vector.shape_cast %5 : vector<1x256xi1> to vector<1x256xi1>
    %84 = vector.broadcast %83 : vector<1x256xi1> to vector<16x256xi1>
    %85 = vector.broadcast %cst_45 : f32 to vector<16x256xf32>
    %86 = arith.select %84, %82, %85 : vector<16x256xi1>, vector<16x256xf32>
    %87 = arith.truncf %86 : vector<16x256xf32> to vector<16x256xbf16>
    %c80 = arith.constant 80 : index
    %c0_46 = arith.constant 0 : index
    %88 = vector.load %arg11[%c80, %c0_46] : memref<144x256xbf16, #tpu.memory_space<vmem>>, vector<16x256xbf16>
    tpu.vector_store %arg11[%c80, %c0_46], %87 {strides = array<i32>} : memref<144x256xbf16, #tpu.memory_space<vmem>>, vector<16x256xbf16>,
    %c0_47 = arith.constant 0 : index
    %c64_48 = arith.constant 64 : index
    %89 = vector.load %arg10[%c0_47, %c64_48] : memref<16x324xf32, #tpu.memory_space<vmem>>, vector<16x256xf32>
    %cst_49 = arith.constant 0.000000e+00 : f32
    %90 = vector.shape_cast %3 : vector<1x256xi1> to vector<1x256xi1>
    %91 = vector.broadcast %90 : vector<1x256xi1> to vector<16x256xi1>
    %92 = vector.broadcast %cst_49 : f32 to vector<16x256xf32>
    %93 = arith.select %91, %89, %92 : vector<16x256xi1>, vector<16x256xf32>
    %94 = arith.truncf %93 : vector<16x256xf32> to vector<16x256xbf16>
    %c96 = arith.constant 96 : index
    %c0_50 = arith.constant 0 : index
    %95 = vector.load %arg11[%c96, %c0_50] : memref<144x256xbf16, #tpu.memory_space<vmem>>, vector<16x256xbf16>
    tpu.vector_store %arg11[%c96, %c0_50], %94 {strides = array<i32>} : memref<144x256xbf16, #tpu.memory_space<vmem>>, vector<16x256xbf16>,
    %c0_51 = arith.constant 0 : index
    %c66 = arith.constant 66 : index
    %96 = vector.load %arg10[%c0_51, %c66] : memref<16x324xf32, #tpu.memory_space<vmem>>, vector<16x256xf32>
    %97 = arith.truncf %96 : vector<16x256xf32> to vector<16x256xbf16>
    %c112 = arith.constant 112 : index
    %c0_52 = arith.constant 0 : index
    %98 = vector.load %arg11[%c112, %c0_52] : memref<144x256xbf16, #tpu.memory_space<vmem>>, vector<16x256xbf16>
    tpu.vector_store %arg11[%c112, %c0_52], %97 {strides = array<i32>} : memref<144x256xbf16, #tpu.memory_space<vmem>>, vector<16x256xbf16>,
    %c0_53 = arith.constant 0 : index
    %c68 = arith.constant 68 : index
    %99 = vector.load %arg10[%c0_53, %c68] : memref<16x324xf32, #tpu.memory_space<vmem>>, vector<16x256xf32>
    %cst_54 = arith.constant 0.000000e+00 : f32
    %100 = vector.shape_cast %5 : vector<1x256xi1> to vector<1x256xi1>
    %101 = vector.broadcast %100 : vector<1x256xi1> to vector<16x256xi1>
    %102 = vector.broadcast %cst_54 : f32 to vector<16x256xf32>
    %103 = arith.select %101, %99, %102 : vector<16x256xi1>, vector<16x256xf32>
    %104 = arith.truncf %103 : vector<16x256xf32> to vector<16x256xbf16>
    %c128 = arith.constant 128 : index
    %c0_55 = arith.constant 0 : index
    %105 = vector.load %arg11[%c128, %c0_55] : memref<144x256xbf16, #tpu.memory_space<vmem>>, vector<16x256xbf16>
    tpu.vector_store %arg11[%c128, %c0_55], %104 {strides = array<i32>} : memref<144x256xbf16, #tpu.memory_space<vmem>>, vector<16x256xbf16>,
    %c0_56 = arith.constant 0 : index
    %c0_57 = arith.constant 0 : index
    %106 = vector.load %arg3[%c0_56, %c0_57] : memref<4x144xbf16, #tpu.memory_space<vmem>>, vector<4x144xbf16>
    %c0_58 = arith.constant 0 : index
    %c0_59 = arith.constant 0 : index
    %107 = vector.load %arg11[%c0_58, %c0_59] : memref<144x256xbf16, #tpu.memory_space<vmem>>, vector<144x256xbf16>
    %cst_60 = arith.constant dense<0.000000e+00> : vector<4x256xf32>
    %108 = tpu.matmul %106, %107, %cst_60 {dimension_numbers = #tpu.dot_dimension_numbers<[1], [0], [0], [1], [0, 0, 1, 1], [], []>} : vector<4x144xbf16>, vector<144x256xbf16>, vector<4x256xf32> -> vector<4x256xf32>
    %c0_61 = arith.constant 0 : index
    %c0_62 = arith.constant 0 : index
    %109 = vector.load %arg4[%c0_61, %c0_62] : memref<4x1xf32, #tpu.memory_space<vmem>>, vector<4x1xf32>
    %110 = vector.broadcast %109 : vector<4x1xf32> to vector<4x256xf32>
    %111 = arith.addf %108, %110 : vector<4x256xf32>
    %cst_63 = arith.constant 0.000000e+00 : f32
    %112 = vector.broadcast %cst_63 : f32 to vector<4x256xf32>
    %113 = arith.cmpf ogt, %111, %112 : vector<4x256xf32>
    %cst_64 = arith.constant 1.000000e-01 : f32
    %114 = vector.broadcast %cst_64 : f32 to vector<4x256xf32>
    %115 = arith.mulf %114, %111 : vector<4x256xf32>
    %116 = arith.select %113, %111, %115 : vector<4x256xi1>, vector<4x256xf32>
    %c0_65 = arith.constant 0 : index
    %c34_66 = arith.constant 34 : index
    %117 = vector.load %arg10[%c0_65, %c34_66] : memref<16x324xf32, #tpu.memory_space<vmem>>, vector<4x256xf32>
    tpu.vector_store %arg10[%c0_65, %c34_66], %116 {strides = array<i32>} : memref<16x324xf32, #tpu.memory_space<vmem>>, vector<4x256xf32>,
    %c0_67 = arith.constant 0 : index
    %c0_68 = arith.constant 0 : index
    %118 = vector.load %arg10[%c0_67, %c0_68] : memref<16x324xf32, #tpu.memory_space<vmem>>, vector<4x256xf32>
    %cst_69 = arith.constant 0.000000e+00 : f32
    %119 = vector.shape_cast %3 : vector<1x256xi1> to vector<1x256xi1>
    %120 = vector.broadcast %119 : vector<1x256xi1> to vector<4x256xi1>
    %121 = vector.broadcast %cst_69 : f32 to vector<4x256xf32>
    %122 = arith.select %120, %118, %121 : vector<4x256xi1>, vector<4x256xf32>
    %123 = arith.truncf %122 : vector<4x256xf32> to vector<4x256xbf16>
    %c0_70 = arith.constant 0 : index
    %c0_71 = arith.constant 0 : index
    %124 = vector.load %arg11[%c0_70, %c0_71] : memref<144x256xbf16, #tpu.memory_space<vmem>>, vector<4x256xbf16>
    tpu.vector_store %arg11[%c0_70, %c0_71], %123 {strides = array<i32>} : memref<144x256xbf16, #tpu.memory_space<vmem>>, vector<4x256xbf16>,
    %c0_72 = arith.constant 0 : index
    %c2_73 = arith.constant 2 : index
    %125 = vector.load %arg10[%c0_72, %c2_73] : memref<16x324xf32, #tpu.memory_space<vmem>>, vector<4x256xf32>
    %126 = arith.truncf %125 : vector<4x256xf32> to vector<4x256xbf16>
    %c4_74 = arith.constant 4 : index
    %c0_75 = arith.constant 0 : index
    %127 = vector.load %arg11[%c4_74, %c0_75] : memref<144x256xbf16, #tpu.memory_space<vmem>>, vector<4x256xbf16>
    tpu.vector_store %arg11[%c4_74, %c0_75], %126 {strides = array<i32>} : memref<144x256xbf16, #tpu.memory_space<vmem>>, vector<4x256xbf16>,
    %c0_76 = arith.constant 0 : index
    %c4_77 = arith.constant 4 : index
    %128 = vector.load %arg10[%c0_76, %c4_77] : memref<16x324xf32, #tpu.memory_space<vmem>>, vector<4x256xf32>
    %cst_78 = arith.constant 0.000000e+00 : f32
    %129 = vector.shape_cast %5 : vector<1x256xi1> to vector<1x256xi1>
    %130 = vector.broadcast %129 : vector<1x256xi1> to vector<4x256xi1>
    %131 = vector.broadcast %cst_78 : f32 to vector<4x256xf32>
    %132 = arith.select %130, %128, %131 : vector<4x256xi1>, vector<4x256xf32>
    %133 = arith.truncf %132 : vector<4x256xf32> to vector<4x256xbf16>
    %c8_79 = arith.constant 8 : index
    %c0_80 = arith.constant 0 : index
    %134 = vector.load %arg11[%c8_79, %c0_80] : memref<144x256xbf16, #tpu.memory_space<vmem>>, vector<4x256xbf16>
    tpu.vector_store %arg11[%c8_79, %c0_80], %133 {strides = array<i32>} : memref<144x256xbf16, #tpu.memory_space<vmem>>, vector<4x256xbf16>,
    %c0_81 = arith.constant 0 : index
    %c32_82 = arith.constant 32 : index
    %135 = vector.load %arg10[%c0_81, %c32_82] : memref<16x324xf32, #tpu.memory_space<vmem>>, vector<4x256xf32>
    %cst_83 = arith.constant 0.000000e+00 : f32
    %136 = vector.shape_cast %3 : vector<1x256xi1> to vector<1x256xi1>
    %137 = vector.broadcast %136 : vector<1x256xi1> to vector<4x256xi1>
    %138 = vector.broadcast %cst_83 : f32 to vector<4x256xf32>
    %139 = arith.select %137, %135, %138 : vector<4x256xi1>, vector<4x256xf32>
    %140 = arith.truncf %139 : vector<4x256xf32> to vector<4x256xbf16>
    %c12_84 = arith.constant 12 : index
    %c0_85 = arith.constant 0 : index
    %141 = vector.load %arg11[%c12_84, %c0_85] : memref<144x256xbf16, #tpu.memory_space<vmem>>, vector<4x256xbf16>
    tpu.vector_store %arg11[%c12_84, %c0_85], %140 {strides = array<i32>} : memref<144x256xbf16, #tpu.memory_space<vmem>>, vector<4x256xbf16>,
    %c0_86 = arith.constant 0 : index
    %c34_87 = arith.constant 34 : index
    %142 = vector.load %arg10[%c0_86, %c34_87] : memref<16x324xf32, #tpu.memory_space<vmem>>, vector<4x256xf32>
    %143 = arith.truncf %142 : vector<4x256xf32> to vector<4x256xbf16>
    %c16_88 = arith.constant 16 : index
    %c0_89 = arith.constant 0 : index
    %144 = vector.load %arg11[%c16_88, %c0_89] : memref<144x256xbf16, #tpu.memory_space<vmem>>, vector<4x256xbf16>
    tpu.vector_store %arg11[%c16_88, %c0_89], %143 {strides = array<i32>} : memref<144x256xbf16, #tpu.memory_space<vmem>>, vector<4x256xbf16>,
    %c0_90 = arith.constant 0 : index
    %c36_91 = arith.constant 36 : index
    %145 = vector.load %arg10[%c0_90, %c36_91] : memref<16x324xf32, #tpu.memory_space<vmem>>, vector<4x256xf32>
    %cst_92 = arith.constant 0.000000e+00 : f32
    %146 = vector.shape_cast %5 : vector<1x256xi1> to vector<1x256xi1>
    %147 = vector.broadcast %146 : vector<1x256xi1> to vector<4x256xi1>
    %148 = vector.broadcast %cst_92 : f32 to vector<4x256xf32>
    %149 = arith.select %147, %145, %148 : vector<4x256xi1>, vector<4x256xf32>
    %150 = arith.truncf %149 : vector<4x256xf32> to vector<4x256xbf16>
    %c20 = arith.constant 20 : index
    %c0_93 = arith.constant 0 : index
    %151 = vector.load %arg11[%c20, %c0_93] : memref<144x256xbf16, #tpu.memory_space<vmem>>, vector<4x256xbf16>
    tpu.vector_store %arg11[%c20, %c0_93], %150 {strides = array<i32>} : memref<144x256xbf16, #tpu.memory_space<vmem>>, vector<4x256xbf16>,
    %c0_94 = arith.constant 0 : index
    %c64_95 = arith.constant 64 : index
    %152 = vector.load %arg10[%c0_94, %c64_95] : memref<16x324xf32, #tpu.memory_space<vmem>>, vector<4x256xf32>
    %cst_96 = arith.constant 0.000000e+00 : f32
    %153 = vector.shape_cast %3 : vector<1x256xi1> to vector<1x256xi1>
    %154 = vector.broadcast %153 : vector<1x256xi1> to vector<4x256xi1>
    %155 = vector.broadcast %cst_96 : f32 to vector<4x256xf32>
    %156 = arith.select %154, %152, %155 : vector<4x256xi1>, vector<4x256xf32>
    %157 = arith.truncf %156 : vector<4x256xf32> to vector<4x256xbf16>
    %c24 = arith.constant 24 : index
    %c0_97 = arith.constant 0 : index
    %158 = vector.load %arg11[%c24, %c0_97] : memref<144x256xbf16, #tpu.memory_space<vmem>>, vector<4x256xbf16>
    tpu.vector_store %arg11[%c24, %c0_97], %157 {strides = array<i32>} : memref<144x256xbf16, #tpu.memory_space<vmem>>, vector<4x256xbf16>,
    %c0_98 = arith.constant 0 : index
    %c66_99 = arith.constant 66 : index
    %159 = vector.load %arg10[%c0_98, %c66_99] : memref<16x324xf32, #tpu.memory_space<vmem>>, vector<4x256xf32>
    %160 = arith.truncf %159 : vector<4x256xf32> to vector<4x256xbf16>
    %c28 = arith.constant 28 : index
    %c0_100 = arith.constant 0 : index
    %161 = vector.load %arg11[%c28, %c0_100] : memref<144x256xbf16, #tpu.memory_space<vmem>>, vector<4x256xbf16>
    tpu.vector_store %arg11[%c28, %c0_100], %160 {strides = array<i32>} : memref<144x256xbf16, #tpu.memory_space<vmem>>, vector<4x256xbf16>,
    %c0_101 = arith.constant 0 : index
    %c68_102 = arith.constant 68 : index
    %162 = vector.load %arg10[%c0_101, %c68_102] : memref<16x324xf32, #tpu.memory_space<vmem>>, vector<4x256xf32>
    %cst_103 = arith.constant 0.000000e+00 : f32
    %163 = vector.shape_cast %5 : vector<1x256xi1> to vector<1x256xi1>
    %164 = vector.broadcast %163 : vector<1x256xi1> to vector<4x256xi1>
    %165 = vector.broadcast %cst_103 : f32 to vector<4x256xf32>
    %166 = arith.select %164, %162, %165 : vector<4x256xi1>, vector<4x256xf32>
    %167 = arith.truncf %166 : vector<4x256xf32> to vector<4x256xbf16>
    %c32_104 = arith.constant 32 : index
    %c0_105 = arith.constant 0 : index
    %168 = vector.load %arg11[%c32_104, %c0_105] : memref<144x256xbf16, #tpu.memory_space<vmem>>, vector<4x256xbf16>
    tpu.vector_store %arg11[%c32_104, %c0_105], %167 {strides = array<i32>} : memref<144x256xbf16, #tpu.memory_space<vmem>>, vector<4x256xbf16>,
    %c0_106 = arith.constant 0 : index
    %c0_107 = arith.constant 0 : index
    %169 = vector.load %arg5[%c0_106, %c0_107] : memref<4x36xbf16, #tpu.memory_space<vmem>>, vector<4x36xbf16>
    %c0_108 = arith.constant 0 : index
    %c0_109 = arith.constant 0 : index
    %170 = vector.load %arg11[%c0_108, %c0_109] : memref<144x256xbf16, #tpu.memory_space<vmem>>, vector<36x256xbf16>
    %cst_110 = arith.constant dense<0.000000e+00> : vector<4x256xf32>
    %171 = tpu.matmul %169, %170, %cst_110 {dimension_numbers = #tpu.dot_dimension_numbers<[1], [0], [0], [1], [0, 0, 1, 1], [], []>} : vector<4x36xbf16>, vector<36x256xbf16>, vector<4x256xf32> -> vector<4x256xf32>
    %c0_111 = arith.constant 0 : index
    %c0_112 = arith.constant 0 : index
    %172 = vector.load %arg6[%c0_111, %c0_112] : memref<4x1xf32, #tpu.memory_space<vmem>>, vector<4x1xf32>
    %173 = vector.broadcast %172 : vector<4x1xf32> to vector<4x256xf32>
    %174 = arith.addf %171, %173 : vector<4x256xf32>
    %cst_113 = arith.constant 0.000000e+00 : f32
    %175 = vector.broadcast %cst_113 : f32 to vector<4x256xf32>
    %176 = arith.cmpf ogt, %174, %175 : vector<4x256xf32>
    %cst_114 = arith.constant 1.000000e-01 : f32
    %177 = vector.broadcast %cst_114 : f32 to vector<4x256xf32>
    %178 = arith.mulf %177, %174 : vector<4x256xf32>
    %179 = arith.select %176, %174, %178 : vector<4x256xi1>, vector<4x256xf32>
    %c0_115 = arith.constant 0 : index
    %c34_116 = arith.constant 34 : index
    %180 = vector.load %arg10[%c0_115, %c34_116] : memref<16x324xf32, #tpu.memory_space<vmem>>, vector<4x256xf32>
    tpu.vector_store %arg10[%c0_115, %c34_116], %179 {strides = array<i32>} : memref<16x324xf32, #tpu.memory_space<vmem>>, vector<4x256xf32>,
    %c0_117 = arith.constant 0 : index
    %c0_118 = arith.constant 0 : index
    %181 = vector.load %arg10[%c0_117, %c0_118] : memref<16x324xf32, #tpu.memory_space<vmem>>, vector<4x256xf32>
    %cst_119 = arith.constant 0.000000e+00 : f32
    %182 = vector.shape_cast %3 : vector<1x256xi1> to vector<1x256xi1>
    %183 = vector.broadcast %182 : vector<1x256xi1> to vector<4x256xi1>
    %184 = vector.broadcast %cst_119 : f32 to vector<4x256xf32>
    %185 = arith.select %183, %181, %184 : vector<4x256xi1>, vector<4x256xf32>
    %186 = arith.truncf %185 : vector<4x256xf32> to vector<4x256xbf16>
    %c0_120 = arith.constant 0 : index
    %c0_121 = arith.constant 0 : index
    %187 = vector.load %arg11[%c0_120, %c0_121] : memref<144x256xbf16, #tpu.memory_space<vmem>>, vector<4x256xbf16>
    tpu.vector_store %arg11[%c0_120, %c0_121], %186 {strides = array<i32>} : memref<144x256xbf16, #tpu.memory_space<vmem>>, vector<4x256xbf16>,
    %c0_122 = arith.constant 0 : index
    %c2_123 = arith.constant 2 : index
    %188 = vector.load %arg10[%c0_122, %c2_123] : memref<16x324xf32, #tpu.memory_space<vmem>>, vector<4x256xf32>
    %189 = arith.truncf %188 : vector<4x256xf32> to vector<4x256xbf16>
    %c4_124 = arith.constant 4 : index
    %c0_125 = arith.constant 0 : index
    %190 = vector.load %arg11[%c4_124, %c0_125] : memref<144x256xbf16, #tpu.memory_space<vmem>>, vector<4x256xbf16>
    tpu.vector_store %arg11[%c4_124, %c0_125], %189 {strides = array<i32>} : memref<144x256xbf16, #tpu.memory_space<vmem>>, vector<4x256xbf16>,
    %c0_126 = arith.constant 0 : index
    %c4_127 = arith.constant 4 : index
    %191 = vector.load %arg10[%c0_126, %c4_127] : memref<16x324xf32, #tpu.memory_space<vmem>>, vector<4x256xf32>
    %cst_128 = arith.constant 0.000000e+00 : f32
    %192 = vector.shape_cast %5 : vector<1x256xi1> to vector<1x256xi1>
    %193 = vector.broadcast %192 : vector<1x256xi1> to vector<4x256xi1>
    %194 = vector.broadcast %cst_128 : f32 to vector<4x256xf32>
    %195 = arith.select %193, %191, %194 : vector<4x256xi1>, vector<4x256xf32>
    %196 = arith.truncf %195 : vector<4x256xf32> to vector<4x256xbf16>
    %c8_129 = arith.constant 8 : index
    %c0_130 = arith.constant 0 : index
    %197 = vector.load %arg11[%c8_129, %c0_130] : memref<144x256xbf16, #tpu.memory_space<vmem>>, vector<4x256xbf16>
    tpu.vector_store %arg11[%c8_129, %c0_130], %196 {strides = array<i32>} : memref<144x256xbf16, #tpu.memory_space<vmem>>, vector<4x256xbf16>,
    %c0_131 = arith.constant 0 : index
    %c32_132 = arith.constant 32 : index
    %198 = vector.load %arg10[%c0_131, %c32_132] : memref<16x324xf32, #tpu.memory_space<vmem>>, vector<4x256xf32>
    %cst_133 = arith.constant 0.000000e+00 : f32
    %199 = vector.shape_cast %3 : vector<1x256xi1> to vector<1x256xi1>
    %200 = vector.broadcast %199 : vector<1x256xi1> to vector<4x256xi1>
    %201 = vector.broadcast %cst_133 : f32 to vector<4x256xf32>
    %202 = arith.select %200, %198, %201 : vector<4x256xi1>, vector<4x256xf32>
    %203 = arith.truncf %202 : vector<4x256xf32> to vector<4x256xbf16>
    %c12_134 = arith.constant 12 : index
    %c0_135 = arith.constant 0 : index
    %204 = vector.load %arg11[%c12_134, %c0_135] : memref<144x256xbf16, #tpu.memory_space<vmem>>, vector<4x256xbf16>
    tpu.vector_store %arg11[%c12_134, %c0_135], %203 {strides = array<i32>} : memref<144x256xbf16, #tpu.memory_space<vmem>>, vector<4x256xbf16>,
    %c0_136 = arith.constant 0 : index
    %c34_137 = arith.constant 34 : index
    %205 = vector.load %arg10[%c0_136, %c34_137] : memref<16x324xf32, #tpu.memory_space<vmem>>, vector<4x256xf32>
    %206 = arith.truncf %205 : vector<4x256xf32> to vector<4x256xbf16>
    %c16_138 = arith.constant 16 : index
    %c0_139 = arith.constant 0 : index
    %207 = vector.load %arg11[%c16_138, %c0_139] : memref<144x256xbf16, #tpu.memory_space<vmem>>, vector<4x256xbf16>
    tpu.vector_store %arg11[%c16_138, %c0_139], %206 {strides = array<i32>} : memref<144x256xbf16, #tpu.memory_space<vmem>>, vector<4x256xbf16>,
    %c0_140 = arith.constant 0 : index
    %c36_141 = arith.constant 36 : index
    %208 = vector.load %arg10[%c0_140, %c36_141] : memref<16x324xf32, #tpu.memory_space<vmem>>, vector<4x256xf32>
    %cst_142 = arith.constant 0.000000e+00 : f32
    %209 = vector.shape_cast %5 : vector<1x256xi1> to vector<1x256xi1>
    %210 = vector.broadcast %209 : vector<1x256xi1> to vector<4x256xi1>
    %211 = vector.broadcast %cst_142 : f32 to vector<4x256xf32>
    %212 = arith.select %210, %208, %211 : vector<4x256xi1>, vector<4x256xf32>
    %213 = arith.truncf %212 : vector<4x256xf32> to vector<4x256xbf16>
    %c20_143 = arith.constant 20 : index
    %c0_144 = arith.constant 0 : index
    %214 = vector.load %arg11[%c20_143, %c0_144] : memref<144x256xbf16, #tpu.memory_space<vmem>>, vector<4x256xbf16>
    tpu.vector_store %arg11[%c20_143, %c0_144], %213 {strides = array<i32>} : memref<144x256xbf16, #tpu.memory_space<vmem>>, vector<4x256xbf16>,
    %c0_145 = arith.constant 0 : index
    %c64_146 = arith.constant 64 : index
    %215 = vector.load %arg10[%c0_145, %c64_146] : memref<16x324xf32, #tpu.memory_space<vmem>>, vector<4x256xf32>
    %cst_147 = arith.constant 0.000000e+00 : f32
    %216 = vector.shape_cast %3 : vector<1x256xi1> to vector<1x256xi1>
    %217 = vector.broadcast %216 : vector<1x256xi1> to vector<4x256xi1>
    %218 = vector.broadcast %cst_147 : f32 to vector<4x256xf32>
    %219 = arith.select %217, %215, %218 : vector<4x256xi1>, vector<4x256xf32>
    %220 = arith.truncf %219 : vector<4x256xf32> to vector<4x256xbf16>
    %c24_148 = arith.constant 24 : index
    %c0_149 = arith.constant 0 : index
    %221 = vector.load %arg11[%c24_148, %c0_149] : memref<144x256xbf16, #tpu.memory_space<vmem>>, vector<4x256xbf16>
    tpu.vector_store %arg11[%c24_148, %c0_149], %220 {strides = array<i32>} : memref<144x256xbf16, #tpu.memory_space<vmem>>, vector<4x256xbf16>,
    %c0_150 = arith.constant 0 : index
    %c66_151 = arith.constant 66 : index
    %222 = vector.load %arg10[%c0_150, %c66_151] : memref<16x324xf32, #tpu.memory_space<vmem>>, vector<4x256xf32>
    %223 = arith.truncf %222 : vector<4x256xf32> to vector<4x256xbf16>
    %c28_152 = arith.constant 28 : index
    %c0_153 = arith.constant 0 : index
    %224 = vector.load %arg11[%c28_152, %c0_153] : memref<144x256xbf16, #tpu.memory_space<vmem>>, vector<4x256xbf16>
    tpu.vector_store %arg11[%c28_152, %c0_153], %223 {strides = array<i32>} : memref<144x256xbf16, #tpu.memory_space<vmem>>, vector<4x256xbf16>,
    %c0_154 = arith.constant 0 : index
    %c68_155 = arith.constant 68 : index
    %225 = vector.load %arg10[%c0_154, %c68_155] : memref<16x324xf32, #tpu.memory_space<vmem>>, vector<4x256xf32>
    %cst_156 = arith.constant 0.000000e+00 : f32
    %226 = vector.shape_cast %5 : vector<1x256xi1> to vector<1x256xi1>
    %227 = vector.broadcast %226 : vector<1x256xi1> to vector<4x256xi1>
    %228 = vector.broadcast %cst_156 : f32 to vector<4x256xf32>
    %229 = arith.select %227, %225, %228 : vector<4x256xi1>, vector<4x256xf32>
    %230 = arith.truncf %229 : vector<4x256xf32> to vector<4x256xbf16>
    %c32_157 = arith.constant 32 : index
    %c0_158 = arith.constant 0 : index
    %231 = vector.load %arg11[%c32_157, %c0_158] : memref<144x256xbf16, #tpu.memory_space<vmem>>, vector<4x256xbf16>
    tpu.vector_store %arg11[%c32_157, %c0_158], %230 {strides = array<i32>} : memref<144x256xbf16, #tpu.memory_space<vmem>>, vector<4x256xbf16>,
    %c0_159 = arith.constant 0 : index
    %c0_160 = arith.constant 0 : index
    %232 = vector.load %arg7[%c0_159, %c0_160] : memref<4x36xbf16, #tpu.memory_space<vmem>>, vector<4x36xbf16>
    %c0_161 = arith.constant 0 : index
    %c0_162 = arith.constant 0 : index
    %233 = vector.load %arg11[%c0_161, %c0_162] : memref<144x256xbf16, #tpu.memory_space<vmem>>, vector<36x256xbf16>
    %cst_163 = arith.constant dense<0.000000e+00> : vector<4x256xf32>
    %234 = tpu.matmul %232, %233, %cst_163 {dimension_numbers = #tpu.dot_dimension_numbers<[1], [0], [0], [1], [0, 0, 1, 1], [], []>} : vector<4x36xbf16>, vector<36x256xbf16>, vector<4x256xf32> -> vector<4x256xf32>
    %c0_164 = arith.constant 0 : index
    %c0_165 = arith.constant 0 : index
    %235 = vector.load %arg8[%c0_164, %c0_165] : memref<4x1xf32, #tpu.memory_space<vmem>>, vector<4x1xf32>
    %236 = vector.broadcast %235 : vector<4x1xf32> to vector<4x256xf32>
    %237 = arith.addf %234, %236 : vector<4x256xf32>
    %cst_166 = arith.constant 0.000000e+00 : f32
    %cst_167 = arith.constant 1.000000e+00 : f32
    %238 = vector.broadcast %cst_166 : f32 to vector<4x256xf32>
    %239 = arith.maximumf %238, %237 : vector<4x256xf32>
    %240 = vector.broadcast %cst_167 : f32 to vector<4x256xf32>
    %241 = arith.minimumf %240, %239 : vector<4x256xf32>
    %c0_168 = arith.constant 0 : index
    %c34_169 = arith.constant 34 : index
    %242 = vector.load %arg10[%c0_168, %c34_169] : memref<16x324xf32, #tpu.memory_space<vmem>>, vector<4x256xf32>
    tpu.vector_store %arg10[%c0_168, %c34_169], %241 {strides = array<i32>} : memref<16x324xf32, #tpu.memory_space<vmem>>, vector<4x256xf32>,
    %c0_170 = arith.constant 0 : index
    %c2_171 = arith.constant 2 : index
    %243 = vector.load %arg10[%c0_170, %c2_171] : memref<16x324xf32, #tpu.memory_space<vmem>>, vector<4x256xf32>
    %c0_172 = arith.constant 0 : index
    %c18 = arith.constant 18 : index
    %244 = vector.load %arg10[%c0_172, %c18] : memref<16x324xf32, #tpu.memory_space<vmem>>, vector<4x256xf32>
    %c0_173 = arith.constant 0 : index
    %c50_174 = arith.constant 50 : index
    %245 = vector.load %arg10[%c0_173, %c50_174] : memref<16x324xf32, #tpu.memory_space<vmem>>, vector<4x256xf32>
    %cst_175 = arith.constant 7.500000e-01 : f32
    %246 = vector.broadcast %cst_175 : f32 to vector<4x256xf32>
    %247 = arith.mulf %246, %241 : vector<4x256xf32>
    %248 = vector.shape_cast %15 : vector<1x256xi1> to vector<1x256xi1>
    %249 = vector.broadcast %248 : vector<1x256xi1> to vector<4x256xi1>
    %250 = arith.select %249, %241, %243 : vector<4x256xi1>, vector<4x256xf32>
    %cst_176 = arith.constant 2.500000e-01 : f32
    %251 = vector.broadcast %cst_176 : f32 to vector<4x256xf32>
    %252 = arith.mulf %251, %250 : vector<4x256xf32>
    %253 = arith.addf %247, %252 : vector<4x256xf32>
    %cst_177 = arith.constant 7.500000e-01 : f32
    %254 = vector.broadcast %cst_177 : f32 to vector<4x256xf32>
    %255 = arith.mulf %254, %244 : vector<4x256xf32>
    %256 = vector.shape_cast %17 : vector<1x256xi1> to vector<1x256xi1>
    %257 = vector.broadcast %256 : vector<1x256xi1> to vector<4x256xi1>
    %258 = arith.select %257, %244, %245 : vector<4x256xi1>, vector<4x256xf32>
    %cst_178 = arith.constant 2.500000e-01 : f32
    %259 = vector.broadcast %cst_178 : f32 to vector<4x256xf32>
    %260 = arith.mulf %259, %258 : vector<4x256xf32>
    %261 = arith.addf %255, %260 : vector<4x256xf32>
    %262 = vector.shape_cast %9 : vector<1x256xi1> to vector<1x256xi1>
    %263 = vector.broadcast %262 : vector<1x256xi1> to vector<4x256xi1>
    %264 = arith.select %263, %253, %261 : vector<4x256xi1>, vector<4x256xf32>
    %c0_179 = arith.constant 0 : index
    %c34_180 = arith.constant 34 : index
    %265 = vector.load %arg10[%c0_179, %c34_180] : memref<16x324xf32, #tpu.memory_space<vmem>>, vector<4x256xf32>
    tpu.vector_store %arg10[%c0_179, %c34_180], %264 {strides = array<i32>} : memref<16x324xf32, #tpu.memory_space<vmem>>, vector<4x256xf32>,
    %c0_181 = arith.constant 0 : index
    %c32_182 = arith.constant 32 : index
    %266 = vector.load %arg10[%c0_181, %c32_182] : memref<16x324xf32, #tpu.memory_space<vmem>>, vector<4x256xf32>
    %c0_183 = arith.constant 0 : index
    %c33 = arith.constant 33 : index
    %267 = vector.load %arg10[%c0_183, %c33] : memref<16x324xf32, #tpu.memory_space<vmem>>, vector<4x256xf32>
    %c0_184 = arith.constant 0 : index
    %c35_185 = arith.constant 35 : index
    %268 = vector.load %arg10[%c0_184, %c35_185] : memref<16x324xf32, #tpu.memory_space<vmem>>, vector<4x256xf32>
    %cst_186 = arith.constant 7.500000e-01 : f32
    %269 = vector.broadcast %cst_186 : f32 to vector<4x256xf32>
    %270 = arith.mulf %269, %264 : vector<4x256xf32>
    %271 = vector.shape_cast %19 : vector<1x256xi1> to vector<1x256xi1>
    %272 = vector.broadcast %271 : vector<1x256xi1> to vector<4x256xi1>
    %273 = arith.select %272, %264, %266 : vector<4x256xi1>, vector<4x256xf32>
    %cst_187 = arith.constant 2.500000e-01 : f32
    %274 = vector.broadcast %cst_187 : f32 to vector<4x256xf32>
    %275 = arith.mulf %274, %273 : vector<4x256xf32>
    %276 = arith.addf %270, %275 : vector<4x256xf32>
    %cst_188 = arith.constant 7.500000e-01 : f32
    %277 = vector.broadcast %cst_188 : f32 to vector<4x256xf32>
    %278 = arith.mulf %277, %267 : vector<4x256xf32>
    %279 = vector.shape_cast %21 : vector<1x256xi1> to vector<1x256xi1>
    %280 = vector.broadcast %279 : vector<1x256xi1> to vector<4x256xi1>
    %281 = arith.select %280, %267, %268 : vector<4x256xi1>, vector<4x256xf32>
    %cst_189 = arith.constant 2.500000e-01 : f32
    %282 = vector.broadcast %cst_189 : f32 to vector<4x256xf32>
    %283 = arith.mulf %282, %281 : vector<4x256xf32>
    %284 = arith.addf %278, %283 : vector<4x256xf32>
    %285 = vector.shape_cast %13 : vector<1x256xi1> to vector<1x256xi1>
    %286 = vector.broadcast %285 : vector<1x256xi1> to vector<4x256xi1>
    %287 = arith.select %286, %276, %284 : vector<4x256xi1>, vector<4x256xf32>
    %c0_190 = arith.constant 0 : index
    %c0_191 = arith.constant 0 : index
    %c0_192 = arith.constant 0 : index
    %288 = vector.load %arg2[%c0_190, %c0_191, %c0_192] : memref<1x4x256xf32, #tpu.memory_space<vmem>>, vector<1x4x256xf32>
    %289 = vector.shape_cast %288 : vector<1x4x256xf32> to vector<4x256xf32>
    %290 = arith.mulf %287, %289 : vector<4x256xf32>
    %c0_193 = arith.constant 0 : index
    %c0_194 = arith.constant 0 : index
    %c0_195 = arith.constant 0 : index
    %291 = vector.load %arg9[%c0_193, %c0_194, %c0_195] : memref<1x4x256xf32, #tpu.memory_space<vmem>>, vector<1x4x256xf32>
    %292 = vector.shape_cast %291 : vector<1x4x256xf32> to vector<4x256xf32>
    %293 = vector.shape_cast %290 : vector<4x256xf32> to vector<1x4x256xf32>
    tpu.vector_store %arg9[%c0_193, %c0_194, %c0_195], %293 {strides = array<i32>} : memref<1x4x256xf32, #tpu.memory_space<vmem>>, vector<1x4x256xf32>,
    return
  }
  func.func @transform_0(%arg0: i32) -> (i32, i32) {
    %c0_i32 = arith.constant 0 : i32
    %c0_i32_0 = arith.constant 0 : i32
    %c0_i32_1 = arith.constant 0 : i32
    return %c0_i32, %c0_i32_0 : i32, i32
  }
  func.func @transform_1(%arg0: i32) -> (i32, i32, i32) {
    %c0_i32 = arith.constant 0 : i32
    %c0_i32_0 = arith.constant 0 : i32
    %c0_i32_1 = arith.constant 0 : i32
    return %arg0, %c0_i32, %c0_i32_0 : i32, i32, i32
  }
  func.func @transform_2(%arg0: i32) -> (i32, i32) {
    %c0_i32 = arith.constant 0 : i32
    %c0_i32_0 = arith.constant 0 : i32
    %c0_i32_1 = arith.constant 0 : i32
    return %c0_i32, %c0_i32_0 : i32, i32
  }
  func.func @transform_3(%arg0: i32) -> (i32, i32) {
    %c0_i32 = arith.constant 0 : i32
    %c0_i32_0 = arith.constant 0 : i32
    %c0_i32_1 = arith.constant 0 : i32
    return %c0_i32, %c0_i32_0 : i32, i32
  }
  func.func @transform_4(%arg0: i32) -> (i32, i32) {
    %c0_i32 = arith.constant 0 : i32
    %c0_i32_0 = arith.constant 0 : i32
    %c0_i32_1 = arith.constant 0 : i32
    return %c0_i32, %c0_i32_0 : i32, i32
  }
  func.func @transform_5(%arg0: i32) -> (i32, i32) {
    %c0_i32 = arith.constant 0 : i32
    %c0_i32_0 = arith.constant 0 : i32
    %c0_i32_1 = arith.constant 0 : i32
    return %c0_i32, %c0_i32_0 : i32, i32
  }
  func.func @transform_6(%arg0: i32) -> (i32, i32) {
    %c0_i32 = arith.constant 0 : i32
    %c0_i32_0 = arith.constant 0 : i32
    %c0_i32_1 = arith.constant 0 : i32
    return %c0_i32, %c0_i32_0 : i32, i32
  }
  func.func @transform_7(%arg0: i32) -> (i32, i32) {
    %c0_i32 = arith.constant 0 : i32
    %c0_i32_0 = arith.constant 0 : i32
    %c0_i32_1 = arith.constant 0 : i32
    return %c0_i32, %c0_i32_0 : i32, i32
  }
  func.func @transform_8(%arg0: i32) -> (i32, i32, i32) {
    %c0_i32 = arith.constant 0 : i32
    %c0_i32_0 = arith.constant 0 : i32
    %c0_i32_1 = arith.constant 0 : i32
    return %arg0, %c0_i32, %c0_i32_0 : i32, i32, i32
  }
}

module attributes {stable_mosaic.version = 11 : i64} {
  func.func @mfa_kernel(%arg0: i32, %arg1: memref<2x256xi32, #tpu.memory_space<vmem>>, %arg2: memref<1x4x256xf32, #tpu.memory_space<vmem>>, %arg3: memref<4x144xbf16, #tpu.memory_space<vmem>>, %arg4: memref<4x1xf32, #tpu.memory_space<vmem>>, %arg5: memref<4x36xbf16, #tpu.memory_space<vmem>>, %arg6: memref<4x1xf32, #tpu.memory_space<vmem>>, %arg7: memref<4x36xbf16, #tpu.memory_space<vmem>>, %arg8: memref<4x1xf32, #tpu.memory_space<vmem>>, %arg9: memref<1x4x256xf32, #tpu.memory_space<vmem>>, %arg10: memref<16x324xf32, #tpu.memory_space<vmem>>, %arg11: memref<144x256xbf16, #tpu.memory_space<vmem>>) attributes {dimension_semantics = [#tpu.dimension_semantics<parallel>], iteration_bounds = array<i64: 2>, scalar_prefetch = 0 : i64, scratch_operands = 2 : i64, tpu.core_type = #tpu.core_type<tc>, window_params = [{pipeline_mode = #tpu.pipeline_mode<synchronous>, transform_indices = @transform_0, window_bounds = array<i64: 2, 256>}, {transform_indices = @transform_1, window_bounds = array<i64: 1, 4, 256>}, {pipeline_mode = #tpu.pipeline_mode<synchronous>, transform_indices = @transform_2, window_bounds = array<i64: 4, 144>}, {pipeline_mode = #tpu.pipeline_mode<synchronous>, transform_indices = @transform_3, window_bounds = array<i64: 4, 1>}, {pipeline_mode = #tpu.pipeline_mode<synchronous>, transform_indices = @transform_4, window_bounds = array<i64: 4, 36>}, {pipeline_mode = #tpu.pipeline_mode<synchronous>, transform_indices = @transform_5, window_bounds = array<i64: 4, 1>}, {pipeline_mode = #tpu.pipeline_mode<synchronous>, transform_indices = @transform_6, window_bounds = array<i64: 4, 36>}, {pipeline_mode = #tpu.pipeline_mode<synchronous>, transform_indices = @transform_7, window_bounds = array<i64: 4, 1>}, {transform_indices = @transform_8, window_bounds = array<i64: 1, 4, 256>}]} {
    %c0 = arith.constant 0 : index
    %c0_0 = arith.constant 0 : index
    %0 = vector.load %arg1[%c0, %c0_0] : memref<2x256xi32, #tpu.memory_space<vmem>>, vector<1x256xi32>
    %c1 = arith.constant 1 : index
    %c0_1 = arith.constant 0 : index
    %1 = vector.load %arg1[%c1, %c0_1] : memref<2x256xi32, #tpu.memory_space<vmem>>, vector<1x256xi32>
    %c2_i32 = arith.constant 2 : i32
    %2 = vector.broadcast %c2_i32 : i32 to vector<1x256xi32>
    %3 = arith.cmpi sge, %1, %2 : vector<1x256xi32>
    %c14_i32 = arith.constant 14 : i32
    %4 = vector.broadcast %c14_i32 : i32 to vector<1x256xi32>
    %5 = arith.cmpi slt, %1, %4 : vector<1x256xi32>
    %c1_i32 = arith.constant 1 : i32
    %6 = vector.broadcast %c1_i32 : i32 to vector<1x256xi32>
    %7 = arith.andi %0, %6 : vector<1x256xi32>
    %c0_i32 = arith.constant 0 : i32
    %8 = vector.broadcast %c0_i32 : i32 to vector<1x256xi32>
    %9 = arith.cmpi eq, %7, %8 : vector<1x256xi32>
    %c1_i32_2 = arith.constant 1 : i32
    %10 = vector.broadcast %c1_i32_2 : i32 to vector<1x256xi32>
    %11 = arith.andi %1, %10 : vector<1x256xi32>
    %c0_i32_3 = arith.constant 0 : i32
    %12 = vector.broadcast %c0_i32_3 : i32 to vector<1x256xi32>
    %13 = arith.cmpi eq, %11, %12 : vector<1x256xi32>
    %c2_i32_4 = arith.constant 2 : i32
    %14 = vector.broadcast %c2_i32_4 : i32 to vector<1x256xi32>
    %15 = arith.cmpi slt, %0, %14 : vector<1x256xi32>
    %c15_i32 = arith.constant 15 : i32
    %16 = vector.broadcast %c15_i32 : i32 to vector<1x256xi32>
    %17 = arith.cmpi sge, %0, %16 : vector<1x256xi32>
    %c2_i32_5 = arith.constant 2 : i32
    %18 = vector.broadcast %c2_i32_5 : i32 to vector<1x256xi32>
    %19 = arith.cmpi slt, %1, %18 : vector<1x256xi32>
    %c15_i32_6 = arith.constant 15 : i32
    %20 = vector.broadcast %c15_i32_6 : i32 to vector<1x256xi32>
    %21 = arith.cmpi sge, %1, %20 : vector<1x256xi32>
    %cst = arith.constant 0.000000e+00 : f32
    %22 = vector.broadcast %cst : f32 to vector<16x34xf32>
    %c0_7 = arith.constant 0 : index
    %c0_8 = arith.constant 0 : index
    %23 = vector.load %arg10[%c0_7, %c0_8] : memref<16x324xf32, #tpu.memory_space<vmem>>, vector<16x34xf32>
    tpu.vector_store %arg10[%c0_7, %c0_8], %22 {strides = array<i32>} : memref<16x324xf32, #tpu.memory_space<vmem>>, vector<16x34xf32>,
    %c0_9 = arith.constant 0 : index
    %c290 = arith.constant 290 : index
    %24 = vector.load %arg10[%c0_9, %c290] : memref<16x324xf32, #tpu.memory_space<vmem>>, vector<16x34xf32>
    tpu.vector_store %arg10[%c0_9, %c290], %22 {strides = array<i32>} : memref<16x324xf32, #tpu.memory_space<vmem>>, vector<16x34xf32>,
    %c0_10 = arith.constant 0 : index
    %c0_11 = arith.constant 0 : index
    %c0_12 = arith.constant 0 : index
    %25 = vector.load %arg2[%c0_10, %c0_11, %c0_12] : memref<1x4x256xf32, #tpu.memory_space<vmem>>, vector<1x4x256xf32>
    %26 = vector.shape_cast %25 : vector<1x4x256xf32> to vector<4x256xf32>
    %c0_13 = arith.constant 0 : index
    %c34 = arith.constant 34 : index
    %27 = vector.load %arg10[%c0_13, %c34] : memref<16x324xf32, #tpu.memory_space<vmem>>, vector<4x256xf32>
    tpu.vector_store %arg10[%c0_13, %c34], %26 {strides = array<i32>} : memref<16x324xf32, #tpu.memory_space<vmem>>, vector<4x256xf32>,
    %c0_14 = arith.constant 0 : index
    %c35 = arith.constant 35 : index
    %28 = vector.load %arg10[%c0_14, %c35] : memref<16x324xf32, #tpu.memory_space<vmem>>, vector<4x256xf32>
    %c0_15 = arith.constant 0 : index
    %c50 = arith.constant 50 : index
    %29 = vector.load %arg10[%c0_15, %c50] : memref<16x324xf32, #tpu.memory_space<vmem>>, vector<4x256xf32>
    %c0_16 = arith.constant 0 : index
    %c51 = arith.constant 51 : index
    %30 = vector.load %arg10[%c0_16, %c51] : memref<16x324xf32, #tpu.memory_space<vmem>>, vector<4x256xf32>
    %31 = arith.addf %26, %29 : vector<4x256xf32>
    %32 = arith.addf %31, %28 : vector<4x256xf32>
    %33 = arith.addf %32, %30 : vector<4x256xf32>
    %cst_17 = arith.constant 5.000000e-01 : f32
    %34 = vector.broadcast %cst_17 : f32 to vector<4x256xf32>
    %35 = arith.mulf %33, %34 : vector<4x256xf32>
    %36 = arith.addf %28, %30 : vector<4x256xf32>
    %37 = arith.subf %36, %26 : vector<4x256xf32>
    %38 = arith.subf %37, %29 : vector<4x256xf32>
    %cst_18 = arith.constant 5.000000e-01 : f32
    %39 = vector.broadcast %cst_18 : f32 to vector<4x256xf32>
    %40 = arith.mulf %38, %39 : vector<4x256xf32>
    %41 = arith.addf %29, %30 : vector<4x256xf32>
    %42 = arith.subf %41, %26 : vector<4x256xf32>
    %43 = arith.subf %42, %28 : vector<4x256xf32>
    %cst_19 = arith.constant 5.000000e-01 : f32
    %44 = vector.broadcast %cst_19 : f32 to vector<4x256xf32>
    %45 = arith.mulf %43, %44 : vector<4x256xf32>
    %46 = arith.addf %26, %30 : vector<4x256xf32>
    %47 = arith.subf %46, %29 : vector<4x256xf32>
    %48 = arith.subf %47, %28 : vector<4x256xf32>
    %cst_20 = arith.constant 5.000000e-01 : f32
    %49 = vector.broadcast %cst_20 : f32 to vector<4x256xf32>
    %50 = arith.mulf %48, %49 : vector<4x256xf32>
    %c0_21 = arith.constant 0 : index
    %c34_22 = arith.constant 34 : index
    %51 = vector.load %arg10[%c0_21, %c34_22] : memref<16x324xf32, #tpu.memory_space<vmem>>, vector<4x256xf32>
    tpu.vector_store %arg10[%c0_21, %c34_22], %35 {strides = array<i32>} : memref<16x324xf32, #tpu.memory_space<vmem>>, vector<4x256xf32>,
    %c4 = arith.constant 4 : index
    %c34_23 = arith.constant 34 : index
    %52 = vector.load %arg10[%c4, %c34_23] : memref<16x324xf32, #tpu.memory_space<vmem>>, vector<4x256xf32>
    tpu.vector_store %arg10[%c4, %c34_23], %40 {strides = array<i32>} : memref<16x324xf32, #tpu.memory_space<vmem>>, vector<4x256xf32>,
    %c8 = arith.constant 8 : index
    %c34_24 = arith.constant 34 : index
    %53 = vector.load %arg10[%c8, %c34_24] : memref<16x324xf32, #tpu.memory_space<vmem>>, vector<4x256xf32>
    tpu.vector_store %arg10[%c8, %c34_24], %45 {strides = array<i32>} : memref<16x324xf32, #tpu.memory_space<vmem>>, vector<4x256xf32>,
    %c12 = arith.constant 12 : index
    %c34_25 = arith.constant 34 : index
    %54 = vector.load %arg10[%c12, %c34_25] : memref<16x324xf32, #tpu.memory_space<vmem>>, vector<4x256xf32>
    tpu.vector_store %arg10[%c12, %c34_25], %50 {strides = array<i32>} : memref<16x324xf32, #tpu.memory_space<vmem>>, vector<4x256xf32>,
    %c0_26 = arith.constant 0 : index
    %c0_27 = arith.constant 0 : index
    %55 = vector.load %arg10[%c0_26, %c0_27] : memref<16x324xf32, #tpu.memory_space<vmem>>, vector<16x256xf32>
    %cst_28 = arith.constant 0.000000e+00 : f32
    %56 = vector.shape_cast %3 : vector<1x256xi1> to vector<1x256xi1>
    %57 = vector.broadcast %56 : vector<1x256xi1> to vector<16x256xi1>
    %58 = vector.broadcast %cst_28 : f32 to vector<16x256xf32>
    %59 = arith.select %57, %55, %58 : vector<16x256xi1>, vector<16x256xf32>
    %60 = arith.truncf %59 : vector<16x256xf32> to vector<16x256xbf16>
    %c0_29 = arith.constant 0 : index
    %c0_30 = arith.constant 0 : index
    %61 = vector.load %arg11[%c0_29, %c0_30] : memref<144x256xbf16, #tpu.memory_space<vmem>>, vector<16x256xbf16>
    tpu.vector_store %arg11[%c0_29, %c0_30], %60 {strides = array<i32>} : memref<144x256xbf16, #tpu.memory_space<vmem>>, vector<16x256xbf16>,
    %c0_31 = arith.constant 0 : index
    %c2 = arith.constant 2 : index
    %62 = vector.load %arg10[%c0_31, %c2] : memref<16x324xf32, #tpu.memory_space<vmem>>, vector<16x256xf32>
    %63 = arith.truncf %62 : vector<16x256xf32> to vector<16x256xbf16>
    %c16 = arith.constant 16 : index
    %c0_32 = arith.constant 0 : index
    %64 = vector.load %arg11[%c16, %c0_32] : memref<144x256xbf16, #tpu.memory_space<vmem>>, vector<16x256xbf16>
    tpu.vector_store %arg11[%c16, %c0_32], %63 {strides = array<i32>} : memref<144x256xbf16, #tpu.memory_space<vmem>>, vector<16x256xbf16>,
    %c0_33 = arith.constant 0 : index
    %c4_34 = arith.constant 4 : index
    %65 = vector.load %arg10[%c0_33, %c4_34] : memref<16x324xf32, #tpu.memory_space<vmem>>, vector<16x256xf32>
    %cst_35 = arith.constant 0.000000e+00 : f32
    %66 = vector.shape_cast %5 : vector<1x256xi1> to vector<1x256xi1>
    %67 = vector.broadcast %66 : vector<1x256xi1> to vector<16x256xi1>
    %68 = vector.broadcast %cst_35 : f32 to vector<16x256xf32>
    %69 = arith.select %67, %65, %68 : vector<16x256xi1>, vector<16x256xf32>
    %70 = arith.truncf %69 : vector<16x256xf32> to vector<16x256xbf16>
    %c32 = arith.constant 32 : index
    %c0_36 = arith.constant 0 : index
    %71 = vector.load %arg11[%c32, %c0_36] : memref<144x256xbf16, #tpu.memory_space<vmem>>, vector<16x256xbf16>
    tpu.vector_store %arg11[%c32, %c0_36], %70 {strides = array<i32>} : memref<144x256xbf16, #tpu.memory_space<vmem>>, vector<16x256xbf16>,
    %c0_37 = arith.constant 0 : index
    %c32_38 = arith.constant 32 : index
    %72 = vector.load %arg10[%c0_37, %c32_38] : memref<16x324xf32, #tpu.memory_space<vmem>>, vector<16x256xf32>
    %cst_39 = arith.constant 0.000000e+00 : f32
    %73 = vector.shape_cast %3 : vector<1x256xi1> to vector<1x256xi1>
    %74 = vector.broadcast %73 : vector<1x256xi1> to vector<16x256xi1>
    %75 = vector.broadcast %cst_39 : f32 to vector<16x256xf32>
    %76 = arith.select %74, %72, %75 : vector<16x256xi1>, vector<16x256xf32>
    %77 = arith.truncf %76 : vector<16x256xf32> to vector<16x256xbf16>
    %c48 = arith.constant 48 : index
    %c0_40 = arith.constant 0 : index
    %78 = vector.load %arg11[%c48, %c0_40] : memref<144x256xbf16, #tpu.memory_space<vmem>>, vector<16x256xbf16>
    tpu.vector_store %arg11[%c48, %c0_40], %77 {strides = array<i32>} : memref<144x256xbf16, #tpu.memory_space<vmem>>, vector<16x256xbf16>,
    %c0_41 = arith.constant 0 : index
    %c34_42 = arith.constant 34 : index
    %79 = vector.load %arg10[%c0_41, %c34_42] : memref<16x324xf32, #tpu.memory_space<vmem>>, vector<16x256xf32>
    %80 = arith.truncf %79 : vector<16x256xf32> to vector<16x256xbf16>
    %c64 = arith.constant 64 : index
    %c0_43 = arith.constant 0 : index
    %81 = vector.load %arg11[%c64, %c0_43] : memref<144x256xbf16, #tpu.memory_space<vmem>>, vector<16x256xbf16>
    tpu.vector_store %arg11[%c64, %c0_43], %80 {strides = array<i32>} : memref<144x256xbf16, #tpu.memory_space<vmem>>, vector<16x256xbf16>,
    %c0_44 = arith.constant 0 : index
    %c36 = arith.constant 36 : index
    %82 = vector.load %arg10[%c0_44, %c36] : memref<16x324xf32, #tpu.memory_space<vmem>>, vector<16x256xf32>
    %cst_45 = arith.constant 0.000000e+00 : f32
    %83 = vector.shape_cast %5 : vector<1x256xi1> to vector<1x256xi1>
    %84 = vector.broadcast %83 : vector<1x256xi1> to vector<16x256xi1>
    %85 = vector.broadcast %cst_45 : f32 to vector<16x256xf32>
    %86 = arith.select %84, %82, %85 : vector<16x256xi1>, vector<16x256xf32>
    %87 = arith.truncf %86 : vector<16x256xf32> to vector<16x256xbf16>
    %c80 = arith.constant 80 : index
    %c0_46 = arith.constant 0 : index
    %88 = vector.load %arg11[%c80, %c0_46] : memref<144x256xbf16, #tpu.memory_space<vmem>>, vector<16x256xbf16>
    tpu.vector_store %arg11[%c80, %c0_46], %87 {strides = array<i32>} : memref<144x256xbf16, #tpu.memory_space<vmem>>, vector<16x256xbf16>,
    %c0_47 = arith.constant 0 : index
    %c64_48 = arith.constant 64 : index
    %89 = vector.load %arg10[%c0_47, %c64_48] : memref<16x324xf32, #tpu.memory_space<vmem>>, vector<16x256xf32>
    %cst_49 = arith.constant 0.000000e+00 : f32
    %90 = vector.shape_cast %3 : vector<1x256xi1> to vector<1x256xi1>
    %91 = vector.broadcast %90 : vector<1x256xi1> to vector<16x256xi1>
    %92 = vector.broadcast %cst_49 : f32 to vector<16x256xf32>
    %93 = arith.select %91, %89, %92 : vector<16x256xi1>, vector<16x256xf32>
    %94 = arith.truncf %93 : vector<16x256xf32> to vector<16x256xbf16>
    %c96 = arith.constant 96 : index
    %c0_50 = arith.constant 0 : index
    %95 = vector.load %arg11[%c96, %c0_50] : memref<144x256xbf16, #tpu.memory_space<vmem>>, vector<16x256xbf16>
    tpu.vector_store %arg11[%c96, %c0_50], %94 {strides = array<i32>} : memref<144x256xbf16, #tpu.memory_space<vmem>>, vector<16x256xbf16>,
    %c0_51 = arith.constant 0 : index
    %c66 = arith.constant 66 : index
    %96 = vector.load %arg10[%c0_51, %c66] : memref<16x324xf32, #tpu.memory_space<vmem>>, vector<16x256xf32>
    %97 = arith.truncf %96 : vector<16x256xf32> to vector<16x256xbf16>
    %c112 = arith.constant 112 : index
    %c0_52 = arith.constant 0 : index
    %98 = vector.load %arg11[%c112, %c0_52] : memref<144x256xbf16, #tpu.memory_space<vmem>>, vector<16x256xbf16>
    tpu.vector_store %arg11[%c112, %c0_52], %97 {strides = array<i32>} : memref<144x256xbf16, #tpu.memory_space<vmem>>, vector<16x256xbf16>,
    %c0_53 = arith.constant 0 : index
    %c68 = arith.constant 68 : index
    %99 = vector.load %arg10[%c0_53, %c68] : memref<16x324xf32, #tpu.memory_space<vmem>>, vector<16x256xf32>
    %cst_54 = arith.constant 0.000000e+00 : f32
    %100 = vector.shape_cast %5 : vector<1x256xi1> to vector<1x256xi1>
    %101 = vector.broadcast %100 : vector<1x256xi1> to vector<16x256xi1>
    %102 = vector.broadcast %cst_54 : f32 to vector<16x256xf32>
    %103 = arith.select %101, %99, %102 : vector<16x256xi1>, vector<16x256xf32>
    %104 = arith.truncf %103 : vector<16x256xf32> to vector<16x256xbf16>
    %c128 = arith.constant 128 : index
    %c0_55 = arith.constant 0 : index
    %105 = vector.load %arg11[%c128, %c0_55] : memref<144x256xbf16, #tpu.memory_space<vmem>>, vector<16x256xbf16>
    tpu.vector_store %arg11[%c128, %c0_55], %104 {strides = array<i32>} : memref<144x256xbf16, #tpu.memory_space<vmem>>, vector<16x256xbf16>,
    %c0_56 = arith.constant 0 : index
    %c0_57 = arith.constant 0 : index
    %106 = vector.load %arg3[%c0_56, %c0_57] : memref<4x144xbf16, #tpu.memory_space<vmem>>, vector<4x144xbf16>
    %c0_58 = arith.constant 0 : index
    %c0_59 = arith.constant 0 : index
    %107 = vector.load %arg11[%c0_58, %c0_59] : memref<144x256xbf16, #tpu.memory_space<vmem>>, vector<144x256xbf16>
    %cst_60 = arith.constant dense<0.000000e+00> : vector<4x256xf32>
    %108 = tpu.matmul %106, %107, %cst_60 {dimension_numbers = #tpu.dot_dimension_numbers<[1], [0], [0], [1], [0, 0, 1, 1], [], []>} : vector<4x144xbf16>, vector<144x256xbf16>, vector<4x256xf32> -> vector<4x256xf32>
    %c0_61 = arith.constant 0 : index
    %c0_62 = arith.constant 0 : index
    %109 = vector.load %arg4[%c0_61, %c0_62] : memref<4x1xf32, #tpu.memory_space<vmem>>, vector<4x1xf32>
    %110 = vector.broadcast %109 : vector<4x1xf32> to vector<4x256xf32>
    %111 = arith.addf %108, %110 : vector<4x256xf32>
    %cst_63 = arith.constant 0.000000e+00 : f32
    %112 = vector.broadcast %cst_63 : f32 to vector<4x256xf32>
    %113 = arith.cmpf ogt, %111, %112 : vector<4x256xf32>
    %cst_64 = arith.constant 1.000000e-01 : f32
    %114 = vector.broadcast %cst_64 : f32 to vector<4x256xf32>
    %115 = arith.mulf %114, %111 : vector<4x256xf32>
    %116 = arith.select %113, %111, %115 : vector<4x256xi1>, vector<4x256xf32>
    %c0_65 = arith.constant 0 : index
    %c34_66 = arith.constant 34 : index
    %117 = vector.load %arg10[%c0_65, %c34_66] : memref<16x324xf32, #tpu.memory_space<vmem>>, vector<4x256xf32>
    tpu.vector_store %arg10[%c0_65, %c34_66], %116 {strides = array<i32>} : memref<16x324xf32, #tpu.memory_space<vmem>>, vector<4x256xf32>,
    %c0_67 = arith.constant 0 : index
    %c0_68 = arith.constant 0 : index
    %118 = vector.load %arg10[%c0_67, %c0_68] : memref<16x324xf32, #tpu.memory_space<vmem>>, vector<4x256xf32>
    %cst_69 = arith.constant 0.000000e+00 : f32
    %119 = vector.shape_cast %3 : vector<1x256xi1> to vector<1x256xi1>
    %120 = vector.broadcast %119 : vector<1x256xi1> to vector<4x256xi1>
    %121 = vector.broadcast %cst_69 : f32 to vector<4x256xf32>
    %122 = arith.select %120, %118, %121 : vector<4x256xi1>, vector<4x256xf32>
    %123 = arith.truncf %122 : vector<4x256xf32> to vector<4x256xbf16>
    %c0_70 = arith.constant 0 : index
    %c0_71 = arith.constant 0 : index
    %124 = vector.load %arg11[%c0_70, %c0_71] : memref<144x256xbf16, #tpu.memory_space<vmem>>, vector<4x256xbf16>
    tpu.vector_store %arg11[%c0_70, %c0_71], %123 {strides = array<i32>} : memref<144x256xbf16, #tpu.memory_space<vmem>>, vector<4x256xbf16>,
    %c0_72 = arith.constant 0 : index
    %c2_73 = arith.constant 2 : index
    %125 = vector.load %arg10[%c0_72, %c2_73] : memref<16x324xf32, #tpu.memory_space<vmem>>, vector<4x256xf32>
    %126 = arith.truncf %125 : vector<4x256xf32> to vector<4x256xbf16>
    %c4_74 = arith.constant 4 : index
    %c0_75 = arith.constant 0 : index
    %127 = vector.load %arg11[%c4_74, %c0_75] : memref<144x256xbf16, #tpu.memory_space<vmem>>, vector<4x256xbf16>
    tpu.vector_store %arg11[%c4_74, %c0_75], %126 {strides = array<i32>} : memref<144x256xbf16, #tpu.memory_space<vmem>>, vector<4x256xbf16>,
    %c0_76 = arith.constant 0 : index
    %c4_77 = arith.constant 4 : index
    %128 = vector.load %arg10[%c0_76, %c4_77] : memref<16x324xf32, #tpu.memory_space<vmem>>, vector<4x256xf32>
    %cst_78 = arith.constant 0.000000e+00 : f32
    %129 = vector.shape_cast %5 : vector<1x256xi1> to vector<1x256xi1>
    %130 = vector.broadcast %129 : vector<1x256xi1> to vector<4x256xi1>
    %131 = vector.broadcast %cst_78 : f32 to vector<4x256xf32>
    %132 = arith.select %130, %128, %131 : vector<4x256xi1>, vector<4x256xf32>
    %133 = arith.truncf %132 : vector<4x256xf32> to vector<4x256xbf16>
    %c8_79 = arith.constant 8 : index
    %c0_80 = arith.constant 0 : index
    %134 = vector.load %arg11[%c8_79, %c0_80] : memref<144x256xbf16, #tpu.memory_space<vmem>>, vector<4x256xbf16>
    tpu.vector_store %arg11[%c8_79, %c0_80], %133 {strides = array<i32>} : memref<144x256xbf16, #tpu.memory_space<vmem>>, vector<4x256xbf16>,
    %c0_81 = arith.constant 0 : index
    %c32_82 = arith.constant 32 : index
    %135 = vector.load %arg10[%c0_81, %c32_82] : memref<16x324xf32, #tpu.memory_space<vmem>>, vector<4x256xf32>
    %cst_83 = arith.constant 0.000000e+00 : f32
    %136 = vector.shape_cast %3 : vector<1x256xi1> to vector<1x256xi1>
    %137 = vector.broadcast %136 : vector<1x256xi1> to vector<4x256xi1>
    %138 = vector.broadcast %cst_83 : f32 to vector<4x256xf32>
    %139 = arith.select %137, %135, %138 : vector<4x256xi1>, vector<4x256xf32>
    %140 = arith.truncf %139 : vector<4x256xf32> to vector<4x256xbf16>
    %c12_84 = arith.constant 12 : index
    %c0_85 = arith.constant 0 : index
    %141 = vector.load %arg11[%c12_84, %c0_85] : memref<144x256xbf16, #tpu.memory_space<vmem>>, vector<4x256xbf16>
    tpu.vector_store %arg11[%c12_84, %c0_85], %140 {strides = array<i32>} : memref<144x256xbf16, #tpu.memory_space<vmem>>, vector<4x256xbf16>,
    %c0_86 = arith.constant 0 : index
    %c34_87 = arith.constant 34 : index
    %142 = vector.load %arg10[%c0_86, %c34_87] : memref<16x324xf32, #tpu.memory_space<vmem>>, vector<4x256xf32>
    %143 = arith.truncf %142 : vector<4x256xf32> to vector<4x256xbf16>
    %c16_88 = arith.constant 16 : index
    %c0_89 = arith.constant 0 : index
    %144 = vector.load %arg11[%c16_88, %c0_89] : memref<144x256xbf16, #tpu.memory_space<vmem>>, vector<4x256xbf16>
    tpu.vector_store %arg11[%c16_88, %c0_89], %143 {strides = array<i32>} : memref<144x256xbf16, #tpu.memory_space<vmem>>, vector<4x256xbf16>,
    %c0_90 = arith.constant 0 : index
    %c36_91 = arith.constant 36 : index
    %145 = vector.load %arg10[%c0_90, %c36_91] : memref<16x324xf32, #tpu.memory_space<vmem>>, vector<4x256xf32>
    %cst_92 = arith.constant 0.000000e+00 : f32
    %146 = vector.shape_cast %5 : vector<1x256xi1> to vector<1x256xi1>
    %147 = vector.broadcast %146 : vector<1x256xi1> to vector<4x256xi1>
    %148 = vector.broadcast %cst_92 : f32 to vector<4x256xf32>
    %149 = arith.select %147, %145, %148 : vector<4x256xi1>, vector<4x256xf32>
    %150 = arith.truncf %149 : vector<4x256xf32> to vector<4x256xbf16>
    %c20 = arith.constant 20 : index
    %c0_93 = arith.constant 0 : index
    %151 = vector.load %arg11[%c20, %c0_93] : memref<144x256xbf16, #tpu.memory_space<vmem>>, vector<4x256xbf16>
    tpu.vector_store %arg11[%c20, %c0_93], %150 {strides = array<i32>} : memref<144x256xbf16, #tpu.memory_space<vmem>>, vector<4x256xbf16>,
    %c0_94 = arith.constant 0 : index
    %c64_95 = arith.constant 64 : index
    %152 = vector.load %arg10[%c0_94, %c64_95] : memref<16x324xf32, #tpu.memory_space<vmem>>, vector<4x256xf32>
    %cst_96 = arith.constant 0.000000e+00 : f32
    %153 = vector.shape_cast %3 : vector<1x256xi1> to vector<1x256xi1>
    %154 = vector.broadcast %153 : vector<1x256xi1> to vector<4x256xi1>
    %155 = vector.broadcast %cst_96 : f32 to vector<4x256xf32>
    %156 = arith.select %154, %152, %155 : vector<4x256xi1>, vector<4x256xf32>
    %157 = arith.truncf %156 : vector<4x256xf32> to vector<4x256xbf16>
    %c24 = arith.constant 24 : index
    %c0_97 = arith.constant 0 : index
    %158 = vector.load %arg11[%c24, %c0_97] : memref<144x256xbf16, #tpu.memory_space<vmem>>, vector<4x256xbf16>
    tpu.vector_store %arg11[%c24, %c0_97], %157 {strides = array<i32>} : memref<144x256xbf16, #tpu.memory_space<vmem>>, vector<4x256xbf16>,
    %c0_98 = arith.constant 0 : index
    %c66_99 = arith.constant 66 : index
    %159 = vector.load %arg10[%c0_98, %c66_99] : memref<16x324xf32, #tpu.memory_space<vmem>>, vector<4x256xf32>
    %160 = arith.truncf %159 : vector<4x256xf32> to vector<4x256xbf16>
    %c28 = arith.constant 28 : index
    %c0_100 = arith.constant 0 : index
    %161 = vector.load %arg11[%c28, %c0_100] : memref<144x256xbf16, #tpu.memory_space<vmem>>, vector<4x256xbf16>
    tpu.vector_store %arg11[%c28, %c0_100], %160 {strides = array<i32>} : memref<144x256xbf16, #tpu.memory_space<vmem>>, vector<4x256xbf16>,
    %c0_101 = arith.constant 0 : index
    %c68_102 = arith.constant 68 : index
    %162 = vector.load %arg10[%c0_101, %c68_102] : memref<16x324xf32, #tpu.memory_space<vmem>>, vector<4x256xf32>
    %cst_103 = arith.constant 0.000000e+00 : f32
    %163 = vector.shape_cast %5 : vector<1x256xi1> to vector<1x256xi1>
    %164 = vector.broadcast %163 : vector<1x256xi1> to vector<4x256xi1>
    %165 = vector.broadcast %cst_103 : f32 to vector<4x256xf32>
    %166 = arith.select %164, %162, %165 : vector<4x256xi1>, vector<4x256xf32>
    %167 = arith.truncf %166 : vector<4x256xf32> to vector<4x256xbf16>
    %c32_104 = arith.constant 32 : index
    %c0_105 = arith.constant 0 : index
    %168 = vector.load %arg11[%c32_104, %c0_105] : memref<144x256xbf16, #tpu.memory_space<vmem>>, vector<4x256xbf16>
    tpu.vector_store %arg11[%c32_104, %c0_105], %167 {strides = array<i32>} : memref<144x256xbf16, #tpu.memory_space<vmem>>, vector<4x256xbf16>,
    %c0_106 = arith.constant 0 : index
    %c0_107 = arith.constant 0 : index
    %169 = vector.load %arg5[%c0_106, %c0_107] : memref<4x36xbf16, #tpu.memory_space<vmem>>, vector<4x36xbf16>
    %c0_108 = arith.constant 0 : index
    %c0_109 = arith.constant 0 : index
    %170 = vector.load %arg11[%c0_108, %c0_109] : memref<144x256xbf16, #tpu.memory_space<vmem>>, vector<36x256xbf16>
    %cst_110 = arith.constant dense<0.000000e+00> : vector<4x256xf32>
    %171 = tpu.matmul %169, %170, %cst_110 {dimension_numbers = #tpu.dot_dimension_numbers<[1], [0], [0], [1], [0, 0, 1, 1], [], []>} : vector<4x36xbf16>, vector<36x256xbf16>, vector<4x256xf32> -> vector<4x256xf32>
    %c0_111 = arith.constant 0 : index
    %c0_112 = arith.constant 0 : index
    %172 = vector.load %arg6[%c0_111, %c0_112] : memref<4x1xf32, #tpu.memory_space<vmem>>, vector<4x1xf32>
    %173 = vector.broadcast %172 : vector<4x1xf32> to vector<4x256xf32>
    %174 = arith.addf %171, %173 : vector<4x256xf32>
    %cst_113 = arith.constant 0.000000e+00 : f32
    %175 = vector.broadcast %cst_113 : f32 to vector<4x256xf32>
    %176 = arith.cmpf ogt, %174, %175 : vector<4x256xf32>
    %cst_114 = arith.constant 1.000000e-01 : f32
    %177 = vector.broadcast %cst_114 : f32 to vector<4x256xf32>
    %178 = arith.mulf %177, %174 : vector<4x256xf32>
    %179 = arith.select %176, %174, %178 : vector<4x256xi1>, vector<4x256xf32>
    %c0_115 = arith.constant 0 : index
    %c34_116 = arith.constant 34 : index
    %180 = vector.load %arg10[%c0_115, %c34_116] : memref<16x324xf32, #tpu.memory_space<vmem>>, vector<4x256xf32>
    tpu.vector_store %arg10[%c0_115, %c34_116], %179 {strides = array<i32>} : memref<16x324xf32, #tpu.memory_space<vmem>>, vector<4x256xf32>,
    %c0_117 = arith.constant 0 : index
    %c0_118 = arith.constant 0 : index
    %181 = vector.load %arg10[%c0_117, %c0_118] : memref<16x324xf32, #tpu.memory_space<vmem>>, vector<4x256xf32>
    %cst_119 = arith.constant 0.000000e+00 : f32
    %182 = vector.shape_cast %3 : vector<1x256xi1> to vector<1x256xi1>
    %183 = vector.broadcast %182 : vector<1x256xi1> to vector<4x256xi1>
    %184 = vector.broadcast %cst_119 : f32 to vector<4x256xf32>
    %185 = arith.select %183, %181, %184 : vector<4x256xi1>, vector<4x256xf32>
    %186 = arith.truncf %185 : vector<4x256xf32> to vector<4x256xbf16>
    %c0_120 = arith.constant 0 : index
    %c0_121 = arith.constant 0 : index
    %187 = vector.load %arg11[%c0_120, %c0_121] : memref<144x256xbf16, #tpu.memory_space<vmem>>, vector<4x256xbf16>
    tpu.vector_store %arg11[%c0_120, %c0_121], %186 {strides = array<i32>} : memref<144x256xbf16, #tpu.memory_space<vmem>>, vector<4x256xbf16>,
    %c0_122 = arith.constant 0 : index
    %c2_123 = arith.constant 2 : index
    %188 = vector.load %arg10[%c0_122, %c2_123] : memref<16x324xf32, #tpu.memory_space<vmem>>, vector<4x256xf32>
    %189 = arith.truncf %188 : vector<4x256xf32> to vector<4x256xbf16>
    %c4_124 = arith.constant 4 : index
    %c0_125 = arith.constant 0 : index
    %190 = vector.load %arg11[%c4_124, %c0_125] : memref<144x256xbf16, #tpu.memory_space<vmem>>, vector<4x256xbf16>
    tpu.vector_store %arg11[%c4_124, %c0_125], %189 {strides = array<i32>} : memref<144x256xbf16, #tpu.memory_space<vmem>>, vector<4x256xbf16>,
    %c0_126 = arith.constant 0 : index
    %c4_127 = arith.constant 4 : index
    %191 = vector.load %arg10[%c0_126, %c4_127] : memref<16x324xf32, #tpu.memory_space<vmem>>, vector<4x256xf32>
    %cst_128 = arith.constant 0.000000e+00 : f32
    %192 = vector.shape_cast %5 : vector<1x256xi1> to vector<1x256xi1>
    %193 = vector.broadcast %192 : vector<1x256xi1> to vector<4x256xi1>
    %194 = vector.broadcast %cst_128 : f32 to vector<4x256xf32>
    %195 = arith.select %193, %191, %194 : vector<4x256xi1>, vector<4x256xf32>
    %196 = arith.truncf %195 : vector<4x256xf32> to vector<4x256xbf16>
    %c8_129 = arith.constant 8 : index
    %c0_130 = arith.constant 0 : index
    %197 = vector.load %arg11[%c8_129, %c0_130] : memref<144x256xbf16, #tpu.memory_space<vmem>>, vector<4x256xbf16>
    tpu.vector_store %arg11[%c8_129, %c0_130], %196 {strides = array<i32>} : memref<144x256xbf16, #tpu.memory_space<vmem>>, vector<4x256xbf16>,
    %c0_131 = arith.constant 0 : index
    %c32_132 = arith.constant 32 : index
    %198 = vector.load %arg10[%c0_131, %c32_132] : memref<16x324xf32, #tpu.memory_space<vmem>>, vector<4x256xf32>
    %cst_133 = arith.constant 0.000000e+00 : f32
    %199 = vector.shape_cast %3 : vector<1x256xi1> to vector<1x256xi1>
    %200 = vector.broadcast %199 : vector<1x256xi1> to vector<4x256xi1>
    %201 = vector.broadcast %cst_133 : f32 to vector<4x256xf32>
    %202 = arith.select %200, %198, %201 : vector<4x256xi1>, vector<4x256xf32>
    %203 = arith.truncf %202 : vector<4x256xf32> to vector<4x256xbf16>
    %c12_134 = arith.constant 12 : index
    %c0_135 = arith.constant 0 : index
    %204 = vector.load %arg11[%c12_134, %c0_135] : memref<144x256xbf16, #tpu.memory_space<vmem>>, vector<4x256xbf16>
    tpu.vector_store %arg11[%c12_134, %c0_135], %203 {strides = array<i32>} : memref<144x256xbf16, #tpu.memory_space<vmem>>, vector<4x256xbf16>,
    %c0_136 = arith.constant 0 : index
    %c34_137 = arith.constant 34 : index
    %205 = vector.load %arg10[%c0_136, %c34_137] : memref<16x324xf32, #tpu.memory_space<vmem>>, vector<4x256xf32>
    %206 = arith.truncf %205 : vector<4x256xf32> to vector<4x256xbf16>
    %c16_138 = arith.constant 16 : index
    %c0_139 = arith.constant 0 : index
    %207 = vector.load %arg11[%c16_138, %c0_139] : memref<144x256xbf16, #tpu.memory_space<vmem>>, vector<4x256xbf16>
    tpu.vector_store %arg11[%c16_138, %c0_139], %206 {strides = array<i32>} : memref<144x256xbf16, #tpu.memory_space<vmem>>, vector<4x256xbf16>,
    %c0_140 = arith.constant 0 : index
    %c36_141 = arith.constant 36 : index
    %208 = vector.load %arg10[%c0_140, %c36_141] : memref<16x324xf32, #tpu.memory_space<vmem>>, vector<4x256xf32>
    %cst_142 = arith.constant 0.000000e+00 : f32
    %209 = vector.shape_cast %5 : vector<1x256xi1> to vector<1x256xi1>
    %210 = vector.broadcast %209 : vector<1x256xi1> to vector<4x256xi1>
    %211 = vector.broadcast %cst_142 : f32 to vector<4x256xf32>
    %212 = arith.select %210, %208, %211 : vector<4x256xi1>, vector<4x256xf32>
    %213 = arith.truncf %212 : vector<4x256xf32> to vector<4x256xbf16>
    %c20_143 = arith.constant 20 : index
    %c0_144 = arith.constant 0 : index
    %214 = vector.load %arg11[%c20_143, %c0_144] : memref<144x256xbf16, #tpu.memory_space<vmem>>, vector<4x256xbf16>
    tpu.vector_store %arg11[%c20_143, %c0_144], %213 {strides = array<i32>} : memref<144x256xbf16, #tpu.memory_space<vmem>>, vector<4x256xbf16>,
    %c0_145 = arith.constant 0 : index
    %c64_146 = arith.constant 64 : index
    %215 = vector.load %arg10[%c0_145, %c64_146] : memref<16x324xf32, #tpu.memory_space<vmem>>, vector<4x256xf32>
    %cst_147 = arith.constant 0.000000e+00 : f32
    %216 = vector.shape_cast %3 : vector<1x256xi1> to vector<1x256xi1>
    %217 = vector.broadcast %216 : vector<1x256xi1> to vector<4x256xi1>
    %218 = vector.broadcast %cst_147 : f32 to vector<4x256xf32>
    %219 = arith.select %217, %215, %218 : vector<4x256xi1>, vector<4x256xf32>
    %220 = arith.truncf %219 : vector<4x256xf32> to vector<4x256xbf16>
    %c24_148 = arith.constant 24 : index
    %c0_149 = arith.constant 0 : index
    %221 = vector.load %arg11[%c24_148, %c0_149] : memref<144x256xbf16, #tpu.memory_space<vmem>>, vector<4x256xbf16>
    tpu.vector_store %arg11[%c24_148, %c0_149], %220 {strides = array<i32>} : memref<144x256xbf16, #tpu.memory_space<vmem>>, vector<4x256xbf16>,
    %c0_150 = arith.constant 0 : index
    %c66_151 = arith.constant 66 : index
    %222 = vector.load %arg10[%c0_150, %c66_151] : memref<16x324xf32, #tpu.memory_space<vmem>>, vector<4x256xf32>
    %223 = arith.truncf %222 : vector<4x256xf32> to vector<4x256xbf16>
    %c28_152 = arith.constant 28 : index
    %c0_153 = arith.constant 0 : index
    %224 = vector.load %arg11[%c28_152, %c0_153] : memref<144x256xbf16, #tpu.memory_space<vmem>>, vector<4x256xbf16>
    tpu.vector_store %arg11[%c28_152, %c0_153], %223 {strides = array<i32>} : memref<144x256xbf16, #tpu.memory_space<vmem>>, vector<4x256xbf16>,
    %c0_154 = arith.constant 0 : index
    %c68_155 = arith.constant 68 : index
    %225 = vector.load %arg10[%c0_154, %c68_155] : memref<16x324xf32, #tpu.memory_space<vmem>>, vector<4x256xf32>
    %cst_156 = arith.constant 0.000000e+00 : f32
    %226 = vector.shape_cast %5 : vector<1x256xi1> to vector<1x256xi1>
    %227 = vector.broadcast %226 : vector<1x256xi1> to vector<4x256xi1>
    %228 = vector.broadcast %cst_156 : f32 to vector<4x256xf32>
    %229 = arith.select %227, %225, %228 : vector<4x256xi1>, vector<4x256xf32>
    %230 = arith.truncf %229 : vector<4x256xf32> to vector<4x256xbf16>
    %c32_157 = arith.constant 32 : index
    %c0_158 = arith.constant 0 : index
    %231 = vector.load %arg11[%c32_157, %c0_158] : memref<144x256xbf16, #tpu.memory_space<vmem>>, vector<4x256xbf16>
    tpu.vector_store %arg11[%c32_157, %c0_158], %230 {strides = array<i32>} : memref<144x256xbf16, #tpu.memory_space<vmem>>, vector<4x256xbf16>,
    %c0_159 = arith.constant 0 : index
    %c0_160 = arith.constant 0 : index
    %232 = vector.load %arg7[%c0_159, %c0_160] : memref<4x36xbf16, #tpu.memory_space<vmem>>, vector<4x36xbf16>
    %c0_161 = arith.constant 0 : index
    %c0_162 = arith.constant 0 : index
    %233 = vector.load %arg11[%c0_161, %c0_162] : memref<144x256xbf16, #tpu.memory_space<vmem>>, vector<36x256xbf16>
    %cst_163 = arith.constant dense<0.000000e+00> : vector<4x256xf32>
    %234 = tpu.matmul %232, %233, %cst_163 {dimension_numbers = #tpu.dot_dimension_numbers<[1], [0], [0], [1], [0, 0, 1, 1], [], []>} : vector<4x36xbf16>, vector<36x256xbf16>, vector<4x256xf32> -> vector<4x256xf32>
    %c0_164 = arith.constant 0 : index
    %c0_165 = arith.constant 0 : index
    %235 = vector.load %arg8[%c0_164, %c0_165] : memref<4x1xf32, #tpu.memory_space<vmem>>, vector<4x1xf32>
    %236 = vector.broadcast %235 : vector<4x1xf32> to vector<4x256xf32>
    %237 = arith.addf %234, %236 : vector<4x256xf32>
    %cst_166 = arith.constant 0.000000e+00 : f32
    %cst_167 = arith.constant 1.000000e+00 : f32
    %238 = vector.broadcast %cst_166 : f32 to vector<4x256xf32>
    %239 = arith.maximumf %238, %237 : vector<4x256xf32>
    %240 = vector.broadcast %cst_167 : f32 to vector<4x256xf32>
    %241 = arith.minimumf %240, %239 : vector<4x256xf32>
    %c0_168 = arith.constant 0 : index
    %c34_169 = arith.constant 34 : index
    %242 = vector.load %arg10[%c0_168, %c34_169] : memref<16x324xf32, #tpu.memory_space<vmem>>, vector<4x256xf32>
    tpu.vector_store %arg10[%c0_168, %c34_169], %241 {strides = array<i32>} : memref<16x324xf32, #tpu.memory_space<vmem>>, vector<4x256xf32>,
    %c0_170 = arith.constant 0 : index
    %c2_171 = arith.constant 2 : index
    %243 = vector.load %arg10[%c0_170, %c2_171] : memref<16x324xf32, #tpu.memory_space<vmem>>, vector<4x256xf32>
    %c0_172 = arith.constant 0 : index
    %c18 = arith.constant 18 : index
    %244 = vector.load %arg10[%c0_172, %c18] : memref<16x324xf32, #tpu.memory_space<vmem>>, vector<4x256xf32>
    %c0_173 = arith.constant 0 : index
    %c50_174 = arith.constant 50 : index
    %245 = vector.load %arg10[%c0_173, %c50_174] : memref<16x324xf32, #tpu.memory_space<vmem>>, vector<4x256xf32>
    %cst_175 = arith.constant 7.500000e-01 : f32
    %246 = vector.broadcast %cst_175 : f32 to vector<4x256xf32>
    %247 = arith.mulf %246, %241 : vector<4x256xf32>
    %248 = vector.shape_cast %15 : vector<1x256xi1> to vector<1x256xi1>
    %249 = vector.broadcast %248 : vector<1x256xi1> to vector<4x256xi1>
    %250 = arith.select %249, %241, %243 : vector<4x256xi1>, vector<4x256xf32>
    %cst_176 = arith.constant 2.500000e-01 : f32
    %251 = vector.broadcast %cst_176 : f32 to vector<4x256xf32>
    %252 = arith.mulf %251, %250 : vector<4x256xf32>
    %253 = arith.addf %247, %252 : vector<4x256xf32>
    %cst_177 = arith.constant 7.500000e-01 : f32
    %254 = vector.broadcast %cst_177 : f32 to vector<4x256xf32>
    %255 = arith.mulf %254, %244 : vector<4x256xf32>
    %256 = vector.shape_cast %17 : vector<1x256xi1> to vector<1x256xi1>
    %257 = vector.broadcast %256 : vector<1x256xi1> to vector<4x256xi1>
    %258 = arith.select %257, %244, %245 : vector<4x256xi1>, vector<4x256xf32>
    %cst_178 = arith.constant 2.500000e-01 : f32
    %259 = vector.broadcast %cst_178 : f32 to vector<4x256xf32>
    %260 = arith.mulf %259, %258 : vector<4x256xf32>
    %261 = arith.addf %255, %260 : vector<4x256xf32>
    %262 = vector.shape_cast %9 : vector<1x256xi1> to vector<1x256xi1>
    %263 = vector.broadcast %262 : vector<1x256xi1> to vector<4x256xi1>
    %264 = arith.select %263, %253, %261 : vector<4x256xi1>, vector<4x256xf32>
    %c0_179 = arith.constant 0 : index
    %c34_180 = arith.constant 34 : index
    %265 = vector.load %arg10[%c0_179, %c34_180] : memref<16x324xf32, #tpu.memory_space<vmem>>, vector<4x256xf32>
    tpu.vector_store %arg10[%c0_179, %c34_180], %264 {strides = array<i32>} : memref<16x324xf32, #tpu.memory_space<vmem>>, vector<4x256xf32>,
    %c0_181 = arith.constant 0 : index
    %c32_182 = arith.constant 32 : index
    %266 = vector.load %arg10[%c0_181, %c32_182] : memref<16x324xf32, #tpu.memory_space<vmem>>, vector<4x256xf32>
    %c0_183 = arith.constant 0 : index
    %c33 = arith.constant 33 : index
    %267 = vector.load %arg10[%c0_183, %c33] : memref<16x324xf32, #tpu.memory_space<vmem>>, vector<4x256xf32>
    %c0_184 = arith.constant 0 : index
    %c35_185 = arith.constant 35 : index
    %268 = vector.load %arg10[%c0_184, %c35_185] : memref<16x324xf32, #tpu.memory_space<vmem>>, vector<4x256xf32>
    %cst_186 = arith.constant 7.500000e-01 : f32
    %269 = vector.broadcast %cst_186 : f32 to vector<4x256xf32>
    %270 = arith.mulf %269, %264 : vector<4x256xf32>
    %271 = vector.shape_cast %19 : vector<1x256xi1> to vector<1x256xi1>
    %272 = vector.broadcast %271 : vector<1x256xi1> to vector<4x256xi1>
    %273 = arith.select %272, %264, %266 : vector<4x256xi1>, vector<4x256xf32>
    %cst_187 = arith.constant 2.500000e-01 : f32
    %274 = vector.broadcast %cst_187 : f32 to vector<4x256xf32>
    %275 = arith.mulf %274, %273 : vector<4x256xf32>
    %276 = arith.addf %270, %275 : vector<4x256xf32>
    %cst_188 = arith.constant 7.500000e-01 : f32
    %277 = vector.broadcast %cst_188 : f32 to vector<4x256xf32>
    %278 = arith.mulf %277, %267 : vector<4x256xf32>
    %279 = vector.shape_cast %21 : vector<1x256xi1> to vector<1x256xi1>
    %280 = vector.broadcast %279 : vector<1x256xi1> to vector<4x256xi1>
    %281 = arith.select %280, %267, %268 : vector<4x256xi1>, vector<4x256xf32>
    %cst_189 = arith.constant 2.500000e-01 : f32
    %282 = vector.broadcast %cst_189 : f32 to vector<4x256xf32>
    %283 = arith.mulf %282, %281 : vector<4x256xf32>
    %284 = arith.addf %278, %283 : vector<4x256xf32>
    %285 = vector.shape_cast %13 : vector<1x256xi1> to vector<1x256xi1>
    %286 = vector.broadcast %285 : vector<1x256xi1> to vector<4x256xi1>
    %287 = arith.select %286, %276, %284 : vector<4x256xi1>, vector<4x256xf32>
    %c0_190 = arith.constant 0 : index
    %c0_191 = arith.constant 0 : index
    %c0_192 = arith.constant 0 : index
    %288 = vector.load %arg2[%c0_190, %c0_191, %c0_192] : memref<1x4x256xf32, #tpu.memory_space<vmem>>, vector<1x4x256xf32>
    %289 = vector.shape_cast %288 : vector<1x4x256xf32> to vector<4x256xf32>
    %290 = arith.mulf %287, %289 : vector<4x256xf32>
    %c0_193 = arith.constant 0 : index
    %c0_194 = arith.constant 0 : index
    %c0_195 = arith.constant 0 : index
    %291 = vector.load %arg9[%c0_193, %c0_194, %c0_195] : memref<1x4x256xf32, #tpu.memory_space<vmem>>, vector<1x4x256xf32>
    %292 = vector.shape_cast %291 : vector<1x4x256xf32> to vector<4x256xf32>
    %293 = vector.shape_cast %290 : vector<4x256xf32> to vector<1x4x256xf32>
    tpu.vector_store %arg9[%c0_193, %c0_194, %c0_195], %293 {strides = array<i32>} : memref<1x4x256xf32, #tpu.memory_space<vmem>>, vector<1x4x256xf32>,
    return
  }
  func.func @transform_0(%arg0: i32) -> (i32, i32) {
    %c0_i32 = arith.constant 0 : i32
    %c0_i32_0 = arith.constant 0 : i32
    %c0_i32_1 = arith.constant 0 : i32
    return %c0_i32, %c0_i32_0 : i32, i32
  }
  func.func @transform_1(%arg0: i32) -> (i32, i32, i32) {
    %c0_i32 = arith.constant 0 : i32
    %c0_i32_0 = arith.constant 0 : i32
    %c0_i32_1 = arith.constant 0 : i32
    return %arg0, %c0_i32, %c0_i32_0 : i32, i32, i32
  }
  func.func @transform_2(%arg0: i32) -> (i32, i32) {
    %c0_i32 = arith.constant 0 : i32
    %c0_i32_0 = arith.constant 0 : i32
    %c0_i32_1 = arith.constant 0 : i32
    return %c0_i32, %c0_i32_0 : i32, i32
  }
  func.func @transform_3(%arg0: i32) -> (i32, i32) {
    %c0_i32 = arith.constant 0 : i32
    %c0_i32_0 = arith.constant 0 : i32
    %c0_i32_1 = arith.constant 0 : i32
    return %c0_i32, %c0_i32_0 : i32, i32
  }
  func.func @transform_4(%arg0: i32) -> (i32, i32) {
    %c0_i32 = arith.constant 0 : i32
    %c0_i32_0 = arith.constant 0 : i32
    %c0_i32_1 = arith.constant 0 : i32
    return %c0_i32, %c0_i32_0 : i32, i32
  }
  func.func @transform_5(%arg0: i32) -> (i32, i32) {
    %c0_i32 = arith.constant 0 : i32
    %c0_i32_0 = arith.constant 0 : i32
    %c0_i32_1 = arith.constant 0 : i32
    return %c0_i32, %c0_i32_0 : i32, i32
  }
  func.func @transform_6(%arg0: i32) -> (i32, i32) {
    %c0_i32 = arith.constant 0 : i32
    %c0_i32_0 = arith.constant 0 : i32
    %c0_i32_1 = arith.constant 0 : i32
    return %c0_i32, %c0_i32_0 : i32, i32
  }
  func.func @transform_7(%arg0: i32) -> (i32, i32) {
    %c0_i32 = arith.constant 0 : i32
    %c0_i32_0 = arith.constant 0 : i32
    %c0_i32_1 = arith.constant 0 : i32
    return %c0_i32, %c0_i32_0 : i32, i32
  }
  func.func @transform_8(%arg0: i32) -> (i32, i32, i32) {
    %c0_i32 = arith.constant 0 : i32
    %c0_i32_0 = arith.constant 0 : i32
    %c0_i32_1 = arith.constant 0 : i32
    return %arg0, %c0_i32, %c0_i32_0 : i32, i32, i32
  }
}

</mosaic_0001>

<bundles_post_ra>
// kernel: mfa_forward.1
= control target key start
LH: loop header
LB: loop body
LE: loop exit
PB: predicated region body
PF: predicated region fallthrough
CT: control target
= control target key end

     0   :  { %s2264_s27 = smov 0   ;;  %s2768_s0 = inlined_call_operand.vmem [shape: s32[2,256], index: 0, kind: input, shape index: {}]   ;;  %s2769_s1 = inlined_call_operand.vmem [shape: f32[2,4,256], index: 1, kind: input, shape index: {}]   ;;  %s2770_s2 = inlined_call_operand.vmem [shape: bf16[4,144], index: 2, kind: input, shape index: {}]   ;;  %s2771_s3 = inlined_call_operand.vmem [shape: f32[4,1], index: 3, kind: input, shape index: {}]   ;;  %s2772_s4 = inlined_call_operand.vmem [shape: bf16[4,36], index: 4, kind: input, shape index: {}]   ;;  %s2773_s5 = inlined_call_operand.vmem [shape: f32[4,1], index: 5, kind: input, shape index: {}]   ;;  %s2774_s6 = inlined_call_operand.vmem [shape: bf16[4,36], index: 6, kind: input, shape index: {}]   ;;  %s2775_s7 = inlined_call_operand.vmem [shape: f32[4,1], index: 7, kind: input, shape index: {}]   ;;  %s2776_s8 = inlined_call_operand.vmem [shape: f32[2,4,256], index: 8, kind: output, shape index: {}]  }
   0x1 LB: > { %s1876_s28 = sadd.s32 4294967295, %s2193_s27   ;;  %p1880_p0 = scmp.ge.s32.totalorder %s2193_s27, 1  ;;  %s2193_s27 = sphi %s2264_s27, %s18_s27  }
   0x2   : > { %p262_p1 = scmp.lt.s32.totalorder %s2193_s27, 3 }
   0x4   : > { %p263_p2 = pnand %p1880_p0, %p262_p1 }
   0x5   : > { %p296_p3 = scmp.lt.s32.totalorder (!%p263_p2), %s1876_s28, 1  ;;  %s2196_s11 = smov (!%p263_p2), 34  }
   0x6   : > { %266 = sbr.rel (%p263_p2) target bundleno = 2641 (0xa51), region = 52  ;;  %s2197_s12 = smov (!%p263_p2), 35  }
   0x7   : > { %s2198_s13 = smov (!%p263_p2), 78   ;;  %s2199_s14 = smov (!%p263_p2), 93  }
   0x8   : > { %s2200_s15 = smov (!%p263_p2), 112   ;;  %s2201_s16 = smov (!%p263_p2), 77  }
   0x9   : > { %s2202_s17 = smov (!%p263_p2), 127   ;;  %s2203_s18 = smov (!%p263_p2), 113  }
   0xa   : > { %s2204_s19 = smov (!%p263_p2), 15   ;;  %s2205_s20 = smov (!%p263_p2), 50  }
   0xb   : > { %vm320_vm0 = vcmask 277504   ;;  %v2195_v0 = vmov 0.0   ;;  %s2807_s28 = smov (!%p296_p3, %s1876_s28), 1  ;;  %vm323_vm1 = vcmask 556304   ;;  %vm339_vm2 = vcmask 1043728   ;;  %s2207_s25 = smov 62  }
   0xc   : > { %321 = vst.msk [vmem:[#allocation2] sm:$0xff] %vm320_vm0, %v2195_v0  ;;  %s1998_s29 = sshll.u32 %s2807_s28, 3  ;;  %vm342_vm3 = vcmask 273408   ;;  %vm351_vm4 = vcmask 1043456   ;;  %vm2778_vm5 = vcmask 637952   ;;  %vm2777_vm6 = vcmask 760832  }
   0xd   : > { %322 = vst.msk [vmem:[#allocation2 + $0x18] sm:$0xff] %vm320_vm0, %v2195_v0  ;;  %s300_s10 = scalar_lea.vmem %s2769_s1, %s1998_s29  ;;  %vm382_vm7 = vcmask 629760   ;;  %vm393_vm8 = vcmask 916480   ;;  %vm441_vm9 = vcmask 1039360   ;;  %vm423_vm10 = vcmask 924672   ;;  %s2208_s26 = smov 96  }
   0xe   : > { %v2282_v1 = vld [vmem:[%s300_s10] sm:$0xff]  ;;  %324 = vst.msk [vmem:[#allocation2 + $0x10] sm:$0xff] %vm323_vm1, %v2195_v0  ;;  %vm457_vm11 = vcmask 408576   ;;  %vm409_vm12 = vcmask 285696   ;;  %vm471_vm13 = vcmask 121856   ;;  %vm522_vm14 = vcmask 277508  }
   0xf   : > { %328 = vst [vmem:[#allocation1] ss:$2 sm:$0xff] %v2282_v1  ;;  %vm519_vm15 = vcmask 1047828   ;;  %s2209_s30 = smov 64   ;;  %s2210_s9 = smov 94  }
  0x10   : > { %325 = vst.msk [vmem:[#allocation2 + $0x28] sm:$0xff] %vm323_vm1, %v2195_v0  ;;  %s2211_s10 = smov 92  }
  0x16   : > { %v329_v2 = vld.sshfl [vmem:[#allocation1] sm:$0xff pattern:$0x75316420]  ;;  %v330_v3 = vld.sshfl [vmem:[#allocation1 + $0x8] sm:$0xff pattern:$0x75316420] }
  0x17   : > { %331 = vrot.lane.b32.xlu0 %v329_v2, %s2196_s11  ;;  %402 = vst [vmem:[#allocation1] ss:$2 sm:$0xff] %v2282_v1 }
  0x1e   : > { %v403_v4 = vld.sshfl [vmem:[#allocation1] sm:$0xff pattern:$0x75316420]  ;;  %v404_v5 = vld.sshfl [vmem:[#allocation1 + $0x8] sm:$0xff pattern:$0x75316420] }
  0x1f   : > { %333 = vrot.lane.b32.xlu0 %v330_v3, %s2196_s11  ;;  %405 = vrot.lane.b32.xlu2 %v403_v4, %s2197_s12  ;;  %450 = vst [vmem:[#allocation1] ss:$2 sm:$0xff] %v2282_v1 }
  0x26   : > { %v452_v14 = vld.sshfl [vmem:[#allocation1 + $0x8] sm:$0xff pattern:$0x75316420]  ;;  %v451_v15 = vld.sshfl [vmem:[#allocation1] sm:$0xff pattern:$0x75316420] }
  0x27   : > { %407 = vrot.lane.b32.xlu0 %v404_v5, %s2197_s12  ;;  %s2212_s12 = smov 124  }
  0x79   : > { %v2326_v16 = vpop.permute.xlu2 %405 }
  0x89   : > { %v332_v6 = vpop.permute.xlu0 %331 }
  0x8a   : > { %340 = vst.msk [vmem:[#allocation2] sm:$0xf] %vm339_vm2, %v332_v6 }
  0x91   : > { %v334_v7 = vpop.permute.xlu0 %333  ;;  %v2303_v12 = vld [vmem:[#allocation2] sm:$0xf] }
  0x92   : > { %v335_v8 = vsel %vm320_vm0, %v332_v6, %v334_v7  ;;  %343 = vst.msk [vmem:[#allocation2 + $0x10] sm:$0xf] %vm342_vm3, %v334_v7 }
  0x93   : > { %341 = vst [vmem:[#allocation2 + $0x8] sm:$0xf] %v335_v8 }
  0x99   : > { %v2292_v9 = vld [vmem:[#allocation2 + $0x10] sm:$0xf]  ;;  %v2328_v17 = vpop.permute.xlu0 %407 }
  0x9a   : > { %v2294_v10 = vld [vmem:[#allocation2 + $0x8] sm:$0xf]  ;;  %355 = vrot.lane.b32.xlu1 %v2292_v9, %s2198_s13  ;;  %366 = vrot.lane.b32.xlu2 %v2292_v9, %s2199_s14 }
  0x9b   : > { %389 = vrot.lane.b32.xlu0 %v2294_v10, %s2200_s15  ;;  %v350_v11 = vrot.slane %v2294_v10, 4 }
  0x9d   : > { %v352_v13 = vsel %vm351_vm4, %v2303_v12, %v350_v11 }
  0xa2   : > { %377 = vrot.lane.b32.xlu1 %v2292_v9, %s2201_s16  ;;  %387 = vrot.lane.b32.xlu2 %v2303_v12, %s2200_s15 }
  0xa3   : > { %375 = vrot.lane.b32.xlu0 %v352_v13, %s2201_s16  ;;  %s2214_s16 = smov 60  }
  0xaa   : > { %391 = vrot.lane.b32.xlu1 %v2292_v9, %s2200_s15  ;;  %437 = vrot.lane.b32.xlu2 %v2294_v10, %s2202_s17 }
  0xab   : > { %439 = vrot.lane.b32.xlu0 %v2292_v9, %s2202_s17 }
  0xb2   : > { %435 = vrot.lane.b32.xlu1 %v2303_v12, %s2202_s17  ;;  %364 = vrot.lane.b32.xlu2 %v352_v13, %s2199_s14 }
  0xb3   : > { %421 = vrot.lane.b32.xlu0 %v2292_v9, %s2203_s18 }
  0xba   : > { %353 = vrot.lane.b32.xlu1 %v352_v13, %s2198_s13  ;;  %419 = vrot.lane.b32.xlu2 %v2294_v10, %s2203_s18 }
  0xbb   : > { %465 = vrot.lane.b32.xlu0 %v2303_v12, %s2204_s19 }
  0xc2   : > { %417 = vrot.lane.b32.xlu1 %v2303_v12, %s2203_s18  ;;  %455 = vrot.lane.b32.xlu2 %v452_v14, %s2205_s20  ;;  %s305_s18 = scalar_lea.vmem %s2776_s8, %s1998_s29 }
  0xca   : > { %469 = vrot.lane.b32.xlu2 %v2292_v9, %s2204_s19  ;;  %453 = vrot.lane.b32.xlu1 %v451_v15, %s2205_s20 }
  0xd2   : > { %467 = vrot.lane.b32.xlu1 %v2294_v10, %s2204_s19 }
  0xf4   : > { %v367_v18 = vpop.permute.xlu2 %366 }
  0xf5   : > { %v369_v39 = vrot.slane %v367_v18, 4 }
  0xfc   : > { %v388_v21 = vpop.permute.xlu2 %387 }
 0x104   : > { %v438_v24 = vpop.permute.xlu2 %437 }
 0x10c   : > { %v356_v19 = vpop.permute.xlu1 %355  ;;  %v365_v31 = vpop.permute.xlu2 %364 }
 0x10d   : > { %v390_v20 = vpop.permute.xlu0 %389  ;;  %v368_v35 = vrot.slane %v365_v31, 4  ;;  %v358_v40 = vrot.slane %v356_v19, 4 }
 0x10e   : > { %v394_v54 = vsel %vm393_vm8, %v388_v21, %v390_v20 }
 0x10f   : > { %v370_v42 = vsel %vm351_vm4, %v368_v35, %v369_v39  ;;  %v399_v58 = vadd.f32 %v394_v54, %v2303_v12 }
 0x110   : > { %v372_v48 = vsel %vm2777_vm6, %v365_v31, %v370_v42  ;;  %vm2780_vm6 = vcmask 1031168  }
 0x111   : > { %v414_v2 = vsub.f32 %v399_v58, %v2326_v16 }
 0x114   : > { %v378_v22 = vpop.permute.xlu1 %377  ;;  %v420_v45 = vpop.permute.xlu2 %419 }
 0x115   : > { %v376_v23 = vpop.permute.xlu0 %375  ;;  %v380_v36 = vrot.slane %v378_v22, 4 }
 0x116   : > { %v379_v37 = vrot.slane %v376_v23, 4 }
 0x118   : > { %v381_v43 = vsel %vm351_vm4, %v379_v37, %v380_v36 }
 0x119   : > { %v383_v49 = vsel %vm382_vm7, %v376_v23, %v381_v43 }
 0x11a   : > { %v483_v52 = vadd.f32 %v383_v49, %v2282_v1 }
 0x11c   : > { %v392_v25 = vpop.permute.xlu1 %391  ;;  %v456_v59 = vpop.permute.xlu2 %455 }
 0x11d   : > { %v440_v26 = vpop.permute.xlu0 %439  ;;  %v401_v27 = vadd.f32 %v392_v25, %v2292_v9  ;;  %v395_v4 = vsel %vm393_vm8, %v390_v20, %v392_v25  ;;  %v410_v20 = vsel %vm409_vm12, %v2326_v16, %v2328_v17  ;;  %vm2782_vm12 = vcmask 769024  }
 0x11e   : > { %v443_v5 = vsel %vm441_vm9, %v438_v24, %v440_v26  ;;  %v449_v8 = vadd.f32 %v440_v26, %v2292_v9  ;;  %v400_v18 = vadd.f32 %v395_v4, %v2294_v10 }
 0x11f   : > { %v416_v29 = vsub.f32 %v401_v27, %v2328_v17  ;;  %v448_v19 = vadd.f32 %v443_v5, %v2294_v10  ;;  %v890_v10 = vld [vmem:[%s2770_s2] sm:$0xf] }
 0x120   : > { %v464_v9 = vsub.f32 %v449_v8, %v456_v59 }
 0x124   : > { %v436_v28 = vpop.permute.xlu1 %435  ;;  %v470_v21 = vpop.permute.xlu2 %469 }
 0x125   : > { %v2332_v30 = vpop.permute.xlu0 %421  ;;  %v442_v57 = vsel %vm441_vm9, %v436_v28, %v438_v24  ;;  %v415_v28 = vsub.f32 %v400_v18, %v410_v20 }
 0x126   : > { %v431_v32 = vsub.f32 %v416_v29, %v2332_v30  ;;  %v447_v60 = vadd.f32 %v442_v57, %v2303_v12  ;;  %v425_v24 = vsel %vm423_vm10, %v420_v45, %v2332_v30 }
 0x128   : > { %v434_v33 = vmul.f32 0.5, %v431_v32  ;;  %v430_v32 = vsub.f32 %v415_v28, %v425_v24 }
 0x12a   : > { %v507_v34 = vrot.slane %v434_v33, 4  ;;  %v433_v30 = vmul.f32 0.5, %v430_v32 }
 0x12c   : > { %v354_v38 = vpop.permute.xlu1 %353  ;;  %512 = vrot.lane.b32.xlu1 %v507_v34, %s2202_s17  ;;  %v506_v36 = vrot.slane %v433_v30, 4 }
 0x12d   : > { %v357_v41 = vrot.slane %v354_v38, 4  ;;  %v466_v0 = vpop.permute.xlu0 %465 }
 0x12f   : > { %v359_v44 = vsel %vm351_vm4, %v357_v41, %v358_v40  ;;  %v2206_v41 = vmov 0  }
 0x130   : > { %v361_v46 = vsel %vm2778_vm5, %v354_v38, %v359_v44  ;;  %2133 = vset.pattern.permute.xlu1 %v2206_v41  ;;  %2159 = vset.pattern.permute.xlu2 %v2206_v41  ;;  %vm873_vm5 = vcmask 490496  }
 0x131   : > { %v363_v47 = vadd.f32 %v361_v46, %v2282_v1  ;;  %v484_v56 = vsub.f32 %v483_v52, %v361_v46  ;;  %2185 = vset.pattern.permute.xlu0 %v2206_v41 }
 0x133   : > { %v374_v50 = vadd.f32 %v372_v48, %v363_v47  ;;  %v485_v61 = vsub.f32 %v484_v56, %v372_v48 }
 0x134   : > { %v418_v51 = vpop.permute.xlu1 %417 }
 0x135   : > { %v385_v53 = vadd.f32 %v383_v49, %v374_v50  ;;  %v424_v3 = vsel %vm423_vm10, %v418_v51, %v420_v45  ;;  %v486_v6 = vmul.f32 0.5, %v485_v61  ;;  %v2389_v51 = vld [vmem:[%s2768_s0 + $0x1] ss:$2 sm:$0x3]  ;;  %vm680_vm10 = vcmask 785408  }
 0x136   : > { %v429_v13 = vsub.f32 %v414_v2, %v424_v3  ;;  %vm310_vm1 = vcmp.ge.s32.totalorder %v2389_v51, 2 }
 0x137   : > { %v386_v55 = vmul.f32 0.5, %v385_v53  ;;  %v561_v54 = vsel %vm310_vm1, 1, %v2206_v41 }
 0x138   : > { %v432_v25 = vmul.f32 0.5, %v429_v13  ;;  %v562_v56 = vperm.slane %v561_v54, 0 }
 0x139   : > { %488 = vst [vmem:[#allocation1] ss:$2 sm:$0xff] %v386_v55  ;;  %v563_v55 = vperm.slane %v561_v54, 1 }
 0x13a   : > { %v505_v34 = vrot.slane %v432_v25, 4 }
 0x13b   : > { %vm2395_vm7 = vcmp.eq.s32.totalorder %v563_v55, 1 }
 0x13c   : > { %v454_v62 = vpop.permute.xlu1 %453 }
 0x13d   : > { %v462_v63 = vsub.f32 %v447_v60, %v454_v62  ;;  %v458_v14 = vsel %vm457_vm11, %v454_v62, %v456_v59  ;;  %vm797_vm11 = vcmask 523264  }
 0x13e   : > { %v463_v22 = vsub.f32 %v448_v19, %v458_v14 }
 0x13f   : > { %v477_v7 = vsub.f32 %v462_v63, %v466_v0 }
 0x140   : > { %v490_v11 = vld.sshfl [vmem:[#allocation1 + $0x8] sm:$0xff pattern:$0x75316420]  ;;  %v489_v12 = vld.sshfl [vmem:[#allocation1] sm:$0xff pattern:$0x75316420] }
 0x141   : > { %493 = vrot.lane.b32.xlu1 %v490_v11, %s2196_s11  ;;  %543 = vst [vmem:[#allocation1 + $0x1] ss:$2 sm:$0xff] %v486_v6  ;;  %v480_v15 = vmul.f32 0.5, %v477_v7 }
 0x143   : > { %527 = vrot.lane.b32.xlu2 %v480_v15, %s2200_s15 }
 0x144   : > { %v468_v23 = vpop.permute.xlu1 %467 }
 0x145   : > { %v472_v26 = vsel %vm471_vm13, %v466_v0, %v468_v23  ;;  %v473_v27 = vsel %vm471_vm13, %v468_v23, %v470_v21  ;;  %vm311_vm13 = vcmp.lt.s32.totalorder %v2389_v51, 14 }
 0x146   : > { %v478_v29 = vsub.f32 %v463_v22, %v472_v26  ;;  %v479_v31 = vsub.f32 %v464_v9, %v473_v27 }
 0x148   : > { %v481_v33 = vmul.f32 0.5, %v478_v29  ;;  %v482_v16 = vmul.f32 0.5, %v479_v31  ;;  %v544_v17 = vld.sshfl [vmem:[#allocation1] sm:$0xff pattern:$0x75316420] }
 0x149   : > { %v545_v35 = vld.sshfl [vmem:[#allocation1 + $0x8] sm:$0xff pattern:$0x75316420] }
 0x14a   : > { %529 = vrot.lane.b32.xlu0 %v481_v33, %s2200_s15  ;;  %531 = vrot.lane.b32.xlu1 %v482_v16, %s2200_s15  ;;  %916 = vst [vmem:[#allocation1] ss:$4 sm:$0xff] %v890_v10  ;;  %s2213_s15 = smov 126  }
 0x14b   : > { %508 = vrot.lane.b32.xlu2 %v505_v34, %s2202_s17 }
 0x151   : > { %v2366_v37 = vld.sshfl [vmem:[#allocation1] sm:$0xff pattern:$0x73625140]  ;;  %v2368_v38 = vld.sshfl [vmem:[#allocation1 + $0x8] sm:$0xff pattern:$0x73625140] }
 0x152   : > { %510 = vrot.lane.b32.xlu0 %v506_v36, %s2202_s17  ;;  %1808 = vst [vmem:[#allocation1] ss:$2 sm:$0xff] %v2282_v1 }
 0x153   : > { %546 = vrot.lane.b32.xlu2 %v544_v17, %s2196_s11 }
 0x15a   : > { %491 = vrot.lane.b32.xlu0 %v489_v12, %s2196_s11 }
 0x162   : > { %548 = vrot.lane.b32.xlu0 %v545_v35, %s2196_s11 }
 0x19d   : > { %v528_v39 = vpop.permute.xlu2 %527 }
 0x19e   : > { %v513_v40 = vpop.permute.xlu1 %512 }
 0x19f   : > { %523 = vst.msk [vmem:[#allocation2 + $0x10] sm:$0xf0] %vm522_vm14, %v513_v40 }
 0x1a5   : > { %v509_v42 = vpop.permute.xlu2 %508 }
 0x1ad   : > { %v547_v1 = vpop.permute.xlu2 %546 }
 0x1ae   : > { %554 = vst.msk [vmem:[#allocation2 + $0x18] sm:$0xf0] %vm519_vm15, %v547_v1 }
 0x1b3   : > { %v494_v43 = vpop.permute.xlu1 %493 }
 0x1b4   : > { %501 = vst.msk [vmem:[#allocation2 + $0x10] sm:$0xf] %vm342_vm3, %v494_v43 }
 0x1bb   : > { %v699_v6 = vld [vmem:[#allocation2 + $0x10] sm:$0xff] }
 0x1bc   : > { %v530_v44 = vpop.permute.xlu0 %529  ;;  %v532_v45 = vpop.permute.xlu1 %531  ;;  %v704_v12 = vpack.c.bf16 %v699_v6, %v699_v6 }
 0x1bd   : > { %v533_v46 = vsel %vm393_vm8, %v528_v39, %v530_v44  ;;  %v534_v47 = vsel %vm393_vm8, %v530_v44, %v532_v45  ;;  %540 = vst.msk [vmem:[#allocation2 + $0x28] sm:$0xf] %vm342_vm3, %v532_v45  ;;  %vm2399_vm8 = vcmp.eq.s32.totalorder %v562_v56, 1  ;;  %v616_v56 = vsel %vm311_vm13, 1, %v2206_v41 }
 0x1be   : > { %538 = vst.msk [vmem:[#allocation2 + $0x18] sm:$0xf] %vm339_vm2, %v533_v46  ;;  %vm2779_vm13 = vcmask 1014784  }
 0x1bf   : > { %539 = vst [vmem:[#allocation2 + $0x20] sm:$0xf] %v534_v47 }
 0x1c4   : > { %v511_v48 = vpop.permute.xlu0 %510 }
 0x1c5   : > { %v514_v49 = vsel %vm441_vm9, %v509_v42, %v511_v48  ;;  %v515_v50 = vsel %vm441_vm9, %v511_v48, %v513_v40  ;;  %v559_v5 = vld [vmem:[#allocation2 + $0x18] sm:$0xff]  ;;  %vm2781_vm9 = vcmask 506880  }
 0x1c6   : > { %520 = vst.msk [vmem:[#allocation2] sm:$0xf0] %vm519_vm15, %v514_v49  ;;  %v568_v8 = vsel %vm2399_vm8, %v559_v5, 0.0  ;;  %v2083_v13 = vpack.i.bf16 %v559_v5, %v699_v6 }
 0x1c7   : > { %521 = vst [vmem:[#allocation2 + $0x8] sm:$0xf0] %v515_v50 }
 0x1cc   : > { %v492_v52 = vpop.permute.xlu0 %491 }
 0x1cd   : > { %v495_v53 = vsel %vm320_vm0, %v492_v52, %v494_v43  ;;  %499 = vst.msk [vmem:[#allocation2] sm:$0xf] %vm339_vm2, %v492_v52 }
 0x1ce   : > { %500 = vst [vmem:[#allocation2 + $0x8] sm:$0xf] %v495_v53 }
 0x1d4   : > { %v557_v58 = vld [vmem:[#allocation2] sm:$0xff]  ;;  %v549_v60 = vpop.permute.xlu0 %548 }
 0x1d5   : > { %v558_v61 = vld [vmem:[#allocation2 + $0x8] sm:$0xff]  ;;  %v550_v62 = vsel %vm320_vm0, %v547_v1, %v549_v60  ;;  %556 = vst.msk [vmem:[#allocation2 + $0x28] sm:$0xf0] %vm522_vm14, %v549_v60  ;;  %v566_v63 = vsel %vm2399_vm8, %v557_v58, 0.0  ;;  %vm756_vm14 = vcmask 752640  }
 0x1d6   : > { %555 = vst [vmem:[#allocation2 + $0x20] sm:$0xf0] %v550_v62  ;;  %v820_v0 = vpack.c.bf16 %v558_v61, %v557_v58  ;;  %v2068_v2 = vpack.i.bf16 %v558_v61, %v557_v58  ;;  %v567_v3 = vsel %vm2395_vm7, %v558_v61, 0.0 }
 0x1d7   : > { %v570_v4 = vpack.c.bf16 %v567_v3, %v566_v63  ;;  %v617_v3 = vperm.slane %v616_v56, 0 }
 0x1d8   : > { %828 = vrot.lane.b32.xlu1 %v820_v0, %s2207_s25  ;;  %2069 = vrot.lane.b32.xlu0 %v2068_v2, %s2208_s26 }
 0x1d9   : > { %2059 = vrot.lane.b32.xlu2 %v2068_v2, %s2209_s30  ;;  %572 = vst [vmem:[#allocation3] sm:$0xff] %v570_v4  ;;  %vm2476_vm15 = vcmp.eq.s32.totalorder %v617_v3, 1 }
 0x1dc   : > { %v778_v15 = vld [vmem:[#allocation2 + $0x28] sm:$0xff] }
 0x1dd   : > { %v560_v7 = vld [vmem:[#allocation2 + $0x20] sm:$0xff]  ;;  %v823_v20 = vpack.c.bf16 %v778_v15, %v778_v15 }
 0x1de   : > { %v569_v11 = vsel %vm2395_vm7, %v560_v7, 0.0  ;;  %v2088_v18 = vpack.i.bf16 %v778_v15, %v560_v7  ;;  %v822_v19 = vpack.c.bf16 %v560_v7, %v559_v5 }
 0x1df   : > { %v571_v14 = vpack.c.bf16 %v569_v11, %v568_v8 }
 0x1e0   : > { %713 = vrot.lane.b32.xlu0 %v704_v12, %s2210_s9  ;;  %2084 = vrot.lane.b32.xlu1 %v2083_v13, %s2208_s26 }
 0x1e1   : > { %573 = vst [vmem:[#allocation3 + $0x8] sm:$0xff] %v571_v14  ;;  %2064 = vrot.lane.b32.xlu2 %v2068_v2, %s2211_s10 }
 0x1e8   : > { %2074 = vrot.lane.b32.xlu0 %v2083_v13, %s2209_s30  ;;  %2089 = vrot.lane.b32.xlu1 %v2088_v18, %s2209_s30 }
 0x1e9   : > { %830 = vrot.lane.b32.xlu2 %v704_v12, %s2207_s25 }
 0x1f0   : > { %2079 = vrot.lane.b32.xlu0 %v2083_v13, %s2211_s10  ;;  %2094 = vrot.lane.b32.xlu1 %v2088_v18, %s2211_s10 }
 0x1f1   : > { %711 = vrot.lane.b32.xlu2 %v820_v0, %s2210_s9 }
 0x1f8   : > { %832 = vrot.lane.b32.xlu0 %v822_v19, %s2207_s25  ;;  %834 = vrot.lane.b32.xlu1 %v823_v20, %s2207_s25 }
 0x1f9   : > { %2099 = vrot.lane.b32.xlu2 %v2088_v18, %s2208_s26 }
 0x200   : > { %2104 = vrot.lane.b32.xlu0 %v2068_v2, %s2212_s12  ;;  %715 = vrot.lane.b32.xlu1 %v822_v19, %s2210_s9 }
 0x201   : > { %717 = vrot.lane.b32.xlu2 %v823_v20, %s2210_s9 }
 0x208   : > { %588 = vrot.lane.b32.xlu0 %v820_v0, %s2213_s15  ;;  %2109 = vrot.lane.b32.xlu1 %v2083_v13, %s2212_s12 }
 0x209   : > { %2114 = vrot.lane.b32.xlu2 %v2088_v18, %s2212_s12 }
 0x210   : > { %594 = vrot.lane.b32.xlu0 %v823_v20, %s2213_s15  ;;  %590 = vrot.lane.b32.xlu1 %v704_v12, %s2213_s15 }
 0x211   : > { %592 = vrot.lane.b32.xlu2 %v822_v19, %s2213_s15 }
 0x218   : > { %2129 = vrot.lane.b32.xlu0 %v2088_v18, %s2214_s16  ;;  %2119 = vrot.lane.b32.xlu1 %v2068_v2, %s2214_s16  ;;  %v1511_v18 = vld [vmem:[%s2774_s6] sm:$0x3] }
 0x219   : > { %2124 = vrot.lane.b32.xlu2 %v2083_v13, %s2214_s16  ;;  %v618_v13 = vperm.slane %v616_v56, 1 }
 0x21b   : > { %vm2481_vm1 = vcmp.eq.s32.totalorder %v618_v13, 1 }
 0x233   : > { %v2060_v9 = vpop.permute.xlu2 %2059 }
 0x234   : > { %v2062_v39 = vunpack.i.h.bf16 %v2060_v9  ;;  %v2061_v1 = vunpack.i.l.bf16 %v2060_v9 }
 0x236   : > { %v798_v55 = vsel %vm797_vm11, %v2061_v1, %v2062_v39 }
 0x237   : > { %v806_v2 = vsel %vm2399_vm8, %v798_v55, 0.0 }
 0x23b   : > { %v2440_v21 = vpop.permute.xlu2 %2064 }
 0x23c   : > { %v2067_v4 = vunpack.i.h.bf16 %v2440_v21  ;;  %v2066_v5 = vunpack.i.l.bf16 %v2440_v21 }
 0x23e   : > { %v757_v19 = vsel %vm756_vm14, %v2066_v5, %v2067_v4 }
 0x243   : > { %v831_v22 = vpop.permute.xlu2 %830 }
 0x244   : > { %v837_v25 = vrot.slane %v831_v22, 4 }
 0x24a   : > { %v829_v23 = vpop.permute.xlu1 %828  ;;  %v2070_v24 = vpop.permute.xlu0 %2069 }
 0x24b   : > { %v836_v26 = vrot.slane %v829_v23, 4  ;;  %v712_v27 = vpop.permute.xlu2 %711  ;;  %v2072_v31 = vunpack.i.h.bf16 %v2070_v24  ;;  %v2071_v10 = vunpack.i.l.bf16 %v2070_v24 }
 0x24c   : > { %v719_v17 = vrot.slane %v712_v27, 4 }
 0x24d   : > { %v840_v28 = vsel %vm351_vm4, %v836_v26, %v837_v25  ;;  %v681_v32 = vsel %vm680_vm10, %v2071_v10, %v2072_v31 }
 0x24e   : > { %v842_v29 = vsel %vm2781_vm9, %v829_v23, %v840_v28  ;;  %v689_v43 = vsel %vm2399_vm8, %v681_v32, 0.0 }
 0x24f   : > { %847 = vst [vmem:[#allocation3 + $0x70] sm:$0xff] %v842_v29  ;;  %v765_v29 = vsel %vm2476_vm15, %v757_v19, 0.0 }
 0x252   : > { %v714_v33 = vpop.permute.xlu0 %713  ;;  %v2085_v16 = vpop.permute.xlu1 %2084 }
 0x253   : > { %v720_v34 = vrot.slane %v714_v33, 4  ;;  %v2087_v35 = vunpack.i.h.bf16 %v2085_v16  ;;  %v2086_v30 = vunpack.i.l.bf16 %v2085_v16  ;;  %v2100_v36 = vpop.permute.xlu2 %2099 }
 0x254   : > { %v2102_v40 = vunpack.i.h.bf16 %v2100_v36  ;;  %v2101_v42 = vunpack.i.l.bf16 %v2100_v36 }
 0x255   : > { %v723_v44 = vsel %vm351_vm4, %v719_v17, %v720_v34  ;;  %v682_v45 = vsel %vm680_vm10, %v2072_v31, %v2086_v30 }
 0x256   : > { %v690_v46 = vsel %vm2395_vm7, %v682_v45, 0.0  ;;  %v683_v47 = vsel %vm680_vm10, %v2087_v35, %v2101_v42  ;;  %v684_v48 = vsel %vm680_vm10, %v2101_v42, %v2102_v40  ;;  %v725_v49 = vsel %vm2782_vm12, %v712_v27, %v723_v44 }
 0x257   : > { %v693_v50 = vpack.c.bf16 %v690_v46, %v689_v43  ;;  %v691_v52 = vsel %vm2399_vm8, %v683_v47, 0.0  ;;  %v692_v53 = vsel %vm2395_vm7, %v684_v48, 0.0  ;;  %730 = vst [vmem:[#allocation3 + $0x40] sm:$0xff] %v725_v49  ;;  %v1944_v47 = vld [vmem:[#allocation3 + $0x70] sm:$0xf] }
 0x258   : > { %v694_v54 = vpack.c.bf16 %v692_v53, %v691_v52  ;;  %v2014_v53 = vld [vmem:[#allocation3 + $0x74] sm:$0xf] }
 0x259   : > { %695 = vst [vmem:[#allocation3 + $0x30] sm:$0xff] %v693_v50 }
 0x25a   : > { %696 = vst [vmem:[#allocation3 + $0x38] sm:$0xff] %v694_v54  ;;  %v2075_v58 = vpop.permute.xlu0 %2074  ;;  %v2090_v60 = vpop.permute.xlu1 %2089 }
 0x25b   : > { %v2077_v61 = vunpack.i.h.bf16 %v2075_v58  ;;  %v2076_v62 = vunpack.i.l.bf16 %v2075_v58  ;;  %v2092_v63 = vunpack.i.h.bf16 %v2090_v60  ;;  %v2091_v0 = vunpack.i.l.bf16 %v2090_v60  ;;  %v718_v17 = vpop.permute.xlu2 %717 }
 0x25c   : > { %v722_v43 = vrot.slane %v718_v17, 4 }
 0x25d   : > { %v799_v6 = vsel %vm797_vm11, %v2062_v39, %v2076_v62  ;;  %v800_v51 = vsel %vm797_vm11, %v2077_v61, %v2091_v0  ;;  %v801_v7 = vsel %vm797_vm11, %v2091_v0, %v2092_v63 }
 0x25e   : > { %v807_v8 = vsel %vm2395_vm7, %v799_v6, 0.0  ;;  %v808_v11 = vsel %vm2399_vm8, %v800_v51, 0.0  ;;  %v809_v12 = vsel %vm2395_vm7, %v801_v7, 0.0 }
 0x25f   : > { %v810_v14 = vpack.c.bf16 %v807_v8, %v806_v2  ;;  %v811_v15 = vpack.c.bf16 %v809_v12, %v808_v11 }
 0x261   : > { %812 = vst [vmem:[#allocation3 + $0x60] sm:$0xff] %v810_v14 }
 0x262   : > { %813 = vst [vmem:[#allocation3 + $0x68] sm:$0xff] %v811_v15  ;;  %v2080_v9 = vpop.permute.xlu0 %2079  ;;  %v2095_v21 = vpop.permute.xlu1 %2094 }
 0x263   : > { %v2082_v22 = vunpack.i.h.bf16 %v2080_v9  ;;  %v2081_v23 = vunpack.i.l.bf16 %v2080_v9  ;;  %v2097_v24 = vunpack.i.h.bf16 %v2095_v21  ;;  %v2096_v25 = vunpack.i.l.bf16 %v2095_v21  ;;  %v2115_v44 = vpop.permute.xlu2 %2114 }
 0x264   : > { %v2117_v48 = vunpack.i.h.bf16 %v2115_v44  ;;  %v2116_v49 = vunpack.i.l.bf16 %v2115_v44  ;;  %v1914_v44 = vld [vmem:[#allocation3 + $0x38] sm:$0xf0] }
 0x265   : > { %v758_v26 = vsel %vm756_vm14, %v2067_v4, %v2081_v23  ;;  %v759_v27 = vsel %vm756_vm14, %v2082_v22, %v2096_v25  ;;  %v760_v28 = vsel %vm756_vm14, %v2096_v25, %v2097_v24 }
 0x266   : > { %v766_v31 = vsel %vm2481_vm1, %v758_v26, 0.0  ;;  %v767_v10 = vsel %vm2476_vm15, %v759_v27, 0.0  ;;  %v768_v32 = vsel %vm2481_vm1, %v760_v28, 0.0  ;;  %v643_v2 = vsel %vm2779_vm13, %v2116_v49, %v2117_v48 }
 0x267   : > { %v769_v33 = vpack.c.bf16 %v766_v31, %v765_v29  ;;  %v770_v16 = vpack.c.bf16 %v768_v32, %v767_v10  ;;  %v651_v21 = vsel %vm2481_vm1, %v643_v2, 0.0  ;;  %v909_v29 = vld [vmem:[%s2771_s3] sm:$0xf]  ;;  %v1920_v32 = vld [vmem:[#allocation3 + $0x40] sm:$0xf] }
 0x268   : > { %v1936_v61 = vld [vmem:[#allocation3 + $0x60] sm:$0xf]  ;;  %v2012_v63 = vld [vmem:[#allocation3 + $0x64] sm:$0xf]  ;;  %912 = vperm.xlu1 %2133, %v909_v29  }
 0x269   : > { %771 = vst [vmem:[#allocation3 + $0x50] sm:$0xff] %v769_v33  ;;  %v2013_v62 = vld [vmem:[#allocation3 + $0x64] sm:$0xf0]  ;;  %v1938_v0 = vld [vmem:[#allocation3 + $0x68] sm:$0xf0] }
 0x26a   : > { %772 = vst [vmem:[#allocation3 + $0x58] sm:$0xff] %v770_v16  ;;  %v833_v34 = vpop.permute.xlu0 %832  ;;  %v835_v35 = vpop.permute.xlu1 %834  ;;  %v1937_v5 = vor.u32 %v2013_v62, %v1936_v61  ;;  %v1941_v8 = vor.u32 %v2012_v63, %v1938_v0  ;;  %v2000_v29 = vld [vmem:[#allocation3 + $0x4] sm:$0xf] }
 0x26b   : > { %v838_v30 = vrot.slane %v833_v34, 4  ;;  %v839_v36 = vrot.slane %v835_v35, 4  ;;  %v593_v15 = vpop.permute.xlu2 %592  ;;  %v2008_v35 = vld [vmem:[#allocation3 + $0x44] sm:$0xf] }
 0x26c   : > { %v598_v33 = vrot.slane %v593_v15, 4 }
 0x26d   : > { %v843_v39 = vsel %vm351_vm4, %v838_v30, %v839_v36 }
 0x26e   : > { %v844_v40 = vsel %vm2781_vm9, %v833_v34, %v843_v39 }
 0x26f   : > { %848 = vst [vmem:[#allocation3 + $0x78] sm:$0xff] %v844_v40 }
 0x270   : > { %v1928_v11 = vld [vmem:[#allocation3 + $0x50] sm:$0xf]  ;;  %v2010_v13 = vld [vmem:[#allocation3 + $0x54] sm:$0xf] }
 0x271   : > { %v2011_v12 = vld [vmem:[#allocation3 + $0x54] sm:$0xf0]  ;;  %v1930_v14 = vld [vmem:[#allocation3 + $0x58] sm:$0xf0] }
 0x272   : > { %v2105_v42 = vpop.permute.xlu0 %2104  ;;  %v716_v1 = vpop.permute.xlu1 %715  ;;  %v1929_v27 = vor.u32 %v2011_v12, %v1928_v11  ;;  %v1933_v28 = vor.u32 %v2010_v13, %v1930_v14 }
 0x273   : > { %v721_v45 = vrot.slane %v716_v1, 4  ;;  %v2107_v55 = vunpack.i.h.bf16 %v2105_v42  ;;  %v2106_v56 = vunpack.i.l.bf16 %v2105_v42  ;;  %v1912_v42 = vld [vmem:[#allocation3 + $0x30] sm:$0xf] }
 0x275   : > { %v726_v46 = vsel %vm351_vm4, %v721_v45, %v722_v43  ;;  %v640_v6 = vsel %vm2779_vm13, %v2106_v56, %v2107_v55  ;;  %v2006_v43 = vld [vmem:[#allocation3 + $0x34] sm:$0xf] }
 0x276   : > { %v727_v50 = vsel %vm2782_vm12, %v716_v1, %v726_v46  ;;  %v2015_v52 = vld [vmem:[#allocation3 + $0x74] sm:$0xf0]  ;;  %v1946_v54 = vld [vmem:[#allocation3 + $0x78] sm:$0xf0]  ;;  %v648_v22 = vsel %vm2476_vm15, %v640_v6, 0.0 }
 0x277   : > { %731 = vst [vmem:[#allocation3 + $0x48] sm:$0xff] %v727_v50  ;;  %v1945_v58 = vor.u32 %v2015_v52, %v1944_v47  ;;  %v1949_v60 = vor.u32 %v2014_v53, %v1946_v54  ;;  %v2007_v1 = vld [vmem:[#allocation3 + $0x34] sm:$0xf0]  ;;  %v1917_v52 = vor.u32 %v2006_v43, %v1914_v44 }
 0x278   : > { %v1913_v50 = vor.u32 %v2007_v1, %v1912_v42 }
 0x279   : > { %1013 = vmatpush.bf16.msra.mxu0 %v1945_v58  ;;  %1039 = vmatpush.bf16.msra.mxu2 %v1949_v60 }
 0x27a   : > { %v589_v3 = vpop.permute.xlu0 %588  ;;  %v2110_v4 = vpop.permute.xlu1 %2109 }
 0x27b   : > { %v2112_v51 = vunpack.i.h.bf16 %v2110_v4  ;;  %v2111_v7 = vunpack.i.l.bf16 %v2110_v4  ;;  %v596_v16 = vrot.slane %v589_v3, 4 }
 0x27d   : > { %v641_v19 = vsel %vm2779_vm13, %v2107_v55, %v2111_v7  ;;  %v642_v9 = vsel %vm2779_vm13, %v2112_v51, %v2116_v49  ;;  %1014 = vmatpush.bf16.msra.mxu0 %v1937_v5  ;;  %1040 = vmatpush.bf16.msra.mxu2 %v1941_v8  ;;  %v2125_v49 = vpop.permute.xlu2 %2124  ;;  %vm1010_vm13 = vcmask 130048  }
 0x27e   : > { %v649_v23 = vsel %vm2481_vm1, %v641_v19, 0.0  ;;  %v650_v24 = vsel %vm2476_vm15, %v642_v9, 0.0  ;;  %v2009_v31 = vld [vmem:[#allocation3 + $0x44] sm:$0xf0]  ;;  %v1922_v10 = vld [vmem:[#allocation3 + $0x48] sm:$0xf0]  ;;  %v2127_v58 = vunpack.i.h.bf16 %v2125_v49  ;;  %v2126_v60 = vunpack.i.l.bf16 %v2125_v49 }
 0x27f   : > { %v652_v25 = vpack.c.bf16 %v649_v23, %v648_v22  ;;  %v653_v26 = vpack.c.bf16 %v651_v21, %v650_v24  ;;  %v1921_v39 = vor.u32 %v2009_v31, %v1920_v32  ;;  %v1925_v40 = vor.u32 %v2008_v35, %v1922_v10 }
 0x281   : > { %654 = vst [vmem:[#allocation3 + $0x20] sm:$0xff] %v652_v25  ;;  %1015 = vmatpush.bf16.msra.mxu0 %v1929_v27  ;;  %1041 = vmatpush.bf16.msra.mxu2 %v1933_v28  ;;  %v1890_v27 = vld [vmem:[#allocation3 + $0x8] sm:$0xf0]  ;;  %v1888_v28 = vld [vmem:[#allocation3] sm:$0xf] }
 0x282   : > { %655 = vst [vmem:[#allocation3 + $0x28] sm:$0xff] %v653_v26  ;;  %v595_v17 = vpop.permute.xlu0 %594  ;;  %v591_v34 = vpop.permute.xlu1 %590  ;;  %v2001_v26 = vld [vmem:[#allocation3 + $0x4] sm:$0xf0]  ;;  %v1893_v10 = vor.u32 %v2000_v29, %v1890_v27 }
 0x283   : > { %v599_v30 = vrot.slane %v595_v17, 4  ;;  %v597_v36 = vrot.slane %v591_v34, 4  ;;  %v1889_v31 = vor.u32 %v2001_v26, %v1888_v28 }
 0x285   : > { %v604_v45 = vsel %vm351_vm4, %v598_v33, %v599_v30  ;;  %v601_v46 = vsel %vm351_vm4, %v596_v16, %v597_v36  ;;  %1016 = vmatpush.bf16.msra.mxu0 %v1921_v39  ;;  %1042 = vmatpush.bf16.msra.mxu2 %v1925_v40 }
 0x286   : > { %v605_v47 = vsel %vm2780_vm6, %v593_v15, %v604_v45  ;;  %v603_v48 = vsel %vm2780_vm6, %v589_v3, %v601_v46 }
 0x287   : > { %609 = vst [vmem:[#allocation3 + $0x18] sm:$0xff] %v605_v47 }
 0x288   : > { %608 = vst [vmem:[#allocation3 + $0x10] sm:$0xff] %v603_v48  ;;  %v1904_v53 = vld [vmem:[#allocation3 + $0x20] sm:$0xf]  ;;  %v2004_v55 = vld [vmem:[#allocation3 + $0x24] sm:$0xf] }
 0x289   : > { %1017 = vmatpush.bf16.msra.mxu0 %v1913_v50  ;;  %1043 = vmatpush.bf16.msra.mxu2 %v1917_v52  ;;  %v2005_v54 = vld [vmem:[#allocation3 + $0x24] sm:$0xf0]  ;;  %v1906_v56 = vld [vmem:[#allocation3 + $0x28] sm:$0xf0] }
 0x28a   : > { %v2130_v61 = vpop.permute.xlu0 %2129  ;;  %v2120_v62 = vpop.permute.xlu1 %2119  ;;  %v1905_v63 = vor.u32 %v2005_v54, %v1904_v53  ;;  %v1909_v5 = vor.u32 %v2004_v55, %v1906_v56 }
 0x28b   : > { %v2132_v0 = vunpack.i.h.bf16 %v2130_v61  ;;  %v2131_v2 = vunpack.i.l.bf16 %v2130_v61  ;;  %v2122_v3 = vunpack.i.h.bf16 %v2120_v62  ;;  %v2121_v4 = vunpack.i.l.bf16 %v2120_v62 }
 0x28d   : > { %v876_v6 = vsel %vm873_vm5, %v2127_v58, %v2131_v2  ;;  %v877_v51 = vsel %vm873_vm5, %v2131_v2, %v2132_v0  ;;  %v874_v7 = vsel %vm873_vm5, %v2121_v4, %v2122_v3  ;;  %v875_v8 = vsel %vm873_vm5, %v2122_v3, %v2126_v60  ;;  %1018 = vmatpush.bf16.msra.mxu0 %v1905_v63 }
 0x28e   : > { %v884_v11 = vsel %vm2476_vm15, %v876_v6, 0.0  ;;  %v885_v12 = vsel %vm2481_vm1, %v877_v51, 0.0  ;;  %v882_v13 = vsel %vm2476_vm15, %v874_v7, 0.0  ;;  %v883_v14 = vsel %vm2481_vm1, %v875_v8, 0.0  ;;  %1044 = vmatpush.bf16.msra.mxu2 %v1909_v5  ;;  %v2003_v15 = vld [vmem:[#allocation3 + $0x14] sm:$0xf0] }
 0x28f   : > { %v887_v19 = vpack.c.bf16 %v885_v12, %v884_v11  ;;  %v886_v9 = vpack.c.bf16 %v883_v14, %v882_v13  ;;  %v1896_v21 = vld [vmem:[#allocation3 + $0x10] sm:$0xf]  ;;  %v2002_v22 = vld [vmem:[#allocation3 + $0x14] sm:$0xf]  ;;  %v1898_v23 = vld [vmem:[#allocation3 + $0x18] sm:$0xf0] }
 0x290   : > { %v1897_v24 = vor.u32 %v2003_v15, %v1896_v21  ;;  %v1901_v25 = vor.u32 %v2002_v22, %v1898_v23 }
 0x291   : > { %889 = vst [vmem:[#allocation3 + $0x88] sm:$0xff] %v887_v19 }
 0x292   : > { %888 = vst [vmem:[#allocation3 + $0x80] sm:$0xff] %v886_v9  ;;  %1019 = vmatpush.bf16.msra.mxu0 %v1897_v24  ;;  %1045 = vmatpush.bf16.msra.mxu2 %v1901_v25 }
 0x296   : > { %1020 = vmatpush.bf16.msra.mxu0 %v1889_v31  ;;  %1046 = vmatpush.bf16.msra.mxu2 %v1893_v10 }
 0x298   : > { %v2017_v32 = vld [vmem:[#allocation3 + $0x84] sm:$0xf0]  ;;  %v1954_v33 = vld [vmem:[#allocation3 + $0x88] sm:$0xf0] }
 0x299   : > { %1021 = vmatmul.bf16.vlgmr.msra.gmra.mxu0 %v2366_v37  ;;  %1047 = vmatmul.bf16.vlgmr.msra.gmra.mxu2 %v2366_v37  ;;  %v1952_v16 = vld [vmem:[#allocation3 + $0x80] sm:$0xf]  ;;  %v2016_v17 = vld [vmem:[#allocation3 + $0x84] sm:$0xf] }
 0x29a   : > { %v1953_v34 = vor.u32 %v2017_v32, %v1952_v16  ;;  %v1957_v35 = vor.u32 %v2016_v17, %v1954_v33 }
 0x29c   : > { %1033 = vmatpush.bf16.msra.mxu1 %v1953_v34  ;;  %1059 = vmatpush.bf16.msra.mxu3 %v1957_v35 }
 0x29f   : > { %1958 = vmatmul.msk.bf16.vlgmr.msra.gmra.mxu1 %vm1010_vm13, %v2368_v38  ;;  %1959 = vmatmul.msk.bf16.vlgmr.msra.gmra.mxu3 %vm1010_vm13, %v2368_v38  ;;  %vm2792_vm13 = vcmask 1031168  }
 0x2da   : > { %v913_v36 = vpop.permute.xlu1 %912 }
 0x316   : > { %v1022_v30 = vpop.f32.mrf.mxu0 }
 0x317   : > { %v1023_v39 = vadd.f32 %v1022_v30, %v913_v36 }
 0x31c   : > { %v1035_v40 = vpop.f32.mrf.mxu1  ;;  %v1048_v42 = vpop.f32.mrf.mxu2 }
 0x31d   : > { %v1036_v1 = vadd.f32 %v1035_v40, %v1023_v39  ;;  %v1049_v37 = vadd.f32 %v1048_v42, %v913_v36 }
 0x31e   : > { %v1024_v43 = vpop.f32.mrf.mxu0 }
 0x31f   : > { %v1067_v44 = vmul.f32 0.1, %v1036_v1  ;;  %vm1065_vm6 = vcmp.gt.f32.partialorder %v1036_v1, 0.0 }
 0x321   : > { %v1069_v45 = vsel %vm1065_vm6, %v1036_v1, %v1067_v44  ;;  %vm1292_vm6 = vcmask 1041408  }
 0x322   : > { %v1061_v46 = vpop.f32.mrf.mxu3  ;;  %1073 = vrot.lane.b32.xlu2 %v1069_v45, %s2196_s11 }
 0x323   : > { %v1062_v47 = vadd.f32 %v1061_v46, %v1049_v37 }
 0x324   : > { %v1037_v48 = vpop.f32.mrf.mxu1  ;;  %v1050_v49 = vpop.f32.mrf.mxu2 }
 0x325   : > { %v1068_v50 = vmul.f32 0.1, %v1062_v47  ;;  %vm1066_vm9 = vcmp.gt.f32.partialorder %v1062_v47, 0.0 }
 0x327   : > { %v1070_v38 = vsel %vm1066_vm9, %v1062_v47, %v1068_v50  ;;  %vm2791_vm9 = vcmask 506880  }
 0x328   : > { %1075 = vrot.lane.b32.xlu0 %v1070_v38, %s2196_s11 }
 0x32a   : > { %v1063_v52 = vpop.f32.mrf.mxu3 }
 0x37c   : > { %v1074_v53 = vpop.permute.xlu2 %1073 }
 0x37d   : > { %1081 = vst.msk [vmem:[#allocation2] sm:$0xf] %vm339_vm2, %v1074_v53 }
 0x384   : > { %v1084_v61 = vld [vmem:[#allocation2] sm:$0xf] }
 0x385   : > { %v1231_v2 = vld [vmem:[#allocation2] sm:$0xf]  ;;  %v1086_v4 = vsel %vm2399_vm8, %v1084_v61, 0.0 }
 0x386   : > { %v1169_v3 = vld [vmem:[#allocation2] sm:$0xf] }
 0x387   : > { %v1192_v14 = vld [vmem:[#allocation2] sm:$0xf] }
 0x388   : > { %v1129_v9 = vld [vmem:[#allocation2] sm:$0xf] }
 0x389   : > { %v1212_v24 = vld [vmem:[#allocation2] sm:$0xf] }
 0x38a   : > { %v1152_v31 = vld [vmem:[#allocation2] sm:$0xf] }
 0x38b   : > { %v1090_v16 = vld [vmem:[#allocation2] sm:$0xf] }
 0x38c   : > { %v1109_v30 = vld [vmem:[#allocation2] sm:$0xf] }
 0x39a   : > { %v1076_v54 = vpop.permute.xlu0 %1075 }
 0x39b   : > { %v1077_v55 = vsel %vm320_vm0, %v1074_v53, %v1076_v54  ;;  %1083 = vst.msk [vmem:[#allocation2 + $0x10] sm:$0xf] %vm342_vm3, %v1076_v54 }
 0x39c   : > { %1082 = vst [vmem:[#allocation2 + $0x8] sm:$0xf] %v1077_v55 }
 0x3a2   : > { %v1171_v56 = vld [vmem:[#allocation2 + $0x10] sm:$0xf] }
 0x3a3   : > { %v1131_v58 = vld [vmem:[#allocation2 + $0x10] sm:$0xf]  ;;  %1179 = vrot.lane.b32.xlu1 %v1171_v56, %s2211_s10  ;;  %v1232_v62 = vld [vmem:[#allocation2 + $0x8] sm:$0xf] }
 0x3a4   : > { %v1233_v60 = vld [vmem:[#allocation2 + $0x10] sm:$0xf]  ;;  %1139 = vrot.lane.b32.xlu0 %v1131_v58, %s2208_s26  ;;  %v1170_v63 = vld [vmem:[#allocation2 + $0x8] sm:$0xf]  ;;  %v2134_v6 = vpack.i.bf16 %v1232_v62, %v1231_v2 }
 0x3a5   : > { %1241 = vrot.lane.b32.xlu2 %v1233_v60, %s2214_s16  ;;  %v1085_v0 = vld [vmem:[#allocation2 + $0x8] sm:$0xf]  ;;  %v2139_v51 = vpack.i.bf16 %v1170_v63, %v1169_v3  ;;  %v1194_v8 = vld [vmem:[#allocation2 + $0x10] sm:$0xf] }
 0x3a6   : > { %v1087_v5 = vsel %vm2395_vm7, %v1085_v0, 0.0  ;;  %v1193_v11 = vld [vmem:[#allocation2 + $0x8] sm:$0xf]  ;;  %v1154_v12 = vld [vmem:[#allocation2 + $0x10] sm:$0xf] }
 0x3a7   : > { %v1088_v7 = vpack.c.bf16 %v1087_v5, %v1086_v4  ;;  %v1130_v13 = vld [vmem:[#allocation2 + $0x8] sm:$0xf]  ;;  %v2144_v15 = vpack.i.bf16 %v1193_v11, %v1192_v14  ;;  %v1156_v19 = vpack.c.bf16 %v1154_v12, %v1154_v12  ;;  %v1214_v22 = vld [vmem:[#allocation2 + $0x10] sm:$0xf] }
 0x3a8   : > { %v2149_v21 = vpack.i.bf16 %v1130_v13, %v1129_v9  ;;  %v1213_v23 = vld [vmem:[#allocation2 + $0x8] sm:$0xf]  ;;  %v1216_v25 = vpack.c.bf16 %v1214_v22, %v1214_v22  ;;  %v1092_v33 = vld [vmem:[#allocation2 + $0x10] sm:$0xf] }
 0x3a9   : > { %1089 = vst [vmem:[#allocation3] sm:$0x33] %v1088_v7  ;;  %v1215_v26 = vpack.c.bf16 %v1213_v23, %v1212_v24  ;;  %v1153_v27 = vld [vmem:[#allocation2 + $0x8] sm:$0xf]  ;;  %v1094_v34 = vpack.c.bf16 %v1092_v33, %v1092_v33  ;;  %v1111_v42 = vld [vmem:[#allocation2 + $0x10] sm:$0xf] }
 0x3aa   : > { %v1220_v28 = vrot.slane %v1216_v25, 6  ;;  %v1155_v10 = vpack.c.bf16 %v1153_v27, %v1152_v31  ;;  %v1091_v32 = vld [vmem:[#allocation2 + $0x8] sm:$0xf] }
 0x3ab   : > { %2135 = vrot.lane.b32.xlu1 %v2134_v6, %s2214_s16  ;;  %v1219_v29 = vrot.slane %v1215_v26, 6  ;;  %v1093_v17 = vpack.c.bf16 %v1091_v32, %v1090_v16  ;;  %v1110_v35 = vld [vmem:[#allocation2 + $0x8] sm:$0xf]  ;;  %v1098_v40 = vrot.slane %v1094_v34, 6 }
 0x3ac   : > { %2140 = vrot.lane.b32.xlu0 %v2139_v51, %s2211_s10  ;;  %v2154_v36 = vpack.i.bf16 %v1110_v35, %v1109_v30  ;;  %v1257_v35 = vld [vmem:[%s2773_s5] sm:$0xf] }
 0x3ad   : > { %1202 = vrot.lane.b32.xlu2 %v1194_v8, %s2209_s30  ;;  %v1097_v39 = vrot.slane %v1093_v17, 6 }
 0x3b3   : > { %2145 = vrot.lane.b32.xlu1 %v2144_v15, %s2209_s30 }
 0x3b4   : > { %1161 = vrot.lane.b32.xlu0 %v1156_v19, %s2210_s9 }
 0x3b5   : > { %2150 = vrot.lane.b32.xlu2 %v2149_v21, %s2208_s26 }
 0x3bb   : > { %1223 = vrot.lane.b32.xlu1 %v1220_v28, %s2207_s25 }
 0x3bc   : > { %1221 = vrot.lane.b32.xlu0 %v1219_v29, %s2207_s25 }
 0x3bd   : > { %1159 = vrot.lane.b32.xlu2 %v1155_v10, %s2210_s9 }
 0x3c3   : > { %1099 = vrot.lane.b32.xlu1 %v1097_v39, %s2213_s15 }
 0x3c4   : > { %2155 = vrot.lane.b32.xlu0 %v2154_v36, %s2212_s12 }
 0x3c5   : > { %1101 = vrot.lane.b32.xlu2 %v1098_v40, %s2213_s15 }
 0x3cb   : > { %1119 = vrot.lane.b32.xlu1 %v1111_v42, %s2212_s12 }
 0x3cd   : > { %1260 = vperm.xlu2 %2159, %v1257_v35  }
 0x3ff   : > { %v1242_v1 = vpop.permute.xlu2 %1241 }
 0x407   : > { %v1203_v43 = vpop.permute.xlu2 %1202 }
 0x40f   : > { %v2151_v44 = vpop.permute.xlu2 %2150 }
 0x410   : > { %v2153_v37 = vunpack.i.h.bf16 %v2151_v44  ;;  %v2152_v45 = vunpack.i.l.bf16 %v2151_v44 }
 0x412   : > { %v1141_v46 = vsel %vm680_vm10, %v2152_v45, %v2153_v37 }
 0x413   : > { %v1145_v50 = vsel %vm2399_vm8, %v1141_v46, 0.0 }
 0x415   : > { %v1180_v47 = vpop.permute.xlu1 %1179 }
 0x416   : > { %v1140_v48 = vpop.permute.xlu0 %1139 }
 0x417   : > { %v1142_v49 = vsel %vm680_vm10, %v2153_v37, %v1140_v48  ;;  %v1160_v8 = vpop.permute.xlu2 %1159 }
 0x418   : > { %v1146_v38 = vsel %vm2395_vm7, %v1142_v49, 0.0  ;;  %v1163_v14 = vrot.slane %v1160_v8, 4 }
 0x419   : > { %v1147_v52 = vpack.c.bf16 %v1146_v38, %v1145_v50 }
 0x41b   : > { %v1149_v53 = vrot.slane %v1147_v52, 6 }
 0x41d   : > { %1151 = vst [vmem:[#allocation3 + $0x8] sm:$0xcc] %v1149_v53  ;;  %v2136_v54 = vpop.permute.xlu1 %2135 }
 0x41e   : > { %v2141_v55 = vpop.permute.xlu0 %2140  ;;  %v2138_v56 = vunpack.i.h.bf16 %v2136_v54  ;;  %v2137_v58 = vunpack.i.l.bf16 %v2136_v54 }
 0x41f   : > { %v2143_v60 = vunpack.i.h.bf16 %v2141_v55  ;;  %v2142_v61 = vunpack.i.l.bf16 %v2141_v55  ;;  %v1102_v42 = vpop.permute.xlu2 %1101 }
 0x420   : > { %v1243_v62 = vsel %vm873_vm5, %v2137_v58, %v2138_v56  ;;  %v1244_v63 = vsel %vm873_vm5, %v2138_v56, %v1242_v1  ;;  %v1104_v44 = vrot.slane %v1102_v42, 4 }
 0x421   : > { %v1182_v0 = vsel %vm756_vm14, %v2143_v60, %v1180_v47  ;;  %v1181_v2 = vsel %vm756_vm14, %v2142_v61, %v2143_v60  ;;  %v1247_v3 = vsel %vm2476_vm15, %v1243_v62, 0.0  ;;  %v1248_v4 = vsel %vm2481_vm1, %v1244_v63, 0.0 }
 0x422   : > { %v1186_v5 = vsel %vm2481_vm1, %v1182_v0, 0.0  ;;  %v1185_v6 = vsel %vm2476_vm15, %v1181_v2, 0.0  ;;  %v1249_v51 = vpack.c.bf16 %v1248_v4, %v1247_v3 }
 0x423   : > { %v1187_v7 = vpack.c.bf16 %v1186_v5, %v1185_v6  ;;  %v1251_v6 = vld [vmem:[%s2772_s4] sm:$0x3] }
 0x424   : > { %1250 = vst [vmem:[#allocation3 + $0x20] sm:$0x33] %v1249_v51 }
 0x425   : > { %v1189_v11 = vrot.slane %v1187_v7, 6  ;;  %v2146_v12 = vpop.permute.xlu1 %2145 }
 0x426   : > { %v1162_v13 = vpop.permute.xlu0 %1161  ;;  %v2148_v15 = vunpack.i.h.bf16 %v2146_v12  ;;  %v2147_v19 = vunpack.i.l.bf16 %v2146_v12 }
 0x427   : > { %1191 = vst [vmem:[#allocation3 + $0x10] sm:$0xcc] %v1189_v11  ;;  %v1164_v9 = vrot.slane %v1162_v13, 4  ;;  %v1261_v51 = vpop.permute.xlu2 %1260 }
 0x428   : > { %v1204_v21 = vsel %vm797_vm11, %v2147_v19, %v2148_v15  ;;  %v1205_v22 = vsel %vm797_vm11, %v2148_v15, %v1203_v43 }
 0x429   : > { %v1165_v23 = vsel %vm351_vm4, %v1163_v14, %v1164_v9  ;;  %v1208_v24 = vsel %vm2399_vm8, %v1204_v21, 0.0  ;;  %v1209_v25 = vsel %vm2395_vm7, %v1205_v22, 0.0 }
 0x42a   : > { %v1166_v26 = vsel %vm2782_vm12, %v1160_v8, %v1165_v23  ;;  %v1210_v27 = vpack.c.bf16 %v1209_v25, %v1208_v24 }
 0x42b   : > { %1168 = vst [vmem:[#allocation3 + $0x10] sm:$0x33] %v1166_v26  ;;  %v1256_v28 = vld [vmem:[#allocation3 + $0x20] sm:$0x33] }
 0x42c   : > { %1211 = vst [vmem:[#allocation3 + $0x18] sm:$0x33] %v1210_v27  ;;  %v1276_v29 = vunpack.c.l.b16 %v1256_v28  ;;  %v1277_v31 = vunpack.c.h.b16 %v1256_v28 }
 0x42d   : > { %v1224_v10 = vpop.permute.xlu1 %1223 }
 0x42e   : > { %v1222_v32 = vpop.permute.xlu0 %1221  ;;  %v1226_v33 = vrot.slane %v1224_v10, 4  ;;  %v1282_v17 = vpack.c.b16 %v1276_v29, %v1276_v29  ;;  %v1283_v34 = vpack.c.b16 %v1277_v31, %v1277_v31 }
 0x42f   : > { %v1225_v16 = vrot.slane %v1222_v32, 4 }
 0x430   : > { %v1294_v36 = vsel %vm1292_vm6, %v1282_v17, 0  ;;  %v1297_v39 = vsel %vm1292_vm6, %v1283_v34, 0 }
 0x431   : > { %v1227_v30 = vsel %vm351_vm4, %v1225_v16, %v1226_v33  ;;  %1304 = vmatpush.bf16.msrb.mxu1 %v1294_v36  ;;  %1317 = vmatpush.bf16.msrb.mxu3 %v1297_v39 }
 0x432   : > { %v1228_v40 = vsel %vm2791_vm9, %v1222_v32, %v1227_v30  ;;  %v1970_v48 = vld [vmem:[#allocation3 + $0x10] sm:$0xf]  ;;  %v2020_v38 = vld [vmem:[#allocation3 + $0x14] sm:$0xf]  ;;  %vm2793_vm9 = vcmask 1014784  }
 0x433   : > { %1230 = vst [vmem:[#allocation3 + $0x18] sm:$0xcc] %v1228_v40  ;;  %vm2794_vm12 = vmmov %vm2793_vm9 }
 0x435   : > { %v1100_v43 = vpop.permute.xlu1 %1099 }
 0x436   : > { %v2156_v1 = vpop.permute.xlu0 %2155  ;;  %v1103_v37 = vrot.slane %v1100_v43, 4 }
 0x437   : > { %v2158_v45 = vunpack.i.h.bf16 %v2156_v1  ;;  %v2157_v46 = vunpack.i.l.bf16 %v2156_v1 }
 0x438   : > { %v1105_v47 = vsel %vm351_vm4, %v1103_v37, %v1104_v44 }
 0x439   : > { %v1106_v49 = vsel %vm2792_vm13, %v1100_v43, %v1105_v47  ;;  %v1121_v55 = vsel %vm2793_vm9, %v2157_v46, %v2158_v45 }
 0x43a   : > { %v2021_v50 = vld [vmem:[#allocation3 + $0x14] sm:$0xf0]  ;;  %v1972_v52 = vld [vmem:[#allocation3 + $0x18] sm:$0xf0]  ;;  %1108 = vst [vmem:[#allocation3] sm:$0xcc] %v1106_v49 }
 0x43b   : > { %v1971_v53 = vor.u32 %v2021_v50, %v1970_v48  ;;  %v1975_v54 = vor.u32 %v2020_v38, %v1972_v52  ;;  %v1125_v60 = vsel %vm2476_vm15, %v1121_v55, 0.0 }
 0x43d   : > { %1305 = vmatpush.bf16.msrb.mxu1 %v1971_v53  ;;  %1318 = vmatpush.bf16.msrb.mxu3 %v1975_v54  ;;  %v1120_v56 = vpop.permute.xlu1 %1119 }
 0x43e   : > { %v1122_v58 = vsel %vm2794_vm12, %v2158_v45, %v1120_v56  ;;  %vm1288_vm12 = vcmask 293888  }
 0x43f   : > { %v1126_v61 = vsel %vm2481_vm1, %v1122_v58, 0.0 }
 0x440   : > { %v1127_v62 = vpack.c.bf16 %v1126_v61, %v1125_v60 }
 0x441   : > { %v1962_v63 = vld [vmem:[#allocation3] sm:$0xf]  ;;  %v2018_v2 = vld [vmem:[#allocation3 + $0x4] sm:$0xf] }
 0x442   : > { %1128 = vst [vmem:[#allocation3 + $0x8] sm:$0x33] %v1127_v62 }
 0x449   : > { %v2019_v0 = vld [vmem:[#allocation3 + $0x4] sm:$0xf0]  ;;  %v1964_v3 = vld [vmem:[#allocation3 + $0x8] sm:$0xf0] }
 0x44a   : > { %v1963_v4 = vor.u32 %v2019_v0, %v1962_v63  ;;  %v1967_v5 = vor.u32 %v2018_v2, %v1964_v3 }
 0x44c   : > { %1306 = vmatpush.bf16.msrb.mxu1 %v1963_v4  ;;  %1319 = vmatpush.bf16.msrb.mxu3 %v1967_v5 }
 0x44f   : > { %1977 = vmatmul.msk.bf16.vlgmr.msrb.gmra.mxu3 %vm1288_vm12, %v1251_v6  ;;  %1976 = vmatmul.msk.bf16.vlgmr.msrb.gmra.mxu1 %vm1288_vm12, %v1251_v6 }
 0x4cc   : > { %v1308_v7 = vpop.f32.mrf.mxu1 }
 0x4cd   : > { %v1309_v8 = vadd.f32 %v1308_v7, %v1261_v51 }
 0x4cf   : > { %vm1325_vm13 = vcmp.gt.f32.partialorder %v1309_v8, 0.0  ;;  %v1327_v11 = vmul.f32 0.1, %v1309_v8 }
 0x4d1   : > { %v1329_v12 = vsel %vm1325_vm13, %v1309_v8, %v1327_v11 }
 0x4d2   : > { %v1321_v13 = vpop.f32.mrf.mxu3  ;;  %1333 = vrot.lane.b32.xlu0 %v1329_v12, %s2196_s11 }
 0x4d3   : > { %v1322_v14 = vadd.f32 %v1321_v13, %v1261_v51 }
 0x4d4   : > { %v1310_v15 = vpop.f32.mrf.mxu1 }
 0x4d5   : > { %v1328_v19 = vmul.f32 0.1, %v1322_v14  ;;  %vm1326_vm9 = vcmp.gt.f32.partialorder %v1322_v14, 0.0 }
 0x4d7   : > { %v1330_v9 = vsel %vm1326_vm9, %v1322_v14, %v1328_v19 }
 0x4d8   : > { %1335 = vrot.lane.b32.xlu1 %v1330_v9, %s2196_s11 }
 0x4da   : > { %v1323_v21 = vpop.f32.mrf.mxu3 }
 0x544   : > { %v1334_v22 = vpop.permute.xlu0 %1333 }
 0x545   : > { %1341 = vst.msk [vmem:[#allocation2] sm:$0xf] %vm339_vm2, %v1334_v22 }
 0x54a   : > { %v1336_v23 = vpop.permute.xlu1 %1335 }
 0x54b   : > { %v1337_v24 = vsel %vm320_vm0, %v1334_v22, %v1336_v23  ;;  %1343 = vst.msk [vmem:[#allocation2 + $0x10] sm:$0xf] %vm342_vm3, %v1336_v23 }
 0x54c   : > { %1342 = vst [vmem:[#allocation2 + $0x8] sm:$0xf] %v1337_v24  ;;  %v1344_v28 = vld [vmem:[#allocation2] sm:$0xf] }
 0x54d   : > { %v1491_v32 = vld [vmem:[#allocation2] sm:$0xf]  ;;  %v1346_v33 = vsel %vm2399_vm8, %v1344_v28, 0.0 }
 0x54e   : > { %v1429_v34 = vld [vmem:[#allocation2] sm:$0xf] }
 0x54f   : > { %v1452_v1 = vld [vmem:[#allocation2] sm:$0xf] }
 0x550   : > { %v1389_v43 = vld [vmem:[#allocation2] sm:$0xf] }
 0x551   : > { %v1472_v49 = vld [vmem:[#allocation2] sm:$0xf] }
 0x552   : > { %v1493_v25 = vld [vmem:[#allocation2 + $0x10] sm:$0xf]  ;;  %v1412_v52 = vld [vmem:[#allocation2] sm:$0xf] }
 0x553   : > { %v1431_v26 = vld [vmem:[#allocation2 + $0x10] sm:$0xf]  ;;  %1501 = vrot.lane.b32.xlu0 %v1493_v25, %s2214_s16  ;;  %v1492_v29 = vld [vmem:[#allocation2 + $0x8] sm:$0xf]  ;;  %v1350_v60 = vld [vmem:[#allocation2] sm:$0xf] }
 0x554   : > { %v1391_v27 = vld [vmem:[#allocation2 + $0x10] sm:$0xf]  ;;  %1439 = vrot.lane.b32.xlu2 %v1431_v26, %s2211_s10  ;;  %v1430_v31 = vld [vmem:[#allocation2 + $0x8] sm:$0xf]  ;;  %v2160_v17 = vpack.i.bf16 %v1492_v29, %v1491_v32  ;;  %v1369_v2 = vld [vmem:[#allocation2] sm:$0xf] }
 0x555   : > { %1399 = vrot.lane.b32.xlu1 %v1391_v27, %s2208_s26  ;;  %v1345_v10 = vld [vmem:[#allocation2 + $0x8] sm:$0xf]  ;;  %v1454_v30 = vld [vmem:[#allocation2 + $0x10] sm:$0xf]  ;;  %v2165_v36 = vpack.i.bf16 %v1430_v31, %v1429_v34 }
 0x556   : > { %v1347_v16 = vsel %vm2395_vm7, %v1345_v10, 0.0  ;;  %v1453_v39 = vld [vmem:[#allocation2 + $0x8] sm:$0xf]  ;;  %v1414_v42 = vld [vmem:[#allocation2 + $0x10] sm:$0xf] }
 0x557   : > { %v1348_v35 = vpack.c.bf16 %v1347_v16, %v1346_v33  ;;  %v1390_v40 = vld [vmem:[#allocation2 + $0x8] sm:$0xf]  ;;  %v2170_v44 = vpack.i.bf16 %v1453_v39, %v1452_v1  ;;  %v1416_v45 = vpack.c.bf16 %v1414_v42, %v1414_v42  ;;  %v1474_v46 = vld [vmem:[#allocation2 + $0x10] sm:$0xf] }
 0x558   : > { %v2175_v37 = vpack.i.bf16 %v1390_v40, %v1389_v43  ;;  %v1473_v47 = vld [vmem:[#allocation2 + $0x8] sm:$0xf]  ;;  %v1476_v48 = vpack.c.bf16 %v1474_v46, %v1474_v46  ;;  %v1352_v56 = vld [vmem:[#allocation2 + $0x10] sm:$0xf] }
 0x559   : > { %1349 = vst [vmem:[#allocation3] sm:$0x33] %v1348_v35  ;;  %v1475_v50 = vpack.c.bf16 %v1473_v47, %v1472_v49  ;;  %v1413_v38 = vld [vmem:[#allocation2 + $0x8] sm:$0xf]  ;;  %v1354_v61 = vpack.c.bf16 %v1352_v56, %v1352_v56  ;;  %v1371_v5 = vld [vmem:[#allocation2 + $0x10] sm:$0xf] }
 0x55a   : > { %v1480_v53 = vrot.slane %v1476_v48, 6  ;;  %v1415_v54 = vpack.c.bf16 %v1413_v38, %v1412_v52  ;;  %v1351_v58 = vld [vmem:[#allocation2 + $0x8] sm:$0xf] }
 0x55b   : > { %1462 = vrot.lane.b32.xlu0 %v1454_v30, %s2209_s30  ;;  %v1479_v55 = vrot.slane %v1475_v50, 6  ;;  %v1353_v62 = vpack.c.bf16 %v1351_v58, %v1350_v60  ;;  %v1370_v63 = vld [vmem:[#allocation2 + $0x8] sm:$0xf]  ;;  %v1358_v0 = vrot.slane %v1354_v61, 6 }
 0x55c   : > { %2161 = vrot.lane.b32.xlu2 %v2160_v17, %s2214_s16  ;;  %v2180_v4 = vpack.i.bf16 %v1370_v63, %v1369_v2 }
 0x55d   : > { %2166 = vrot.lane.b32.xlu1 %v2165_v36, %s2211_s10  ;;  %v1357_v3 = vrot.slane %v1353_v62, 6 }
 0x563   : > { %2176 = vrot.lane.b32.xlu0 %v2175_v37, %s2208_s26 }
 0x564   : > { %2171 = vrot.lane.b32.xlu2 %v2170_v44, %s2209_s30 }
 0x565   : > { %1421 = vrot.lane.b32.xlu1 %v1416_v45, %s2210_s9 }
 0x56b   : > { %1419 = vrot.lane.b32.xlu0 %v1415_v54, %s2210_s9  ;;  %v1517_v54 = vld [vmem:[%s2775_s7] sm:$0xf]  ;;  %s2215_s9 = smov 110  }
 0x56c   : > { %1483 = vrot.lane.b32.xlu2 %v1480_v53, %s2207_s25 }
 0x56d   : > { %1481 = vrot.lane.b32.xlu1 %v1479_v55, %s2207_s25 }
 0x573   : > { %1361 = vrot.lane.b32.xlu0 %v1358_v0, %s2213_s15 }
 0x574   : > { %1359 = vrot.lane.b32.xlu2 %v1357_v3, %s2213_s15 }
 0x575   : > { %2181 = vrot.lane.b32.xlu1 %v2180_v4, %s2212_s12 }
 0x57b   : > { %1520 = vperm.xlu0 %2185, %v1517_v54  }
 0x57c   : > { %1379 = vrot.lane.b32.xlu2 %v1371_v5, %s2212_s12 }
 0x5ae   : > { %v1440_v6 = vpop.permute.xlu2 %1439 }
 0x5b6   : > { %v2162_v51 = vpop.permute.xlu2 %2161 }
 0x5b7   : > { %v2164_v7 = vunpack.i.h.bf16 %v2162_v51  ;;  %v2163_v8 = vunpack.i.l.bf16 %v2162_v51 }
 0x5b9   : > { %v1503_v11 = vsel %vm873_vm5, %v2163_v8, %v2164_v7 }
 0x5ba   : > { %v1507_v19 = vsel %vm2476_vm15, %v1503_v11, 0.0 }
 0x5be   : > { %v2172_v12 = vpop.permute.xlu2 %2171 }
 0x5bf   : > { %v2174_v21 = vunpack.i.h.bf16 %v2172_v12  ;;  %v2173_v22 = vunpack.i.l.bf16 %v2172_v12 }
 0x5c1   : > { %v1464_v24 = vsel %vm797_vm11, %v2173_v22, %v2174_v21 }
 0x5c2   : > { %v1468_v28 = vsel %vm2399_vm8, %v1464_v24, 0.0 }
 0x5c5   : > { %v1502_v13 = vpop.permute.xlu0 %1501 }
 0x5c6   : > { %v1504_v14 = vsel %vm873_vm5, %v2164_v7, %v1502_v13  ;;  %v1484_v40 = vpop.permute.xlu2 %1483  ;;  %vm2795_vm5 = vcmask 769024  }
 0x5c7   : > { %v1400_v15 = vpop.permute.xlu1 %1399  ;;  %v1508_v9 = vsel %vm2481_vm1, %v1504_v14, 0.0  ;;  %v1486_v63 = vrot.slane %v1484_v40, 4 }
 0x5c8   : > { %v1509_v23 = vpack.c.bf16 %v1508_v9, %v1507_v19 }
 0x5ca   : > { %1510 = vst [vmem:[#allocation3 + $0x20] sm:$0x33] %v1509_v23 }
 0x5cd   : > { %v1463_v25 = vpop.permute.xlu0 %1462 }
 0x5ce   : > { %v1465_v26 = vsel %vm797_vm11, %v2174_v21, %v1463_v25  ;;  %v1360_v58 = vpop.permute.xlu2 %1359  ;;  %vm2798_vm11 = vcmask 1014784  }
 0x5cf   : > { %v2167_v27 = vpop.permute.xlu1 %2166  ;;  %v1469_v29 = vsel %vm2395_vm7, %v1465_v26, 0.0  ;;  %v1363_v5 = vrot.slane %v1360_v58, 4 }
 0x5d0   : > { %v2169_v31 = vunpack.i.h.bf16 %v2167_v27  ;;  %v2168_v10 = vunpack.i.l.bf16 %v2167_v27  ;;  %v1470_v32 = vpack.c.bf16 %v1469_v29, %v1468_v28 }
 0x5d1   : > { %v1516_v17 = vld [vmem:[#allocation3 + $0x20] sm:$0x33] }
 0x5d2   : > { %v1442_v33 = vsel %vm756_vm14, %v2169_v31, %v1440_v6  ;;  %v1441_v16 = vsel %vm756_vm14, %v2168_v10, %v2169_v31  ;;  %1471 = vst [vmem:[#allocation3 + $0x18] sm:$0x33] %v1470_v32  ;;  %v1536_v30 = vunpack.c.l.b16 %v1516_v17  ;;  %v1537_v36 = vunpack.c.h.b16 %v1516_v17  ;;  %vm2799_vm14 = vmmov %vm2798_vm11 }
 0x5d3   : > { %v1446_v34 = vsel %vm2481_vm1, %v1442_v33, 0.0  ;;  %v1445_v35 = vsel %vm2476_vm15, %v1441_v16, 0.0 }
 0x5d4   : > { %v1447_v39 = vpack.c.bf16 %v1446_v34, %v1445_v35  ;;  %v1542_v42 = vpack.c.b16 %v1536_v30, %v1536_v30  ;;  %v1543_v1 = vpack.c.b16 %v1537_v36, %v1537_v36 }
 0x5d5   : > { %v2177_v44 = vpop.permute.xlu0 %2176 }
 0x5d6   : > { %v1449_v43 = vrot.slane %v1447_v39, 6  ;;  %v2179_v45 = vunpack.i.h.bf16 %v2177_v44  ;;  %v2178_v46 = vunpack.i.l.bf16 %v2177_v44  ;;  %v1552_v47 = vsel %vm1292_vm6, %v1542_v42, 0  ;;  %v1380_v11 = vpop.permute.xlu2 %1379 }
 0x5d7   : > { %v1422_v37 = vpop.permute.xlu1 %1421  ;;  %v1555_v48 = vsel %vm1292_vm6, %v1543_v1, 0  ;;  %1562 = vmatpush.bf16.msra.mxu1 %v1552_v47 }
 0x5d8   : > { %1451 = vst [vmem:[#allocation3 + $0x10] sm:$0xcc] %v1449_v43  ;;  %1575 = vmatpush.bf16.msra.mxu3 %v1555_v48  ;;  %v1402_v49 = vsel %vm680_vm10, %v2179_v45, %v1400_v15  ;;  %v1401_v50 = vsel %vm680_vm10, %v2178_v46, %v2179_v45  ;;  %v1424_v60 = vrot.slane %v1422_v37, 4  ;;  %v307_v48 = vld [vmem:[%s2768_s0] ss:$2 sm:$0x3] }
 0x5d9   : > { %v1406_v38 = vsel %vm2395_vm7, %v1402_v49, 0.0  ;;  %v1405_v52 = vsel %vm2399_vm8, %v1401_v50, 0.0  ;;  %vm2796_vm7 = vcmask 506880   ;;  %vm2797_vm8 = vcmask 1031168  }
 0x5da   : > { %v1407_v53 = vpack.c.bf16 %v1406_v38, %v1405_v52 }
 0x5dc   : > { %v1409_v55 = vrot.slane %v1407_v53, 6 }
 0x5dd   : > { %v1420_v56 = vpop.permute.xlu0 %1419 }
 0x5de   : > { %1411 = vst [vmem:[#allocation3 + $0x8] sm:$0xcc] %v1409_v55  ;;  %v1423_v62 = vrot.slane %v1420_v56, 4 }
 0x5df   : > { %v1482_v61 = vpop.permute.xlu1 %1481 }
 0x5e0   : > { %v1485_v0 = vrot.slane %v1482_v61, 4  ;;  %v1425_v57 = vsel %vm351_vm4, %v1423_v62, %v1424_v60 }
 0x5e1   : > { %v1426_v2 = vsel %vm2795_vm5, %v1420_v56, %v1425_v57  ;;  %vm1669_vm5 = vcmask 146432  }
 0x5e2   : > { %v1487_v59 = vsel %vm351_vm4, %v1485_v0, %v1486_v63  ;;  %1428 = vst [vmem:[#allocation3 + $0x10] sm:$0x33] %v1426_v2 }
 0x5e3   : > { %v1488_v3 = vsel %vm2796_vm7, %v1482_v61, %v1487_v59  ;;  %vm316_vm7 = vcmp.lt.s32.totalorder %v307_v48, 2 }
 0x5e4   : > { %1490 = vst [vmem:[#allocation3 + $0x18] sm:$0xcc] %v1488_v3 }
 0x5e5   : > { %v1362_v4 = vpop.permute.xlu0 %1361 }
 0x5e6   : > { %v1364_v6 = vrot.slane %v1362_v4, 4 }
 0x5e7   : > { %v2182_v51 = vpop.permute.xlu1 %2181 }
 0x5e8   : > { %v2184_v7 = vunpack.i.h.bf16 %v2182_v51  ;;  %v2183_v8 = vunpack.i.l.bf16 %v2182_v51  ;;  %v1365_v12 = vsel %vm351_vm4, %v1363_v5, %v1364_v6 }
 0x5e9   : > { %v1366_v13 = vsel %vm2797_vm8, %v1360_v58, %v1365_v12  ;;  %v1988_v19 = vld [vmem:[#allocation3 + $0x10] sm:$0xf]  ;;  %v2024_v9 = vld [vmem:[#allocation3 + $0x14] sm:$0xf] }
 0x5ea   : > { %v1381_v14 = vsel %vm2798_vm11, %v2183_v8, %v2184_v7  ;;  %v1382_v15 = vsel %vm2799_vm14, %v2184_v7, %v1380_v11  ;;  %1368 = vst [vmem:[#allocation3] sm:$0xcc] %v1366_v13  ;;  %v1605_v13 = vsel %vm316_vm7, 1, %v2206_v41  ;;  %vm1778_vm7 = vcmask 269312  }
 0x5eb   : > { %v1385_v21 = vsel %vm2476_vm15, %v1381_v14, 0.0  ;;  %v1386_v22 = vsel %vm2481_vm1, %v1382_v15, 0.0  ;;  %v2025_v23 = vld [vmem:[#allocation3 + $0x14] sm:$0xf0]  ;;  %v1990_v26 = vld [vmem:[#allocation3 + $0x18] sm:$0xf0] }
 0x5ec   : > { %v1387_v24 = vpack.c.bf16 %v1386_v22, %v1385_v21  ;;  %v1989_v25 = vor.u32 %v2025_v23, %v1988_v19  ;;  %v1993_v27 = vor.u32 %v2024_v9, %v1990_v26  ;;  %vm317_vm15 = vcmp.ge.s32.totalorder %v307_v48, 15 }
 0x5ed   : > { %v1521_v20 = vpop.permute.xlu0 %1520  ;;  %v1633_v38 = vsel %vm317_vm15, 1, %v2206_v41  ;;  %vm1644_vm1 = vcmask 900096   ;;  %v312_v14 = vand.u32 1, %v307_v48  ;;  %v1606_v15 = vperm.slane %v1605_v13, 0 }
 0x5ee   : > { %1388 = vst [vmem:[#allocation3 + $0x8] sm:$0x33] %v1387_v24  ;;  %1563 = vmatpush.bf16.msra.mxu1 %v1989_v25  ;;  %1576 = vmatpush.bf16.msra.mxu3 %v1993_v27  ;;  %v1635_v52 = vperm.slane %v1633_v38, 1  ;;  %v1634_v62 = vperm.slane %v1633_v38, 0  ;;  %v1607_v19 = vperm.slane %v1605_v13, 1  ;;  %vm2802_vm15 = vcmask 1031168  }
 0x5ef   : > { %vm313_vm8 = vcmp.eq.s32.totalorder %v312_v14, 0  ;;  %vm1608_vm11 = vcmp.eq.s32.totalorder %v1606_v15, 1 }
 0x5f0   : > { %vm1637_vm6 = vcmp.eq.s32.totalorder %v1635_v52, 1  ;;  %vm1636_vm13 = vcmp.eq.s32.totalorder %v1634_v62, 1  ;;  %vm1609_vm14 = vcmp.eq.s32.totalorder %v1607_v19, 1  ;;  %v1677_v25 = vsel %vm313_vm8, 1, %v2206_v41 }
 0x5f1   : > { %v1980_v28 = vld [vmem:[#allocation3] sm:$0xf]  ;;  %v2022_v31 = vld [vmem:[#allocation3 + $0x4] sm:$0xf] }
 0x5f5   : > { %v2023_v29 = vld [vmem:[#allocation3 + $0x4] sm:$0xf0]  ;;  %v1982_v10 = vld [vmem:[#allocation3 + $0x8] sm:$0xf0] }
 0x5f6   : > { %v1981_v32 = vor.u32 %v2023_v29, %v1980_v28  ;;  %v1985_v33 = vor.u32 %v2022_v31, %v1982_v10  ;;  %v1678_v28 = vperm.slane %v1677_v25, 0  ;;  %v1679_v29 = vperm.slane %v1677_v25, 1 }
 0x5f8   : > { %1564 = vmatpush.bf16.msra.mxu1 %v1981_v32  ;;  %1577 = vmatpush.bf16.msra.mxu3 %v1985_v33 }
 0x5fb   : > { %1994 = vmatmul.msk.bf16.vlgmr.msra.gmra.mxu1 %vm1288_vm12, %v1511_v18  ;;  %1995 = vmatmul.msk.bf16.vlgmr.msra.gmra.mxu3 %vm1288_vm12, %v1511_v18  ;;  %vm2800_vm12 = vcmask 637952  }
 0x5fc   : > { %vm2801_vm9 = vmmov %vm2800_vm12 }
 0x678   : > { %v1566_v16 = vpop.f32.mrf.mxu1 }
 0x679   : > { %v1567_v17 = vadd.f32 %v1566_v16, %v1521_v20 }
 0x67b   : > { %v1583_v34 = vmax.f32 %v1567_v17, 0.0 }
 0x67d   : > { %v2677_v35 = vmin.f32 %v1583_v34, 1.0 }
 0x67e   : > { %v1579_v30 = vpop.f32.mrf.mxu3 }
 0x67f   : > { %v1580_v36 = vadd.f32 %v1579_v30, %v1521_v20  ;;  %1589 = vrot.lane.b32.xlu1 %v2677_v35, %s2196_s11  ;;  %v1603_v32 = vmul.f32 0.75, %v2677_v35 }
 0x680   : > { %v1568_v39 = vpop.f32.mrf.mxu1 }
 0x681   : > { %v1584_v40 = vmax.f32 %v1580_v36, 0.0 }
 0x683   : > { %v2681_v42 = vmin.f32 %v1584_v40, 1.0 }
 0x685   : > { %1591 = vrot.lane.b32.xlu2 %v2681_v42, %s2196_s11  ;;  %v1604_v33 = vmul.f32 0.75, %v2681_v42 }
 0x686   : > { %v1581_v1 = vpop.f32.mrf.mxu3 }
 0x6df   : > { %v1592_v43 = vpop.permute.xlu2 %1591 }
 0x6e0   : > { %1599 = vst.msk [vmem:[#allocation2 + $0x10] sm:$0xf] %vm342_vm3, %v1592_v43 }
 0x6e7   : > { %v1602_v44 = vld [vmem:[#allocation2 + $0x10] sm:$0xf] }
 0x6e8   : > { %1642 = vrot.lane.b32.xlu0 %v1602_v44, %s2215_s9  ;;  %v1632_v3 = vmul.f32 0.75, %v1602_v44 }
 0x6f0   : > { %1653 = vrot.lane.b32.xlu0 %v1602_v44, %s2198_s13 }
 0x6f1   : > { %v1590_v37 = vpop.permute.xlu1 %1589 }
 0x6f2   : > { %v1593_v45 = vsel %vm320_vm0, %v1590_v37, %v1592_v43  ;;  %1597 = vst.msk [vmem:[#allocation2] sm:$0xf] %vm339_vm2, %v1590_v37 }
 0x6f3   : > { %1598 = vst [vmem:[#allocation2 + $0x8] sm:$0xf] %v1593_v45  ;;  %v2186_v45 = vld [vmem:[%s2768_s0 + $0x1] ss:$2 sm:$0x3] }
 0x6f4   : > { %vm318_vm8 = vcmp.lt.s32.totalorder %v2186_v45, 2 }
 0x6f9   : > { %v1600_v46 = vld [vmem:[#allocation2] sm:$0xf] }
 0x6fa   : > { %1638 = vrot.lane.b32.xlu1 %v1600_v46, %s2215_s9  ;;  %v1601_v47 = vld [vmem:[#allocation2 + $0x8] sm:$0xf]  ;;  %1613 = vrot.lane.b32.xlu0 %v1600_v46, %s2213_s15  ;;  %v1630_v6 = vmul.f32 0.75, %v1600_v46 }
 0x6fb   : > { %1640 = vrot.lane.b32.xlu2 %v1601_v47, %s2215_s9  ;;  %v1631_v7 = vmul.f32 0.75, %v1601_v47 }
 0x702   : > { %1649 = vrot.lane.b32.xlu1 %v1600_v46, %s2198_s13 }
 0x703   : > { %1651 = vrot.lane.b32.xlu2 %v1601_v47, %s2198_s13  ;;  %s2216_s13 = smov 18  }
 0x755   : > { %v1641_v49 = vpop.permute.xlu2 %1640 }
 0x75a   : > { %v1643_v50 = vpop.permute.xlu0 %1642 }
 0x75b   : > { %v1646_v55 = vsel %vm1644_vm1, %v1641_v49, %v1643_v50 }
 0x75d   : > { %v1652_v53 = vpop.permute.xlu2 %1651 }
 0x762   : > { %v1654_v54 = vpop.permute.xlu0 %1653 }
 0x763   : > { %v1656_v56 = vsel %vm2800_vm12, %v1652_v53, %v1654_v54  ;;  %vm1680_vm12 = vcmp.eq.s32.totalorder %v1678_v28, 1 }
 0x764   : > { %v1660_v58 = vsel %vm1637_vm6, %v1646_v55, %v1656_v56  ;;  %vm2803_vm6 = vmmov %vm2802_vm15 }
 0x765   : > { %v1662_v60 = vmul.f32 0.25, %v1660_v58 }
 0x767   : > { %1667 = vrot.lane.b32.xlu2 %v1662_v60, %s2216_s13 }
 0x76c   : > { %v1639_v61 = vpop.permute.xlu1 %1638  ;;  %v1614_v21 = vpop.permute.xlu0 %1613 }
 0x76d   : > { %v1645_v0 = vsel %vm1644_vm1, %v1639_v61, %v1641_v49 }
 0x76f   : > { %1617 = vrot.lane.b32.xlu2 %v1602_v44, %s2213_s15 }
 0x774   : > { %v1650_v63 = vpop.permute.xlu1 %1649 }
 0x775   : > { %v1655_v57 = vsel %vm2801_vm9, %v1650_v63, %v1652_v53  ;;  %vm2804_vm9 = vcmask 760832  }
 0x776   : > { %v1659_v59 = vsel %vm1636_vm13, %v1645_v0, %v1655_v57  ;;  %vm1681_vm13 = vcmp.eq.s32.totalorder %v1679_v29, 1 }
 0x777   : > { %v1661_v2 = vmul.f32 0.25, %v1659_v59 }
 0x779   : > { %1665 = vrot.lane.b32.xlu1 %v1661_v2, %s2216_s13 }
 0x781   : > { %1615 = vrot.lane.b32.xlu1 %v1601_v47, %s2213_s15  ;;  %s2217_s15 = smov 95  }
 0x7c1   : > { %v1668_v4 = vpop.permute.xlu2 %1667 }
 0x7c2   : > { %v1676_v5 = vadd.f32 %v1668_v4, %v1632_v3 }
 0x7c4   : > { %1689 = vrot.lane.b32.xlu2 %v1676_v5, %s2215_s9 }
 0x7c9   : > { %v1618_v22 = vpop.permute.xlu2 %1617 }
 0x7eb   : > { %v1666_v51 = vpop.permute.xlu1 %1665 }
 0x7ec   : > { %v1670_v8 = vsel %vm1669_vm5, %v1666_v51, %v1668_v4  ;;  %v1674_v11 = vadd.f32 %v1666_v51, %v1630_v6  ;;  %vm2805_vm5 = vmmov %vm2804_vm9 }
 0x7ed   : > { %v1675_v12 = vadd.f32 %v1670_v8, %v1631_v7  ;;  %v1715_v8 = vsel %vm318_vm8, 1, %v2206_v41 }
 0x7ee   : > { %1685 = vrot.lane.b32.xlu0 %v1674_v11, %s2215_s9  ;;  %v314_v11 = vand.u32 1, %v2186_v45  ;;  %v1716_v13 = vperm.slane %v1715_v8, 0 }
 0x7ef   : > { %1687 = vrot.lane.b32.xlu1 %v1675_v12, %s2215_s9  ;;  %v1717_v12 = vperm.slane %v1715_v8, 1 }
 0x7f3   : > { %v1616_v9 = vpop.permute.xlu1 %1615 }
 0x7f4   : > { %v1620_v23 = vsel %vm2802_vm15, %v1614_v21, %v1616_v9  ;;  %v1621_v24 = vsel %vm2803_vm6, %v1616_v9, %v1618_v22  ;;  %vm1718_vm15 = vcmp.eq.s32.totalorder %v1716_v13, 1 }
 0x7f5   : > { %v1624_v26 = vsel %vm1608_vm11, %v2677_v35, %v1620_v23  ;;  %v1625_v27 = vsel %vm1609_vm14, %v2681_v42, %v1621_v24  ;;  %vm315_vm11 = vcmp.eq.s32.totalorder %v314_v11, 0  ;;  %vm1719_vm14 = vcmp.eq.s32.totalorder %v1717_v12, 1 }
 0x7f6   : > { %v1626_v31 = vmul.f32 0.25, %v1624_v26  ;;  %v1627_v10 = vmul.f32 0.25, %v1625_v27  ;;  %v1786_v22 = vsel %vm315_vm11, 1, %v2206_v41 }
 0x7f7   : > { %v1787_v25 = vperm.slane %v1786_v22, 0  ;;  %v1788_v26 = vperm.slane %v1786_v22, 1 }
 0x7f8   : > { %v1628_v17 = vadd.f32 %v1626_v31, %v1603_v32  ;;  %v1629_v34 = vadd.f32 %v1627_v10, %v1604_v33 }
 0x7f9   : > { %vm1789_vm6 = vcmp.eq.s32.totalorder %v1787_v25, 1 }
 0x81e   : > { %v1690_v20 = vpop.permute.xlu2 %1689 }
 0x860   : > { %v1686_v18 = vpop.permute.xlu0 %1685 }
 0x861   : > { %v1688_v16 = vpop.permute.xlu1 %1687 }
 0x862   : > { %v1691_v30 = vsel %vm1644_vm1, %v1686_v18, %v1688_v16  ;;  %v1692_v36 = vsel %vm1644_vm1, %v1688_v16, %v1690_v20 }
 0x863   : > { %v2718_v39 = vsel %vm1680_vm12, %v1628_v17, %v1691_v30  ;;  %v2720_v40 = vsel %vm1681_vm13, %v1629_v34, %v1692_v36  ;;  %vm1790_vm12 = vcmp.eq.s32.totalorder %v1788_v26, 1  ;;  %v1810_v17 = vld.sshfl [vmem:[#allocation1 + $0x8] sm:$0xff pattern:$0x75316420] }
 0x864   : > { %1699 = vrot.lane.b32.xlu0 %v2718_v39, %s2196_s11  ;;  %1701 = vrot.lane.b32.xlu1 %v2720_v40, %s2196_s11  ;;  %v1713_v29 = vmul.f32 0.75, %v2718_v39  ;;  %v1714_v31 = vmul.f32 0.75, %v2720_v40 }
 0x8d6   : > { %v1700_v35 = vpop.permute.xlu0 %1699  ;;  %v1702_v42 = vpop.permute.xlu1 %1701 }
 0x8d7   : > { %1707 = vst.msk [vmem:[#allocation2] sm:$0xf] %vm339_vm2, %v1700_v35  ;;  %v1703_v1 = vsel %vm320_vm0, %v1700_v35, %v1702_v42  ;;  %vm319_vm0 = vcmp.ge.s32.totalorder %v2186_v45, 15  ;;  %vm1753_vm2 = vcmask 777216  }
 0x8d8   : > { %1708 = vst [vmem:[#allocation2 + $0x8] sm:$0xf] %v1703_v1  ;;  %v1742_v48 = vsel %vm319_vm0, 1, %v2206_v41  ;;  %v1809_v35 = vld.sshfl [vmem:[#allocation1] sm:$0xff pattern:$0x75316420] }
 0x8d9   : > { %1709 = vst.msk [vmem:[#allocation2 + $0x10] sm:$0xf] %vm342_vm3, %v1702_v42  ;;  %v1743_v50 = vperm.slane %v1742_v48, 0  ;;  %v1744_v38 = vperm.slane %v1742_v48, 1 }
 0x8db   : > { %vm1745_vm3 = vcmp.eq.s32.totalorder %v1743_v50, 1  ;;  %vm1746_vm1 = vcmp.eq.s32.totalorder %v1744_v38, 1 }
 0x8de   : > { %v1710_v43 = vld [vmem:[#allocation2] sm:$0xf] }
 0x8df   : > { %1747 = vrot.lane.b32.xlu2 %v1710_v43, %s2217_s15  ;;  %v1711_v44 = vld [vmem:[#allocation2 + $0x8] sm:$0xf]  ;;  %v1739_v57 = vmul.f32 0.75, %v1710_v43 }
 0x8e0   : > { %v1712_v37 = vld [vmem:[#allocation2 + $0x10] sm:$0xf]  ;;  %1749 = vrot.lane.b32.xlu0 %v1711_v44, %s2217_s15  ;;  %v1740_v5 = vmul.f32 0.75, %v1711_v44 }
 0x8e1   : > { %1751 = vrot.lane.b32.xlu1 %v1712_v37, %s2217_s15  ;;  %v1741_v3 = vmul.f32 0.75, %v1712_v37 }
 0x8e7   : > { %1758 = vrot.lane.b32.xlu2 %v1710_v43, %s2199_s14 }
 0x8e8   : > { %1760 = vrot.lane.b32.xlu0 %v1711_v44, %s2199_s14 }
 0x8e9   : > { %1762 = vrot.lane.b32.xlu1 %v1712_v37, %s2199_s14  ;;  %s2218_s14 = smov 33  }
 0x8f1   : > { %1725 = vrot.lane.b32.xlu1 %v1711_v44, %s2208_s26 }
 0x939   : > { %v1748_v46 = vpop.permute.xlu2 %1747 }
 0x941   : > { %v1759_v52 = vpop.permute.xlu2 %1758 }
 0x952   : > { %v1750_v47 = vpop.permute.xlu0 %1749 }
 0x953   : > { %v1752_v49 = vpop.permute.xlu1 %1751  ;;  %v1754_v54 = vsel %vm1753_vm2, %v1748_v46, %v1750_v47 }
 0x954   : > { %v1755_v58 = vsel %vm1753_vm2, %v1750_v47, %v1752_v49 }
 0x95a   : > { %v1761_v53 = vpop.permute.xlu0 %1760 }
 0x95b   : > { %v1763_v55 = vpop.permute.xlu1 %1762  ;;  %v1764_v56 = vsel %vm2804_vm9, %v1759_v52, %v1761_v53 }
 0x95c   : > { %v1765_v60 = vsel %vm2805_vm5, %v1761_v53, %v1763_v55  ;;  %v1768_v61 = vsel %vm1745_vm3, %v1754_v54, %v1764_v56 }
 0x95d   : > { %v1769_v62 = vsel %vm1746_vm1, %v1755_v58, %v1765_v60  ;;  %v1770_v63 = vmul.f32 0.25, %v1768_v61 }
 0x95e   : > { %v1771_v0 = vmul.f32 0.25, %v1769_v62 }
 0x95f   : > { %1774 = vrot.lane.b32.xlu2 %v1770_v63, %s2218_s14 }
 0x960   : > { %1776 = vrot.lane.b32.xlu0 %v1771_v0, %s2218_s14 }
 0x963   : > { %v1726_v19 = vpop.permute.xlu1 %1725 }
 0x967   : > { %1727 = vrot.lane.b32.xlu2 %v1712_v37, %s2208_s26 }
 0x968   : > { %1723 = vrot.lane.b32.xlu0 %v1710_v43, %s2208_s26 }
 0x9b9   : > { %v1775_v59 = vpop.permute.xlu2 %1774 }
 0x9ba   : > { %v1783_v2 = vadd.f32 %v1775_v59, %v1739_v57 }
 0x9bc   : > { %1794 = vrot.lane.b32.xlu0 %v1783_v2, %s2217_s15 }
 0x9c1   : > { %v1728_v14 = vpop.permute.xlu2 %1727 }
 0x9c2   : > { %v1730_v9 = vsel %vm680_vm10, %v1726_v19, %v1728_v14 }
 0x9c3   : > { %v1734_v23 = vsel %vm1719_vm14, %v2720_v40, %v1730_v9 }
 0x9c4   : > { %v1736_v27 = vmul.f32 0.25, %v1734_v23 }
 0x9c6   : > { %v1738_v32 = vadd.f32 %v1736_v27, %v1714_v31 }
 0x9d2   : > { %v1777_v4 = vpop.permute.xlu0 %1776 }
 0x9d3   : > { %v1779_v6 = vsel %vm1778_vm7, %v1775_v59, %v1777_v4  ;;  %v1785_v51 = vadd.f32 %v1777_v4, %v1741_v3 }
 0x9d4   : > { %v1784_v7 = vadd.f32 %v1779_v6, %v1740_v5 }
 0x9d5   : > { %1798 = vrot.lane.b32.xlu2 %v1785_v51, %s2217_s15 }
 0x9d6   : > { %1796 = vrot.lane.b32.xlu1 %v1784_v7, %s2217_s15 }
 0x9da   : > { %v1724_v15 = vpop.permute.xlu0 %1723 }
 0x9db   : > { %v1729_v21 = vsel %vm680_vm10, %v1724_v15, %v1726_v19 }
 0x9dc   : > { %v1733_v24 = vsel %vm1718_vm15, %v2718_v39, %v1729_v21 }
 0x9dd   : > { %v1735_v28 = vmul.f32 0.25, %v1733_v24 }
 0x9df   : > { %v1737_v33 = vadd.f32 %v1735_v28, %v1713_v29 }
 0xa2e   : > { %v1795_v10 = vpop.permute.xlu0 %1794 }
 0xa2f   : > { %v1799_v18 = vpop.permute.xlu2 %1798 }
 0xa48   : > { %v1797_v41 = vpop.permute.xlu1 %1796 }
 0xa49   : > { %v1800_v20 = vsel %vm1753_vm2, %v1795_v10, %v1797_v41  ;;  %v1801_v16 = vsel %vm1753_vm2, %v1797_v41, %v1799_v18 }
 0xa4a   : > { %v1804_v34 = vsel %vm1789_vm6, %v1737_v33, %v1800_v20  ;;  %v1805_v30 = vsel %vm1790_vm12, %v1738_v32, %v1801_v16 }
 0xa4b   : > { %v1814_v36 = vmul.f32 %v1810_v17, %v1805_v30  ;;  %v1813_v39 = vmul.f32 %v1809_v35, %v1804_v34 }
 0xa4d   : > { %v1817_v40 = vrot.slane %v1814_v36, 4 }
 0xa4f   : > { %v1818_v42 = vsel %vm351_vm4, %v1813_v39, %v1817_v40 }
 0xa50   : > { %1820 = vst [vmem:[%s305_s18] sm:$0xff] %v1818_v42 }
 0xa51 PF: > { %s18_s27 = sadd.s32 1, %s2193_s27  }
 0xa52   : > { %p15_p4 = scmp.ge.s32.totalorder %s18_s27, 4  }
 0xa54   :  { %17 = sbr.rel (!%p15_p4) target bundleno = 1 (0x1), region = 84 }

// kernel: mfa_forward.1
= control target key start
LH: loop header
LB: loop body
LE: loop exit
PB: predicated region body
PF: predicated region fallthrough
CT: control target
= control target key end

     0   :  { %s2264_s27 = smov 0   ;;  %s2768_s0 = inlined_call_operand.vmem [shape: s32[2,256], index: 0, kind: input, shape index: {}]   ;;  %s2769_s1 = inlined_call_operand.vmem [shape: f32[2,4,256], index: 1, kind: input, shape index: {}]   ;;  %s2770_s2 = inlined_call_operand.vmem [shape: bf16[4,144], index: 2, kind: input, shape index: {}]   ;;  %s2771_s3 = inlined_call_operand.vmem [shape: f32[4,1], index: 3, kind: input, shape index: {}]   ;;  %s2772_s4 = inlined_call_operand.vmem [shape: bf16[4,36], index: 4, kind: input, shape index: {}]   ;;  %s2773_s5 = inlined_call_operand.vmem [shape: f32[4,1], index: 5, kind: input, shape index: {}]   ;;  %s2774_s6 = inlined_call_operand.vmem [shape: bf16[4,36], index: 6, kind: input, shape index: {}]   ;;  %s2775_s7 = inlined_call_operand.vmem [shape: f32[4,1], index: 7, kind: input, shape index: {}]   ;;  %s2776_s8 = inlined_call_operand.vmem [shape: f32[2,4,256], index: 8, kind: output, shape index: {}]  }
   0x1 LB: > { %s1876_s28 = sadd.s32 4294967295, %s2193_s27   ;;  %p1880_p0 = scmp.ge.s32.totalorder %s2193_s27, 1  ;;  %s2193_s27 = sphi %s2264_s27, %s18_s27  }
   0x2   : > { %p262_p1 = scmp.lt.s32.totalorder %s2193_s27, 3 }
   0x4   : > { %p263_p2 = pnand %p1880_p0, %p262_p1 }
   0x5   : > { %p296_p3 = scmp.lt.s32.totalorder (!%p263_p2), %s1876_s28, 1  ;;  %s2196_s11 = smov (!%p263_p2), 34  }
   0x6   : > { %266 = sbr.rel (%p263_p2) target bundleno = 2641 (0xa51), region = 52  ;;  %s2197_s12 = smov (!%p263_p2), 35  }
   0x7   : > { %s2198_s13 = smov (!%p263_p2), 78   ;;  %s2199_s14 = smov (!%p263_p2), 93  }
   0x8   : > { %s2200_s15 = smov (!%p263_p2), 112   ;;  %s2201_s16 = smov (!%p263_p2), 77  }
   0x9   : > { %s2202_s17 = smov (!%p263_p2), 127   ;;  %s2203_s18 = smov (!%p263_p2), 113  }
   0xa   : > { %s2204_s19 = smov (!%p263_p2), 15   ;;  %s2205_s20 = smov (!%p263_p2), 50  }
   0xb   : > { %vm320_vm0 = vcmask 277504   ;;  %v2195_v0 = vmov 0.0   ;;  %s2807_s28 = smov (!%p296_p3, %s1876_s28), 1  ;;  %vm323_vm1 = vcmask 556304   ;;  %vm339_vm2 = vcmask 1043728   ;;  %s2207_s25 = smov 62  }
   0xc   : > { %321 = vst.msk [vmem:[#allocation2] sm:$0xff] %vm320_vm0, %v2195_v0  ;;  %s1998_s29 = sshll.u32 %s2807_s28, 3  ;;  %vm342_vm3 = vcmask 273408   ;;  %vm351_vm4 = vcmask 1043456   ;;  %vm2778_vm5 = vcmask 637952   ;;  %vm2777_vm6 = vcmask 760832  }
   0xd   : > { %322 = vst.msk [vmem:[#allocation2 + $0x18] sm:$0xff] %vm320_vm0, %v2195_v0  ;;  %s300_s10 = scalar_lea.vmem %s2769_s1, %s1998_s29  ;;  %vm382_vm7 = vcmask 629760   ;;  %vm393_vm8 = vcmask 916480   ;;  %vm441_vm9 = vcmask 1039360   ;;  %vm423_vm10 = vcmask 924672   ;;  %s2208_s26 = smov 96  }
   0xe   : > { %v2282_v1 = vld [vmem:[%s300_s10] sm:$0xff]  ;;  %324 = vst.msk [vmem:[#allocation2 + $0x10] sm:$0xff] %vm323_vm1, %v2195_v0  ;;  %vm457_vm11 = vcmask 408576   ;;  %vm409_vm12 = vcmask 285696   ;;  %vm471_vm13 = vcmask 121856   ;;  %vm522_vm14 = vcmask 277508  }
   0xf   : > { %328 = vst [vmem:[#allocation1] ss:$2 sm:$0xff] %v2282_v1  ;;  %vm519_vm15 = vcmask 1047828   ;;  %s2209_s30 = smov 64   ;;  %s2210_s9 = smov 94  }
  0x10   : > { %325 = vst.msk [vmem:[#allocation2 + $0x28] sm:$0xff] %vm323_vm1, %v2195_v0  ;;  %s2211_s10 = smov 92  }
  0x16   : > { %v329_v2 = vld.sshfl [vmem:[#allocation1] sm:$0xff pattern:$0x75316420]  ;;  %v330_v3 = vld.sshfl [vmem:[#allocation1 + $0x8] sm:$0xff pattern:$0x75316420] }
  0x17   : > { %331 = vrot.lane.b32.xlu0 %v329_v2, %s2196_s11  ;;  %402 = vst [vmem:[#allocation1] ss:$2 sm:$0xff] %v2282_v1 }
  0x1e   : > { %v403_v4 = vld.sshfl [vmem:[#allocation1] sm:$0xff pattern:$0x75316420]  ;;  %v404_v5 = vld.sshfl [vmem:[#allocation1 + $0x8] sm:$0xff pattern:$0x75316420] }
  0x1f   : > { %333 = vrot.lane.b32.xlu0 %v330_v3, %s2196_s11  ;;  %405 = vrot.lane.b32.xlu2 %v403_v4, %s2197_s12  ;;  %450 = vst [vmem:[#allocation1] ss:$2 sm:$0xff] %v2282_v1 }
  0x26   : > { %v452_v14 = vld.sshfl [vmem:[#allocation1 + $0x8] sm:$0xff pattern:$0x75316420]  ;;  %v451_v15 = vld.sshfl [vmem:[#allocation1] sm:$0xff pattern:$0x75316420] }
  0x27   : > { %407 = vrot.lane.b32.xlu0 %v404_v5, %s2197_s12  ;;  %s2212_s12 = smov 124  }
  0x79   : > { %v2326_v16 = vpop.permute.xlu2 %405 }
  0x89   : > { %v332_v6 = vpop.permute.xlu0 %331 }
  0x8a   : > { %340 = vst.msk [vmem:[#allocation2] sm:$0xf] %vm339_vm2, %v332_v6 }
  0x91   : > { %v334_v7 = vpop.permute.xlu0 %333  ;;  %v2303_v12 = vld [vmem:[#allocation2] sm:$0xf] }
  0x92   : > { %v335_v8 = vsel %vm320_vm0, %v332_v6, %v334_v7  ;;  %343 = vst.msk [vmem:[#allocation2 + $0x10] sm:$0xf] %vm342_vm3, %v334_v7 }
  0x93   : > { %341 = vst [vmem:[#allocation2 + $0x8] sm:$0xf] %v335_v8 }
  0x99   : > { %v2292_v9 = vld [vmem:[#allocation2 + $0x10] sm:$0xf]  ;;  %v2328_v17 = vpop.permute.xlu0 %407 }
  0x9a   : > { %v2294_v10 = vld [vmem:[#allocation2 + $0x8] sm:$0xf]  ;;  %355 = vrot.lane.b32.xlu1 %v2292_v9, %s2198_s13  ;;  %366 = vrot.lane.b32.xlu2 %v2292_v9, %s2199_s14 }
  0x9b   : > { %389 = vrot.lane.b32.xlu0 %v2294_v10, %s2200_s15  ;;  %v350_v11 = vrot.slane %v2294_v10, 4 }
  0x9d   : > { %v352_v13 = vsel %vm351_vm4, %v2303_v12, %v350_v11 }
  0xa2   : > { %377 = vrot.lane.b32.xlu1 %v2292_v9, %s2201_s16  ;;  %387 = vrot.lane.b32.xlu2 %v2303_v12, %s2200_s15 }
  0xa3   : > { %375 = vrot.lane.b32.xlu0 %v352_v13, %s2201_s16  ;;  %s2214_s16 = smov 60  }
  0xaa   : > { %391 = vrot.lane.b32.xlu1 %v2292_v9, %s2200_s15  ;;  %437 = vrot.lane.b32.xlu2 %v2294_v10, %s2202_s17 }
  0xab   : > { %439 = vrot.lane.b32.xlu0 %v2292_v9, %s2202_s17 }
  0xb2   : > { %435 = vrot.lane.b32.xlu1 %v2303_v12, %s2202_s17  ;;  %364 = vrot.lane.b32.xlu2 %v352_v13, %s2199_s14 }
  0xb3   : > { %421 = vrot.lane.b32.xlu0 %v2292_v9, %s2203_s18 }
  0xba   : > { %353 = vrot.lane.b32.xlu1 %v352_v13, %s2198_s13  ;;  %419 = vrot.lane.b32.xlu2 %v2294_v10, %s2203_s18 }
  0xbb   : > { %465 = vrot.lane.b32.xlu0 %v2303_v12, %s2204_s19 }
  0xc2   : > { %417 = vrot.lane.b32.xlu1 %v2303_v12, %s2203_s18  ;;  %455 = vrot.lane.b32.xlu2 %v452_v14, %s2205_s20  ;;  %s305_s18 = scalar_lea.vmem %s2776_s8, %s1998_s29 }
  0xca   : > { %469 = vrot.lane.b32.xlu2 %v2292_v9, %s2204_s19  ;;  %453 = vrot.lane.b32.xlu1 %v451_v15, %s2205_s20 }
  0xd2   : > { %467 = vrot.lane.b32.xlu1 %v2294_v10, %s2204_s19 }
  0xf4   : > { %v367_v18 = vpop.permute.xlu2 %366 }
  0xf5   : > { %v369_v39 = vrot.slane %v367_v18, 4 }
  0xfc   : > { %v388_v21 = vpop.permute.xlu2 %387 }
 0x104   : > { %v438_v24 = vpop.permute.xlu2 %437 }
 0x10c   : > { %v356_v19 = vpop.permute.xlu1 %355  ;;  %v365_v31 = vpop.permute.xlu2 %364 }
 0x10d   : > { %v390_v20 = vpop.permute.xlu0 %389  ;;  %v368_v35 = vrot.slane %v365_v31, 4  ;;  %v358_v40 = vrot.slane %v356_v19, 4 }
 0x10e   : > { %v394_v54 = vsel %vm393_vm8, %v388_v21, %v390_v20 }
 0x10f   : > { %v370_v42 = vsel %vm351_vm4, %v368_v35, %v369_v39  ;;  %v399_v58 = vadd.f32 %v394_v54, %v2303_v12 }
 0x110   : > { %v372_v48 = vsel %vm2777_vm6, %v365_v31, %v370_v42  ;;  %vm2780_vm6 = vcmask 1031168  }
 0x111   : > { %v414_v2 = vsub.f32 %v399_v58, %v2326_v16 }
 0x114   : > { %v378_v22 = vpop.permute.xlu1 %377  ;;  %v420_v45 = vpop.permute.xlu2 %419 }
 0x115   : > { %v376_v23 = vpop.permute.xlu0 %375  ;;  %v380_v36 = vrot.slane %v378_v22, 4 }
 0x116   : > { %v379_v37 = vrot.slane %v376_v23, 4 }
 0x118   : > { %v381_v43 = vsel %vm351_vm4, %v379_v37, %v380_v36 }
 0x119   : > { %v383_v49 = vsel %vm382_vm7, %v376_v23, %v381_v43 }
 0x11a   : > { %v483_v52 = vadd.f32 %v383_v49, %v2282_v1 }
 0x11c   : > { %v392_v25 = vpop.permute.xlu1 %391  ;;  %v456_v59 = vpop.permute.xlu2 %455 }
 0x11d   : > { %v440_v26 = vpop.permute.xlu0 %439  ;;  %v401_v27 = vadd.f32 %v392_v25, %v2292_v9  ;;  %v395_v4 = vsel %vm393_vm8, %v390_v20, %v392_v25  ;;  %v410_v20 = vsel %vm409_vm12, %v2326_v16, %v2328_v17  ;;  %vm2782_vm12 = vcmask 769024  }
 0x11e   : > { %v443_v5 = vsel %vm441_vm9, %v438_v24, %v440_v26  ;;  %v449_v8 = vadd.f32 %v440_v26, %v2292_v9  ;;  %v400_v18 = vadd.f32 %v395_v4, %v2294_v10 }
 0x11f   : > { %v416_v29 = vsub.f32 %v401_v27, %v2328_v17  ;;  %v448_v19 = vadd.f32 %v443_v5, %v2294_v10  ;;  %v890_v10 = vld [vmem:[%s2770_s2] sm:$0xf] }
 0x120   : > { %v464_v9 = vsub.f32 %v449_v8, %v456_v59 }
 0x124   : > { %v436_v28 = vpop.permute.xlu1 %435  ;;  %v470_v21 = vpop.permute.xlu2 %469 }
 0x125   : > { %v2332_v30 = vpop.permute.xlu0 %421  ;;  %v442_v57 = vsel %vm441_vm9, %v436_v28, %v438_v24  ;;  %v415_v28 = vsub.f32 %v400_v18, %v410_v20 }
 0x126   : > { %v431_v32 = vsub.f32 %v416_v29, %v2332_v30  ;;  %v447_v60 = vadd.f32 %v442_v57, %v2303_v12  ;;  %v425_v24 = vsel %vm423_vm10, %v420_v45, %v2332_v30 }
 0x128   : > { %v434_v33 = vmul.f32 0.5, %v431_v32  ;;  %v430_v32 = vsub.f32 %v415_v28, %v425_v24 }
 0x12a   : > { %v507_v34 = vrot.slane %v434_v33, 4  ;;  %v433_v30 = vmul.f32 0.5, %v430_v32 }
 0x12c   : > { %v354_v38 = vpop.permute.xlu1 %353  ;;  %512 = vrot.lane.b32.xlu1 %v507_v34, %s2202_s17  ;;  %v506_v36 = vrot.slane %v433_v30, 4 }
 0x12d   : > { %v357_v41 = vrot.slane %v354_v38, 4  ;;  %v466_v0 = vpop.permute.xlu0 %465 }
 0x12f   : > { %v359_v44 = vsel %vm351_vm4, %v357_v41, %v358_v40  ;;  %v2206_v41 = vmov 0  }
 0x130   : > { %v361_v46 = vsel %vm2778_vm5, %v354_v38, %v359_v44  ;;  %2133 = vset.pattern.permute.xlu1 %v2206_v41  ;;  %2159 = vset.pattern.permute.xlu2 %v2206_v41  ;;  %vm873_vm5 = vcmask 490496  }
 0x131   : > { %v363_v47 = vadd.f32 %v361_v46, %v2282_v1  ;;  %v484_v56 = vsub.f32 %v483_v52, %v361_v46  ;;  %2185 = vset.pattern.permute.xlu0 %v2206_v41 }
 0x133   : > { %v374_v50 = vadd.f32 %v372_v48, %v363_v47  ;;  %v485_v61 = vsub.f32 %v484_v56, %v372_v48 }
 0x134   : > { %v418_v51 = vpop.permute.xlu1 %417 }
 0x135   : > { %v385_v53 = vadd.f32 %v383_v49, %v374_v50  ;;  %v424_v3 = vsel %vm423_vm10, %v418_v51, %v420_v45  ;;  %v486_v6 = vmul.f32 0.5, %v485_v61  ;;  %v2389_v51 = vld [vmem:[%s2768_s0 + $0x1] ss:$2 sm:$0x3]  ;;  %vm680_vm10 = vcmask 785408  }
 0x136   : > { %v429_v13 = vsub.f32 %v414_v2, %v424_v3  ;;  %vm310_vm1 = vcmp.ge.s32.totalorder %v2389_v51, 2 }
 0x137   : > { %v386_v55 = vmul.f32 0.5, %v385_v53  ;;  %v561_v54 = vsel %vm310_vm1, 1, %v2206_v41 }
 0x138   : > { %v432_v25 = vmul.f32 0.5, %v429_v13  ;;  %v562_v56 = vperm.slane %v561_v54, 0 }
 0x139   : > { %488 = vst [vmem:[#allocation1] ss:$2 sm:$0xff] %v386_v55  ;;  %v563_v55 = vperm.slane %v561_v54, 1 }
 0x13a   : > { %v505_v34 = vrot.slane %v432_v25, 4 }
 0x13b   : > { %vm2395_vm7 = vcmp.eq.s32.totalorder %v563_v55, 1 }
 0x13c   : > { %v454_v62 = vpop.permute.xlu1 %453 }
 0x13d   : > { %v462_v63 = vsub.f32 %v447_v60, %v454_v62  ;;  %v458_v14 = vsel %vm457_vm11, %v454_v62, %v456_v59  ;;  %vm797_vm11 = vcmask 523264  }
 0x13e   : > { %v463_v22 = vsub.f32 %v448_v19, %v458_v14 }
 0x13f   : > { %v477_v7 = vsub.f32 %v462_v63, %v466_v0 }
 0x140   : > { %v490_v11 = vld.sshfl [vmem:[#allocation1 + $0x8] sm:$0xff pattern:$0x75316420]  ;;  %v489_v12 = vld.sshfl [vmem:[#allocation1] sm:$0xff pattern:$0x75316420] }
 0x141   : > { %493 = vrot.lane.b32.xlu1 %v490_v11, %s2196_s11  ;;  %543 = vst [vmem:[#allocation1 + $0x1] ss:$2 sm:$0xff] %v486_v6  ;;  %v480_v15 = vmul.f32 0.5, %v477_v7 }
 0x143   : > { %527 = vrot.lane.b32.xlu2 %v480_v15, %s2200_s15 }
 0x144   : > { %v468_v23 = vpop.permute.xlu1 %467 }
 0x145   : > { %v472_v26 = vsel %vm471_vm13, %v466_v0, %v468_v23  ;;  %v473_v27 = vsel %vm471_vm13, %v468_v23, %v470_v21  ;;  %vm311_vm13 = vcmp.lt.s32.totalorder %v2389_v51, 14 }
 0x146   : > { %v478_v29 = vsub.f32 %v463_v22, %v472_v26  ;;  %v479_v31 = vsub.f32 %v464_v9, %v473_v27 }
 0x148   : > { %v481_v33 = vmul.f32 0.5, %v478_v29  ;;  %v482_v16 = vmul.f32 0.5, %v479_v31  ;;  %v544_v17 = vld.sshfl [vmem:[#allocation1] sm:$0xff pattern:$0x75316420] }
 0x149   : > { %v545_v35 = vld.sshfl [vmem:[#allocation1 + $0x8] sm:$0xff pattern:$0x75316420] }
 0x14a   : > { %529 = vrot.lane.b32.xlu0 %v481_v33, %s2200_s15  ;;  %531 = vrot.lane.b32.xlu1 %v482_v16, %s2200_s15  ;;  %916 = vst [vmem:[#allocation1] ss:$4 sm:$0xff] %v890_v10  ;;  %s2213_s15 = smov 126  }
 0x14b   : > { %508 = vrot.lane.b32.xlu2 %v505_v34, %s2202_s17 }
 0x151   : > { %v2366_v37 = vld.sshfl [vmem:[#allocation1] sm:$0xff pattern:$0x73625140]  ;;  %v2368_v38 = vld.sshfl [vmem:[#allocation1 + $0x8] sm:$0xff pattern:$0x73625140] }
 0x152   : > { %510 = vrot.lane.b32.xlu0 %v506_v36, %s2202_s17  ;;  %1808 = vst [vmem:[#allocation1] ss:$2 sm:$0xff] %v2282_v1 }
 0x153   : > { %546 = vrot.lane.b32.xlu2 %v544_v17, %s2196_s11 }
 0x15a   : > { %491 = vrot.lane.b32.xlu0 %v489_v12, %s2196_s11 }
 0x162   : > { %548 = vrot.lane.b32.xlu0 %v545_v35, %s2196_s11 }
 0x19d   : > { %v528_v39 = vpop.permute.xlu2 %527 }
 0x19e   : > { %v513_v40 = vpop.permute.xlu1 %512 }
 0x19f   : > { %523 = vst.msk [vmem:[#allocation2 + $0x10] sm:$0xf0] %vm522_vm14, %v513_v40 }
 0x1a5   : > { %v509_v42 = vpop.permute.xlu2 %508 }
 0x1ad   : > { %v547_v1 = vpop.permute.xlu2 %546 }
 0x1ae   : > { %554 = vst.msk [vmem:[#allocation2 + $0x18] sm:$0xf0] %vm519_vm15, %v547_v1 }
 0x1b3   : > { %v494_v43 = vpop.permute.xlu1 %493 }
 0x1b4   : > { %501 = vst.msk [vmem:[#allocation2 + $0x10] sm:$0xf] %vm342_vm3, %v494_v43 }
 0x1bb   : > { %v699_v6 = vld [vmem:[#allocation2 + $0x10] sm:$0xff] }
 0x1bc   : > { %v530_v44 = vpop.permute.xlu0 %529  ;;  %v532_v45 = vpop.permute.xlu1 %531  ;;  %v704_v12 = vpack.c.bf16 %v699_v6, %v699_v6 }
 0x1bd   : > { %v533_v46 = vsel %vm393_vm8, %v528_v39, %v530_v44  ;;  %v534_v47 = vsel %vm393_vm8, %v530_v44, %v532_v45  ;;  %540 = vst.msk [vmem:[#allocation2 + $0x28] sm:$0xf] %vm342_vm3, %v532_v45  ;;  %vm2399_vm8 = vcmp.eq.s32.totalorder %v562_v56, 1  ;;  %v616_v56 = vsel %vm311_vm13, 1, %v2206_v41 }
 0x1be   : > { %538 = vst.msk [vmem:[#allocation2 + $0x18] sm:$0xf] %vm339_vm2, %v533_v46  ;;  %vm2779_vm13 = vcmask 1014784  }
 0x1bf   : > { %539 = vst [vmem:[#allocation2 + $0x20] sm:$0xf] %v534_v47 }
 0x1c4   : > { %v511_v48 = vpop.permute.xlu0 %510 }
 0x1c5   : > { %v514_v49 = vsel %vm441_vm9, %v509_v42, %v511_v48  ;;  %v515_v50 = vsel %vm441_vm9, %v511_v48, %v513_v40  ;;  %v559_v5 = vld [vmem:[#allocation2 + $0x18] sm:$0xff]  ;;  %vm2781_vm9 = vcmask 506880  }
 0x1c6   : > { %520 = vst.msk [vmem:[#allocation2] sm:$0xf0] %vm519_vm15, %v514_v49  ;;  %v568_v8 = vsel %vm2399_vm8, %v559_v5, 0.0  ;;  %v2083_v13 = vpack.i.bf16 %v559_v5, %v699_v6 }
 0x1c7   : > { %521 = vst [vmem:[#allocation2 + $0x8] sm:$0xf0] %v515_v50 }
 0x1cc   : > { %v492_v52 = vpop.permute.xlu0 %491 }
 0x1cd   : > { %v495_v53 = vsel %vm320_vm0, %v492_v52, %v494_v43  ;;  %499 = vst.msk [vmem:[#allocation2] sm:$0xf] %vm339_vm2, %v492_v52 }
 0x1ce   : > { %500 = vst [vmem:[#allocation2 + $0x8] sm:$0xf] %v495_v53 }
 0x1d4   : > { %v557_v58 = vld [vmem:[#allocation2] sm:$0xff]  ;;  %v549_v60 = vpop.permute.xlu0 %548 }
 0x1d5   : > { %v558_v61 = vld [vmem:[#allocation2 + $0x8] sm:$0xff]  ;;  %v550_v62 = vsel %vm320_vm0, %v547_v1, %v549_v60  ;;  %556 = vst.msk [vmem:[#allocation2 + $0x28] sm:$0xf0] %vm522_vm14, %v549_v60  ;;  %v566_v63 = vsel %vm2399_vm8, %v557_v58, 0.0  ;;  %vm756_vm14 = vcmask 752640  }
 0x1d6   : > { %555 = vst [vmem:[#allocation2 + $0x20] sm:$0xf0] %v550_v62  ;;  %v820_v0 = vpack.c.bf16 %v558_v61, %v557_v58  ;;  %v2068_v2 = vpack.i.bf16 %v558_v61, %v557_v58  ;;  %v567_v3 = vsel %vm2395_vm7, %v558_v61, 0.0 }
 0x1d7   : > { %v570_v4 = vpack.c.bf16 %v567_v3, %v566_v63  ;;  %v617_v3 = vperm.slane %v616_v56, 0 }
 0x1d8   : > { %828 = vrot.lane.b32.xlu1 %v820_v0, %s2207_s25  ;;  %2069 = vrot.lane.b32.xlu0 %v2068_v2, %s2208_s26 }
 0x1d9   : > { %2059 = vrot.lane.b32.xlu2 %v2068_v2, %s2209_s30  ;;  %572 = vst [vmem:[#allocation3] sm:$0xff] %v570_v4  ;;  %vm2476_vm15 = vcmp.eq.s32.totalorder %v617_v3, 1 }
 0x1dc   : > { %v778_v15 = vld [vmem:[#allocation2 + $0x28] sm:$0xff] }
 0x1dd   : > { %v560_v7 = vld [vmem:[#allocation2 + $0x20] sm:$0xff]  ;;  %v823_v20 = vpack.c.bf16 %v778_v15, %v778_v15 }
 0x1de   : > { %v569_v11 = vsel %vm2395_vm7, %v560_v7, 0.0  ;;  %v2088_v18 = vpack.i.bf16 %v778_v15, %v560_v7  ;;  %v822_v19 = vpack.c.bf16 %v560_v7, %v559_v5 }
 0x1df   : > { %v571_v14 = vpack.c.bf16 %v569_v11, %v568_v8 }
 0x1e0   : > { %713 = vrot.lane.b32.xlu0 %v704_v12, %s2210_s9  ;;  %2084 = vrot.lane.b32.xlu1 %v2083_v13, %s2208_s26 }
 0x1e1   : > { %573 = vst [vmem:[#allocation3 + $0x8] sm:$0xff] %v571_v14  ;;  %2064 = vrot.lane.b32.xlu2 %v2068_v2, %s2211_s10 }
 0x1e8   : > { %2074 = vrot.lane.b32.xlu0 %v2083_v13, %s2209_s30  ;;  %2089 = vrot.lane.b32.xlu1 %v2088_v18, %s2209_s30 }
 0x1e9   : > { %830 = vrot.lane.b32.xlu2 %v704_v12, %s2207_s25 }
 0x1f0   : > { %2079 = vrot.lane.b32.xlu0 %v2083_v13, %s2211_s10  ;;  %2094 = vrot.lane.b32.xlu1 %v2088_v18, %s2211_s10 }
 0x1f1   : > { %711 = vrot.lane.b32.xlu2 %v820_v0, %s2210_s9 }
 0x1f8   : > { %832 = vrot.lane.b32.xlu0 %v822_v19, %s2207_s25  ;;  %834 = vrot.lane.b32.xlu1 %v823_v20, %s2207_s25 }
 0x1f9   : > { %2099 = vrot.lane.b32.xlu2 %v2088_v18, %s2208_s26 }
 0x200   : > { %2104 = vrot.lane.b32.xlu0 %v2068_v2, %s2212_s12  ;;  %715 = vrot.lane.b32.xlu1 %v822_v19, %s2210_s9 }
 0x201   : > { %717 = vrot.lane.b32.xlu2 %v823_v20, %s2210_s9 }
 0x208   : > { %588 = vrot.lane.b32.xlu0 %v820_v0, %s2213_s15  ;;  %2109 = vrot.lane.b32.xlu1 %v2083_v13, %s2212_s12 }
 0x209   : > { %2114 = vrot.lane.b32.xlu2 %v2088_v18, %s2212_s12 }
 0x210   : > { %594 = vrot.lane.b32.xlu0 %v823_v20, %s2213_s15  ;;  %590 = vrot.lane.b32.xlu1 %v704_v12, %s2213_s15 }
 0x211   : > { %592 = vrot.lane.b32.xlu2 %v822_v19, %s2213_s15 }
 0x218   : > { %2129 = vrot.lane.b32.xlu0 %v2088_v18, %s2214_s16  ;;  %2119 = vrot.lane.b32.xlu1 %v2068_v2, %s2214_s16  ;;  %v1511_v18 = vld [vmem:[%s2774_s6] sm:$0x3] }
 0x219   : > { %2124 = vrot.lane.b32.xlu2 %v2083_v13, %s2214_s16  ;;  %v618_v13 = vperm.slane %v616_v56, 1 }
 0x21b   : > { %vm2481_vm1 = vcmp.eq.s32.totalorder %v618_v13, 1 }
 0x233   : > { %v2060_v9 = vpop.permute.xlu2 %2059 }
 0x234   : > { %v2062_v39 = vunpack.i.h.bf16 %v2060_v9  ;;  %v2061_v1 = vunpack.i.l.bf16 %v2060_v9 }
 0x236   : > { %v798_v55 = vsel %vm797_vm11, %v2061_v1, %v2062_v39 }
 0x237   : > { %v806_v2 = vsel %vm2399_vm8, %v798_v55, 0.0 }
 0x23b   : > { %v2440_v21 = vpop.permute.xlu2 %2064 }
 0x23c   : > { %v2067_v4 = vunpack.i.h.bf16 %v2440_v21  ;;  %v2066_v5 = vunpack.i.l.bf16 %v2440_v21 }
 0x23e   : > { %v757_v19 = vsel %vm756_vm14, %v2066_v5, %v2067_v4 }
 0x243   : > { %v831_v22 = vpop.permute.xlu2 %830 }
 0x244   : > { %v837_v25 = vrot.slane %v831_v22, 4 }
 0x24a   : > { %v829_v23 = vpop.permute.xlu1 %828  ;;  %v2070_v24 = vpop.permute.xlu0 %2069 }
 0x24b   : > { %v836_v26 = vrot.slane %v829_v23, 4  ;;  %v712_v27 = vpop.permute.xlu2 %711  ;;  %v2072_v31 = vunpack.i.h.bf16 %v2070_v24  ;;  %v2071_v10 = vunpack.i.l.bf16 %v2070_v24 }
 0x24c   : > { %v719_v17 = vrot.slane %v712_v27, 4 }
 0x24d   : > { %v840_v28 = vsel %vm351_vm4, %v836_v26, %v837_v25  ;;  %v681_v32 = vsel %vm680_vm10, %v2071_v10, %v2072_v31 }
 0x24e   : > { %v842_v29 = vsel %vm2781_vm9, %v829_v23, %v840_v28  ;;  %v689_v43 = vsel %vm2399_vm8, %v681_v32, 0.0 }
 0x24f   : > { %847 = vst [vmem:[#allocation3 + $0x70] sm:$0xff] %v842_v29  ;;  %v765_v29 = vsel %vm2476_vm15, %v757_v19, 0.0 }
 0x252   : > { %v714_v33 = vpop.permute.xlu0 %713  ;;  %v2085_v16 = vpop.permute.xlu1 %2084 }
 0x253   : > { %v720_v34 = vrot.slane %v714_v33, 4  ;;  %v2087_v35 = vunpack.i.h.bf16 %v2085_v16  ;;  %v2086_v30 = vunpack.i.l.bf16 %v2085_v16  ;;  %v2100_v36 = vpop.permute.xlu2 %2099 }
 0x254   : > { %v2102_v40 = vunpack.i.h.bf16 %v2100_v36  ;;  %v2101_v42 = vunpack.i.l.bf16 %v2100_v36 }
 0x255   : > { %v723_v44 = vsel %vm351_vm4, %v719_v17, %v720_v34  ;;  %v682_v45 = vsel %vm680_vm10, %v2072_v31, %v2086_v30 }
 0x256   : > { %v690_v46 = vsel %vm2395_vm7, %v682_v45, 0.0  ;;  %v683_v47 = vsel %vm680_vm10, %v2087_v35, %v2101_v42  ;;  %v684_v48 = vsel %vm680_vm10, %v2101_v42, %v2102_v40  ;;  %v725_v49 = vsel %vm2782_vm12, %v712_v27, %v723_v44 }
 0x257   : > { %v693_v50 = vpack.c.bf16 %v690_v46, %v689_v43  ;;  %v691_v52 = vsel %vm2399_vm8, %v683_v47, 0.0  ;;  %v692_v53 = vsel %vm2395_vm7, %v684_v48, 0.0  ;;  %730 = vst [vmem:[#allocation3 + $0x40] sm:$0xff] %v725_v49  ;;  %v1944_v47 = vld [vmem:[#allocation3 + $0x70] sm:$0xf] }
 0x258   : > { %v694_v54 = vpack.c.bf16 %v692_v53, %v691_v52  ;;  %v2014_v53 = vld [vmem:[#allocation3 + $0x74] sm:$0xf] }
 0x259   : > { %695 = vst [vmem:[#allocation3 + $0x30] sm:$0xff] %v693_v50 }
 0x25a   : > { %696 = vst [vmem:[#allocation3 + $0x38] sm:$0xff] %v694_v54  ;;  %v2075_v58 = vpop.permute.xlu0 %2074  ;;  %v2090_v60 = vpop.permute.xlu1 %2089 }
 0x25b   : > { %v2077_v61 = vunpack.i.h.bf16 %v2075_v58  ;;  %v2076_v62 = vunpack.i.l.bf16 %v2075_v58  ;;  %v2092_v63 = vunpack.i.h.bf16 %v2090_v60  ;;  %v2091_v0 = vunpack.i.l.bf16 %v2090_v60  ;;  %v718_v17 = vpop.permute.xlu2 %717 }
 0x25c   : > { %v722_v43 = vrot.slane %v718_v17, 4 }
 0x25d   : > { %v799_v6 = vsel %vm797_vm11, %v2062_v39, %v2076_v62  ;;  %v800_v51 = vsel %vm797_vm11, %v2077_v61, %v2091_v0  ;;  %v801_v7 = vsel %vm797_vm11, %v2091_v0, %v2092_v63 }
 0x25e   : > { %v807_v8 = vsel %vm2395_vm7, %v799_v6, 0.0  ;;  %v808_v11 = vsel %vm2399_vm8, %v800_v51, 0.0  ;;  %v809_v12 = vsel %vm2395_vm7, %v801_v7, 0.0 }
 0x25f   : > { %v810_v14 = vpack.c.bf16 %v807_v8, %v806_v2  ;;  %v811_v15 = vpack.c.bf16 %v809_v12, %v808_v11 }
 0x261   : > { %812 = vst [vmem:[#allocation3 + $0x60] sm:$0xff] %v810_v14 }
 0x262   : > { %813 = vst [vmem:[#allocation3 + $0x68] sm:$0xff] %v811_v15  ;;  %v2080_v9 = vpop.permute.xlu0 %2079  ;;  %v2095_v21 = vpop.permute.xlu1 %2094 }
 0x263   : > { %v2082_v22 = vunpack.i.h.bf16 %v2080_v9  ;;  %v2081_v23 = vunpack.i.l.bf16 %v2080_v9  ;;  %v2097_v24 = vunpack.i.h.bf16 %v2095_v21  ;;  %v2096_v25 = vunpack.i.l.bf16 %v2095_v21  ;;  %v2115_v44 = vpop.permute.xlu2 %2114 }
 0x264   : > { %v2117_v48 = vunpack.i.h.bf16 %v2115_v44  ;;  %v2116_v49 = vunpack.i.l.bf16 %v2115_v44  ;;  %v1914_v44 = vld [vmem:[#allocation3 + $0x38] sm:$0xf0] }
 0x265   : > { %v758_v26 = vsel %vm756_vm14, %v2067_v4, %v2081_v23  ;;  %v759_v27 = vsel %vm756_vm14, %v2082_v22, %v2096_v25  ;;  %v760_v28 = vsel %vm756_vm14, %v2096_v25, %v2097_v24 }
 0x266   : > { %v766_v31 = vsel %vm2481_vm1, %v758_v26, 0.0  ;;  %v767_v10 = vsel %vm2476_vm15, %v759_v27, 0.0  ;;  %v768_v32 = vsel %vm2481_vm1, %v760_v28, 0.0  ;;  %v643_v2 = vsel %vm2779_vm13, %v2116_v49, %v2117_v48 }
 0x267   : > { %v769_v33 = vpack.c.bf16 %v766_v31, %v765_v29  ;;  %v770_v16 = vpack.c.bf16 %v768_v32, %v767_v10  ;;  %v651_v21 = vsel %vm2481_vm1, %v643_v2, 0.0  ;;  %v909_v29 = vld [vmem:[%s2771_s3] sm:$0xf]  ;;  %v1920_v32 = vld [vmem:[#allocation3 + $0x40] sm:$0xf] }
 0x268   : > { %v1936_v61 = vld [vmem:[#allocation3 + $0x60] sm:$0xf]  ;;  %v2012_v63 = vld [vmem:[#allocation3 + $0x64] sm:$0xf]  ;;  %912 = vperm.xlu1 %2133, %v909_v29  }
 0x269   : > { %771 = vst [vmem:[#allocation3 + $0x50] sm:$0xff] %v769_v33  ;;  %v2013_v62 = vld [vmem:[#allocation3 + $0x64] sm:$0xf0]  ;;  %v1938_v0 = vld [vmem:[#allocation3 + $0x68] sm:$0xf0] }
 0x26a   : > { %772 = vst [vmem:[#allocation3 + $0x58] sm:$0xff] %v770_v16  ;;  %v833_v34 = vpop.permute.xlu0 %832  ;;  %v835_v35 = vpop.permute.xlu1 %834  ;;  %v1937_v5 = vor.u32 %v2013_v62, %v1936_v61  ;;  %v1941_v8 = vor.u32 %v2012_v63, %v1938_v0  ;;  %v2000_v29 = vld [vmem:[#allocation3 + $0x4] sm:$0xf] }
 0x26b   : > { %v838_v30 = vrot.slane %v833_v34, 4  ;;  %v839_v36 = vrot.slane %v835_v35, 4  ;;  %v593_v15 = vpop.permute.xlu2 %592  ;;  %v2008_v35 = vld [vmem:[#allocation3 + $0x44] sm:$0xf] }
 0x26c   : > { %v598_v33 = vrot.slane %v593_v15, 4 }
 0x26d   : > { %v843_v39 = vsel %vm351_vm4, %v838_v30, %v839_v36 }
 0x26e   : > { %v844_v40 = vsel %vm2781_vm9, %v833_v34, %v843_v39 }
 0x26f   : > { %848 = vst [vmem:[#allocation3 + $0x78] sm:$0xff] %v844_v40 }
 0x270   : > { %v1928_v11 = vld [vmem:[#allocation3 + $0x50] sm:$0xf]  ;;  %v2010_v13 = vld [vmem:[#allocation3 + $0x54] sm:$0xf] }
 0x271   : > { %v2011_v12 = vld [vmem:[#allocation3 + $0x54] sm:$0xf0]  ;;  %v1930_v14 = vld [vmem:[#allocation3 + $0x58] sm:$0xf0] }
 0x272   : > { %v2105_v42 = vpop.permute.xlu0 %2104  ;;  %v716_v1 = vpop.permute.xlu1 %715  ;;  %v1929_v27 = vor.u32 %v2011_v12, %v1928_v11  ;;  %v1933_v28 = vor.u32 %v2010_v13, %v1930_v14 }
 0x273   : > { %v721_v45 = vrot.slane %v716_v1, 4  ;;  %v2107_v55 = vunpack.i.h.bf16 %v2105_v42  ;;  %v2106_v56 = vunpack.i.l.bf16 %v2105_v42  ;;  %v1912_v42 = vld [vmem:[#allocation3 + $0x30] sm:$0xf] }
 0x275   : > { %v726_v46 = vsel %vm351_vm4, %v721_v45, %v722_v43  ;;  %v640_v6 = vsel %vm2779_vm13, %v2106_v56, %v2107_v55  ;;  %v2006_v43 = vld [vmem:[#allocation3 + $0x34] sm:$0xf] }
 0x276   : > { %v727_v50 = vsel %vm2782_vm12, %v716_v1, %v726_v46  ;;  %v2015_v52 = vld [vmem:[#allocation3 + $0x74] sm:$0xf0]  ;;  %v1946_v54 = vld [vmem:[#allocation3 + $0x78] sm:$0xf0]  ;;  %v648_v22 = vsel %vm2476_vm15, %v640_v6, 0.0 }
 0x277   : > { %731 = vst [vmem:[#allocation3 + $0x48] sm:$0xff] %v727_v50  ;;  %v1945_v58 = vor.u32 %v2015_v52, %v1944_v47  ;;  %v1949_v60 = vor.u32 %v2014_v53, %v1946_v54  ;;  %v2007_v1 = vld [vmem:[#allocation3 + $0x34] sm:$0xf0]  ;;  %v1917_v52 = vor.u32 %v2006_v43, %v1914_v44 }
 0x278   : > { %v1913_v50 = vor.u32 %v2007_v1, %v1912_v42 }
 0x279   : > { %1013 = vmatpush.bf16.msra.mxu0 %v1945_v58  ;;  %1039 = vmatpush.bf16.msra.mxu2 %v1949_v60 }
 0x27a   : > { %v589_v3 = vpop.permute.xlu0 %588  ;;  %v2110_v4 = vpop.permute.xlu1 %2109 }
 0x27b   : > { %v2112_v51 = vunpack.i.h.bf16 %v2110_v4  ;;  %v2111_v7 = vunpack.i.l.bf16 %v2110_v4  ;;  %v596_v16 = vrot.slane %v589_v3, 4 }
 0x27d   : > { %v641_v19 = vsel %vm2779_vm13, %v2107_v55, %v2111_v7  ;;  %v642_v9 = vsel %vm2779_vm13, %v2112_v51, %v2116_v49  ;;  %1014 = vmatpush.bf16.msra.mxu0 %v1937_v5  ;;  %1040 = vmatpush.bf16.msra.mxu2 %v1941_v8  ;;  %v2125_v49 = vpop.permute.xlu2 %2124  ;;  %vm1010_vm13 = vcmask 130048  }
 0x27e   : > { %v649_v23 = vsel %vm2481_vm1, %v641_v19, 0.0  ;;  %v650_v24 = vsel %vm2476_vm15, %v642_v9, 0.0  ;;  %v2009_v31 = vld [vmem:[#allocation3 + $0x44] sm:$0xf0]  ;;  %v1922_v10 = vld [vmem:[#allocation3 + $0x48] sm:$0xf0]  ;;  %v2127_v58 = vunpack.i.h.bf16 %v2125_v49  ;;  %v2126_v60 = vunpack.i.l.bf16 %v2125_v49 }
 0x27f   : > { %v652_v25 = vpack.c.bf16 %v649_v23, %v648_v22  ;;  %v653_v26 = vpack.c.bf16 %v651_v21, %v650_v24  ;;  %v1921_v39 = vor.u32 %v2009_v31, %v1920_v32  ;;  %v1925_v40 = vor.u32 %v2008_v35, %v1922_v10 }
 0x281   : > { %654 = vst [vmem:[#allocation3 + $0x20] sm:$0xff] %v652_v25  ;;  %1015 = vmatpush.bf16.msra.mxu0 %v1929_v27  ;;  %1041 = vmatpush.bf16.msra.mxu2 %v1933_v28  ;;  %v1890_v27 = vld [vmem:[#allocation3 + $0x8] sm:$0xf0]  ;;  %v1888_v28 = vld [vmem:[#allocation3] sm:$0xf] }
 0x282   : > { %655 = vst [vmem:[#allocation3 + $0x28] sm:$0xff] %v653_v26  ;;  %v595_v17 = vpop.permute.xlu0 %594  ;;  %v591_v34 = vpop.permute.xlu1 %590  ;;  %v2001_v26 = vld [vmem:[#allocation3 + $0x4] sm:$0xf0]  ;;  %v1893_v10 = vor.u32 %v2000_v29, %v1890_v27 }
 0x283   : > { %v599_v30 = vrot.slane %v595_v17, 4  ;;  %v597_v36 = vrot.slane %v591_v34, 4  ;;  %v1889_v31 = vor.u32 %v2001_v26, %v1888_v28 }
 0x285   : > { %v604_v45 = vsel %vm351_vm4, %v598_v33, %v599_v30  ;;  %v601_v46 = vsel %vm351_vm4, %v596_v16, %v597_v36  ;;  %1016 = vmatpush.bf16.msra.mxu0 %v1921_v39  ;;  %1042 = vmatpush.bf16.msra.mxu2 %v1925_v40 }
 0x286   : > { %v605_v47 = vsel %vm2780_vm6, %v593_v15, %v604_v45  ;;  %v603_v48 = vsel %vm2780_vm6, %v589_v3, %v601_v46 }
 0x287   : > { %609 = vst [vmem:[#allocation3 + $0x18] sm:$0xff] %v605_v47 }
 0x288   : > { %608 = vst [vmem:[#allocation3 + $0x10] sm:$0xff] %v603_v48  ;;  %v1904_v53 = vld [vmem:[#allocation3 + $0x20] sm:$0xf]  ;;  %v2004_v55 = vld [vmem:[#allocation3 + $0x24] sm:$0xf] }
 0x289   : > { %1017 = vmatpush.bf16.msra.mxu0 %v1913_v50  ;;  %1043 = vmatpush.bf16.msra.mxu2 %v1917_v52  ;;  %v2005_v54 = vld [vmem:[#allocation3 + $0x24] sm:$0xf0]  ;;  %v1906_v56 = vld [vmem:[#allocation3 + $0x28] sm:$0xf0] }
 0x28a   : > { %v2130_v61 = vpop.permute.xlu0 %2129  ;;  %v2120_v62 = vpop.permute.xlu1 %2119  ;;  %v1905_v63 = vor.u32 %v2005_v54, %v1904_v53  ;;  %v1909_v5 = vor.u32 %v2004_v55, %v1906_v56 }
 0x28b   : > { %v2132_v0 = vunpack.i.h.bf16 %v2130_v61  ;;  %v2131_v2 = vunpack.i.l.bf16 %v2130_v61  ;;  %v2122_v3 = vunpack.i.h.bf16 %v2120_v62  ;;  %v2121_v4 = vunpack.i.l.bf16 %v2120_v62 }
 0x28d   : > { %v876_v6 = vsel %vm873_vm5, %v2127_v58, %v2131_v2  ;;  %v877_v51 = vsel %vm873_vm5, %v2131_v2, %v2132_v0  ;;  %v874_v7 = vsel %vm873_vm5, %v2121_v4, %v2122_v3  ;;  %v875_v8 = vsel %vm873_vm5, %v2122_v3, %v2126_v60  ;;  %1018 = vmatpush.bf16.msra.mxu0 %v1905_v63 }
 0x28e   : > { %v884_v11 = vsel %vm2476_vm15, %v876_v6, 0.0  ;;  %v885_v12 = vsel %vm2481_vm1, %v877_v51, 0.0  ;;  %v882_v13 = vsel %vm2476_vm15, %v874_v7, 0.0  ;;  %v883_v14 = vsel %vm2481_vm1, %v875_v8, 0.0  ;;  %1044 = vmatpush.bf16.msra.mxu2 %v1909_v5  ;;  %v2003_v15 = vld [vmem:[#allocation3 + $0x14] sm:$0xf0] }
 0x28f   : > { %v887_v19 = vpack.c.bf16 %v885_v12, %v884_v11  ;;  %v886_v9 = vpack.c.bf16 %v883_v14, %v882_v13  ;;  %v1896_v21 = vld [vmem:[#allocation3 + $0x10] sm:$0xf]  ;;  %v2002_v22 = vld [vmem:[#allocation3 + $0x14] sm:$0xf]  ;;  %v1898_v23 = vld [vmem:[#allocation3 + $0x18] sm:$0xf0] }
 0x290   : > { %v1897_v24 = vor.u32 %v2003_v15, %v1896_v21  ;;  %v1901_v25 = vor.u32 %v2002_v22, %v1898_v23 }
 0x291   : > { %889 = vst [vmem:[#allocation3 + $0x88] sm:$0xff] %v887_v19 }
 0x292   : > { %888 = vst [vmem:[#allocation3 + $0x80] sm:$0xff] %v886_v9  ;;  %1019 = vmatpush.bf16.msra.mxu0 %v1897_v24  ;;  %1045 = vmatpush.bf16.msra.mxu2 %v1901_v25 }
 0x296   : > { %1020 = vmatpush.bf16.msra.mxu0 %v1889_v31  ;;  %1046 = vmatpush.bf16.msra.mxu2 %v1893_v10 }
 0x298   : > { %v2017_v32 = vld [vmem:[#allocation3 + $0x84] sm:$0xf0]  ;;  %v1954_v33 = vld [vmem:[#allocation3 + $0x88] sm:$0xf0] }
 0x299   : > { %1021 = vmatmul.bf16.vlgmr.msra.gmra.mxu0 %v2366_v37  ;;  %1047 = vmatmul.bf16.vlgmr.msra.gmra.mxu2 %v2366_v37  ;;  %v1952_v16 = vld [vmem:[#allocation3 + $0x80] sm:$0xf]  ;;  %v2016_v17 = vld [vmem:[#allocation3 + $0x84] sm:$0xf] }
 0x29a   : > { %v1953_v34 = vor.u32 %v2017_v32, %v1952_v16  ;;  %v1957_v35 = vor.u32 %v2016_v17, %v1954_v33 }
 0x29c   : > { %1033 = vmatpush.bf16.msra.mxu1 %v1953_v34  ;;  %1059 = vmatpush.bf16.msra.mxu3 %v1957_v35 }
 0x29f   : > { %1958 = vmatmul.msk.bf16.vlgmr.msra.gmra.mxu1 %vm1010_vm13, %v2368_v38  ;;  %1959 = vmatmul.msk.bf16.vlgmr.msra.gmra.mxu3 %vm1010_vm13, %v2368_v38  ;;  %vm2792_vm13 = vcmask 1031168  }
 0x2da   : > { %v913_v36 = vpop.permute.xlu1 %912 }
 0x316   : > { %v1022_v30 = vpop.f32.mrf.mxu0 }
 0x317   : > { %v1023_v39 = vadd.f32 %v1022_v30, %v913_v36 }
 0x31c   : > { %v1035_v40 = vpop.f32.mrf.mxu1  ;;  %v1048_v42 = vpop.f32.mrf.mxu2 }
 0x31d   : > { %v1036_v1 = vadd.f32 %v1035_v40, %v1023_v39  ;;  %v1049_v37 = vadd.f32 %v1048_v42, %v913_v36 }
 0x31e   : > { %v1024_v43 = vpop.f32.mrf.mxu0 }
 0x31f   : > { %v1067_v44 = vmul.f32 0.1, %v1036_v1  ;;  %vm1065_vm6 = vcmp.gt.f32.partialorder %v1036_v1, 0.0 }
 0x321   : > { %v1069_v45 = vsel %vm1065_vm6, %v1036_v1, %v1067_v44  ;;  %vm1292_vm6 = vcmask 1041408  }
 0x322   : > { %v1061_v46 = vpop.f32.mrf.mxu3  ;;  %1073 = vrot.lane.b32.xlu2 %v1069_v45, %s2196_s11 }
 0x323   : > { %v1062_v47 = vadd.f32 %v1061_v46, %v1049_v37 }
 0x324   : > { %v1037_v48 = vpop.f32.mrf.mxu1  ;;  %v1050_v49 = vpop.f32.mrf.mxu2 }
 0x325   : > { %v1068_v50 = vmul.f32 0.1, %v1062_v47  ;;  %vm1066_vm9 = vcmp.gt.f32.partialorder %v1062_v47, 0.0 }
 0x327   : > { %v1070_v38 = vsel %vm1066_vm9, %v1062_v47, %v1068_v50  ;;  %vm2791_vm9 = vcmask 506880  }
 0x328   : > { %1075 = vrot.lane.b32.xlu0 %v1070_v38, %s2196_s11 }
 0x32a   : > { %v1063_v52 = vpop.f32.mrf.mxu3 }
 0x37c   : > { %v1074_v53 = vpop.permute.xlu2 %1073 }
 0x37d   : > { %1081 = vst.msk [vmem:[#allocation2] sm:$0xf] %vm339_vm2, %v1074_v53 }
 0x384   : > { %v1084_v61 = vld [vmem:[#allocation2] sm:$0xf] }
 0x385   : > { %v1231_v2 = vld [vmem:[#allocation2] sm:$0xf]  ;;  %v1086_v4 = vsel %vm2399_vm8, %v1084_v61, 0.0 }
 0x386   : > { %v1169_v3 = vld [vmem:[#allocation2] sm:$0xf] }
 0x387   : > { %v1192_v14 = vld [vmem:[#allocation2] sm:$0xf] }
 0x388   : > { %v1129_v9 = vld [vmem:[#allocation2] sm:$0xf] }
 0x389   : > { %v1212_v24 = vld [vmem:[#allocation2] sm:$0xf] }
 0x38a   : > { %v1152_v31 = vld [vmem:[#allocation2] sm:$0xf] }
 0x38b   : > { %v1090_v16 = vld [vmem:[#allocation2] sm:$0xf] }
 0x38c   : > { %v1109_v30 = vld [vmem:[#allocation2] sm:$0xf] }
 0x39a   : > { %v1076_v54 = vpop.permute.xlu0 %1075 }
 0x39b   : > { %v1077_v55 = vsel %vm320_vm0, %v1074_v53, %v1076_v54  ;;  %1083 = vst.msk [vmem:[#allocation2 + $0x10] sm:$0xf] %vm342_vm3, %v1076_v54 }
 0x39c   : > { %1082 = vst [vmem:[#allocation2 + $0x8] sm:$0xf] %v1077_v55 }
 0x3a2   : > { %v1171_v56 = vld [vmem:[#allocation2 + $0x10] sm:$0xf] }
 0x3a3   : > { %v1131_v58 = vld [vmem:[#allocation2 + $0x10] sm:$0xf]  ;;  %1179 = vrot.lane.b32.xlu1 %v1171_v56, %s2211_s10  ;;  %v1232_v62 = vld [vmem:[#allocation2 + $0x8] sm:$0xf] }
 0x3a4   : > { %v1233_v60 = vld [vmem:[#allocation2 + $0x10] sm:$0xf]  ;;  %1139 = vrot.lane.b32.xlu0 %v1131_v58, %s2208_s26  ;;  %v1170_v63 = vld [vmem:[#allocation2 + $0x8] sm:$0xf]  ;;  %v2134_v6 = vpack.i.bf16 %v1232_v62, %v1231_v2 }
 0x3a5   : > { %1241 = vrot.lane.b32.xlu2 %v1233_v60, %s2214_s16  ;;  %v1085_v0 = vld [vmem:[#allocation2 + $0x8] sm:$0xf]  ;;  %v2139_v51 = vpack.i.bf16 %v1170_v63, %v1169_v3  ;;  %v1194_v8 = vld [vmem:[#allocation2 + $0x10] sm:$0xf] }
 0x3a6   : > { %v1087_v5 = vsel %vm2395_vm7, %v1085_v0, 0.0  ;;  %v1193_v11 = vld [vmem:[#allocation2 + $0x8] sm:$0xf]  ;;  %v1154_v12 = vld [vmem:[#allocation2 + $0x10] sm:$0xf] }
 0x3a7   : > { %v1088_v7 = vpack.c.bf16 %v1087_v5, %v1086_v4  ;;  %v1130_v13 = vld [vmem:[#allocation2 + $0x8] sm:$0xf]  ;;  %v2144_v15 = vpack.i.bf16 %v1193_v11, %v1192_v14  ;;  %v1156_v19 = vpack.c.bf16 %v1154_v12, %v1154_v12  ;;  %v1214_v22 = vld [vmem:[#allocation2 + $0x10] sm:$0xf] }
 0x3a8   : > { %v2149_v21 = vpack.i.bf16 %v1130_v13, %v1129_v9  ;;  %v1213_v23 = vld [vmem:[#allocation2 + $0x8] sm:$0xf]  ;;  %v1216_v25 = vpack.c.bf16 %v1214_v22, %v1214_v22  ;;  %v1092_v33 = vld [vmem:[#allocation2 + $0x10] sm:$0xf] }
 0x3a9   : > { %1089 = vst [vmem:[#allocation3] sm:$0x33] %v1088_v7  ;;  %v1215_v26 = vpack.c.bf16 %v1213_v23, %v1212_v24  ;;  %v1153_v27 = vld [vmem:[#allocation2 + $0x8] sm:$0xf]  ;;  %v1094_v34 = vpack.c.bf16 %v1092_v33, %v1092_v33  ;;  %v1111_v42 = vld [vmem:[#allocation2 + $0x10] sm:$0xf] }
 0x3aa   : > { %v1220_v28 = vrot.slane %v1216_v25, 6  ;;  %v1155_v10 = vpack.c.bf16 %v1153_v27, %v1152_v31  ;;  %v1091_v32 = vld [vmem:[#allocation2 + $0x8] sm:$0xf] }
 0x3ab   : > { %2135 = vrot.lane.b32.xlu1 %v2134_v6, %s2214_s16  ;;  %v1219_v29 = vrot.slane %v1215_v26, 6  ;;  %v1093_v17 = vpack.c.bf16 %v1091_v32, %v1090_v16  ;;  %v1110_v35 = vld [vmem:[#allocation2 + $0x8] sm:$0xf]  ;;  %v1098_v40 = vrot.slane %v1094_v34, 6 }
 0x3ac   : > { %2140 = vrot.lane.b32.xlu0 %v2139_v51, %s2211_s10  ;;  %v2154_v36 = vpack.i.bf16 %v1110_v35, %v1109_v30  ;;  %v1257_v35 = vld [vmem:[%s2773_s5] sm:$0xf] }
 0x3ad   : > { %1202 = vrot.lane.b32.xlu2 %v1194_v8, %s2209_s30  ;;  %v1097_v39 = vrot.slane %v1093_v17, 6 }
 0x3b3   : > { %2145 = vrot.lane.b32.xlu1 %v2144_v15, %s2209_s30 }
 0x3b4   : > { %1161 = vrot.lane.b32.xlu0 %v1156_v19, %s2210_s9 }
 0x3b5   : > { %2150 = vrot.lane.b32.xlu2 %v2149_v21, %s2208_s26 }
 0x3bb   : > { %1223 = vrot.lane.b32.xlu1 %v1220_v28, %s2207_s25 }
 0x3bc   : > { %1221 = vrot.lane.b32.xlu0 %v1219_v29, %s2207_s25 }
 0x3bd   : > { %1159 = vrot.lane.b32.xlu2 %v1155_v10, %s2210_s9 }
 0x3c3   : > { %1099 = vrot.lane.b32.xlu1 %v1097_v39, %s2213_s15 }
 0x3c4   : > { %2155 = vrot.lane.b32.xlu0 %v2154_v36, %s2212_s12 }
 0x3c5   : > { %1101 = vrot.lane.b32.xlu2 %v1098_v40, %s2213_s15 }
 0x3cb   : > { %1119 = vrot.lane.b32.xlu1 %v1111_v42, %s2212_s12 }
 0x3cd   : > { %1260 = vperm.xlu2 %2159, %v1257_v35  }
 0x3ff   : > { %v1242_v1 = vpop.permute.xlu2 %1241 }
 0x407   : > { %v1203_v43 = vpop.permute.xlu2 %1202 }
 0x40f   : > { %v2151_v44 = vpop.permute.xlu2 %2150 }
 0x410   : > { %v2153_v37 = vunpack.i.h.bf16 %v2151_v44  ;;  %v2152_v45 = vunpack.i.l.bf16 %v2151_v44 }
 0x412   : > { %v1141_v46 = vsel %vm680_vm10, %v2152_v45, %v2153_v37 }
 0x413   : > { %v1145_v50 = vsel %vm2399_vm8, %v1141_v46, 0.0 }
 0x415   : > { %v1180_v47 = vpop.permute.xlu1 %1179 }
 0x416   : > { %v1140_v48 = vpop.permute.xlu0 %1139 }
 0x417   : > { %v1142_v49 = vsel %vm680_vm10, %v2153_v37, %v1140_v48  ;;  %v1160_v8 = vpop.permute.xlu2 %1159 }
 0x418   : > { %v1146_v38 = vsel %vm2395_vm7, %v1142_v49, 0.0  ;;  %v1163_v14 = vrot.slane %v1160_v8, 4 }
 0x419   : > { %v1147_v52 = vpack.c.bf16 %v1146_v38, %v1145_v50 }
 0x41b   : > { %v1149_v53 = vrot.slane %v1147_v52, 6 }
 0x41d   : > { %1151 = vst [vmem:[#allocation3 + $0x8] sm:$0xcc] %v1149_v53  ;;  %v2136_v54 = vpop.permute.xlu1 %2135 }
 0x41e   : > { %v2141_v55 = vpop.permute.xlu0 %2140  ;;  %v2138_v56 = vunpack.i.h.bf16 %v2136_v54  ;;  %v2137_v58 = vunpack.i.l.bf16 %v2136_v54 }
 0x41f   : > { %v2143_v60 = vunpack.i.h.bf16 %v2141_v55  ;;  %v2142_v61 = vunpack.i.l.bf16 %v2141_v55  ;;  %v1102_v42 = vpop.permute.xlu2 %1101 }
 0x420   : > { %v1243_v62 = vsel %vm873_vm5, %v2137_v58, %v2138_v56  ;;  %v1244_v63 = vsel %vm873_vm5, %v2138_v56, %v1242_v1  ;;  %v1104_v44 = vrot.slane %v1102_v42, 4 }
 0x421   : > { %v1182_v0 = vsel %vm756_vm14, %v2143_v60, %v1180_v47  ;;  %v1181_v2 = vsel %vm756_vm14, %v2142_v61, %v2143_v60  ;;  %v1247_v3 = vsel %vm2476_vm15, %v1243_v62, 0.0  ;;  %v1248_v4 = vsel %vm2481_vm1, %v1244_v63, 0.0 }
 0x422   : > { %v1186_v5 = vsel %vm2481_vm1, %v1182_v0, 0.0  ;;  %v1185_v6 = vsel %vm2476_vm15, %v1181_v2, 0.0  ;;  %v1249_v51 = vpack.c.bf16 %v1248_v4, %v1247_v3 }
 0x423   : > { %v1187_v7 = vpack.c.bf16 %v1186_v5, %v1185_v6  ;;  %v1251_v6 = vld [vmem:[%s2772_s4] sm:$0x3] }
 0x424   : > { %1250 = vst [vmem:[#allocation3 + $0x20] sm:$0x33] %v1249_v51 }
 0x425   : > { %v1189_v11 = vrot.slane %v1187_v7, 6  ;;  %v2146_v12 = vpop.permute.xlu1 %2145 }
 0x426   : > { %v1162_v13 = vpop.permute.xlu0 %1161  ;;  %v2148_v15 = vunpack.i.h.bf16 %v2146_v12  ;;  %v2147_v19 = vunpack.i.l.bf16 %v2146_v12 }
 0x427   : > { %1191 = vst [vmem:[#allocation3 + $0x10] sm:$0xcc] %v1189_v11  ;;  %v1164_v9 = vrot.slane %v1162_v13, 4  ;;  %v1261_v51 = vpop.permute.xlu2 %1260 }
 0x428   : > { %v1204_v21 = vsel %vm797_vm11, %v2147_v19, %v2148_v15  ;;  %v1205_v22 = vsel %vm797_vm11, %v2148_v15, %v1203_v43 }
 0x429   : > { %v1165_v23 = vsel %vm351_vm4, %v1163_v14, %v1164_v9  ;;  %v1208_v24 = vsel %vm2399_vm8, %v1204_v21, 0.0  ;;  %v1209_v25 = vsel %vm2395_vm7, %v1205_v22, 0.0 }
 0x42a   : > { %v1166_v26 = vsel %vm2782_vm12, %v1160_v8, %v1165_v23  ;;  %v1210_v27 = vpack.c.bf16 %v1209_v25, %v1208_v24 }
 0x42b   : > { %1168 = vst [vmem:[#allocation3 + $0x10] sm:$0x33] %v1166_v26  ;;  %v1256_v28 = vld [vmem:[#allocation3 + $0x20] sm:$0x33] }
 0x42c   : > { %1211 = vst [vmem:[#allocation3 + $0x18] sm:$0x33] %v1210_v27  ;;  %v1276_v29 = vunpack.c.l.b16 %v1256_v28  ;;  %v1277_v31 = vunpack.c.h.b16 %v1256_v28 }
 0x42d   : > { %v1224_v10 = vpop.permute.xlu1 %1223 }
 0x42e   : > { %v1222_v32 = vpop.permute.xlu0 %1221  ;;  %v1226_v33 = vrot.slane %v1224_v10, 4  ;;  %v1282_v17 = vpack.c.b16 %v1276_v29, %v1276_v29  ;;  %v1283_v34 = vpack.c.b16 %v1277_v31, %v1277_v31 }
 0x42f   : > { %v1225_v16 = vrot.slane %v1222_v32, 4 }
 0x430   : > { %v1294_v36 = vsel %vm1292_vm6, %v1282_v17, 0  ;;  %v1297_v39 = vsel %vm1292_vm6, %v1283_v34, 0 }
 0x431   : > { %v1227_v30 = vsel %vm351_vm4, %v1225_v16, %v1226_v33  ;;  %1304 = vmatpush.bf16.msrb.mxu1 %v1294_v36  ;;  %1317 = vmatpush.bf16.msrb.mxu3 %v1297_v39 }
 0x432   : > { %v1228_v40 = vsel %vm2791_vm9, %v1222_v32, %v1227_v30  ;;  %v1970_v48 = vld [vmem:[#allocation3 + $0x10] sm:$0xf]  ;;  %v2020_v38 = vld [vmem:[#allocation3 + $0x14] sm:$0xf]  ;;  %vm2793_vm9 = vcmask 1014784  }
 0x433   : > { %1230 = vst [vmem:[#allocation3 + $0x18] sm:$0xcc] %v1228_v40  ;;  %vm2794_vm12 = vmmov %vm2793_vm9 }
 0x435   : > { %v1100_v43 = vpop.permute.xlu1 %1099 }
 0x436   : > { %v2156_v1 = vpop.permute.xlu0 %2155  ;;  %v1103_v37 = vrot.slane %v1100_v43, 4 }
 0x437   : > { %v2158_v45 = vunpack.i.h.bf16 %v2156_v1  ;;  %v2157_v46 = vunpack.i.l.bf16 %v2156_v1 }
 0x438   : > { %v1105_v47 = vsel %vm351_vm4, %v1103_v37, %v1104_v44 }
 0x439   : > { %v1106_v49 = vsel %vm2792_vm13, %v1100_v43, %v1105_v47  ;;  %v1121_v55 = vsel %vm2793_vm9, %v2157_v46, %v2158_v45 }
 0x43a   : > { %v2021_v50 = vld [vmem:[#allocation3 + $0x14] sm:$0xf0]  ;;  %v1972_v52 = vld [vmem:[#allocation3 + $0x18] sm:$0xf0]  ;;  %1108 = vst [vmem:[#allocation3] sm:$0xcc] %v1106_v49 }
 0x43b   : > { %v1971_v53 = vor.u32 %v2021_v50, %v1970_v48  ;;  %v1975_v54 = vor.u32 %v2020_v38, %v1972_v52  ;;  %v1125_v60 = vsel %vm2476_vm15, %v1121_v55, 0.0 }
 0x43d   : > { %1305 = vmatpush.bf16.msrb.mxu1 %v1971_v53  ;;  %1318 = vmatpush.bf16.msrb.mxu3 %v1975_v54  ;;  %v1120_v56 = vpop.permute.xlu1 %1119 }
 0x43e   : > { %v1122_v58 = vsel %vm2794_vm12, %v2158_v45, %v1120_v56  ;;  %vm1288_vm12 = vcmask 293888  }
 0x43f   : > { %v1126_v61 = vsel %vm2481_vm1, %v1122_v58, 0.0 }
 0x440   : > { %v1127_v62 = vpack.c.bf16 %v1126_v61, %v1125_v60 }
 0x441   : > { %v1962_v63 = vld [vmem:[#allocation3] sm:$0xf]  ;;  %v2018_v2 = vld [vmem:[#allocation3 + $0x4] sm:$0xf] }
 0x442   : > { %1128 = vst [vmem:[#allocation3 + $0x8] sm:$0x33] %v1127_v62 }
 0x449   : > { %v2019_v0 = vld [vmem:[#allocation3 + $0x4] sm:$0xf0]  ;;  %v1964_v3 = vld [vmem:[#allocation3 + $0x8] sm:$0xf0] }
 0x44a   : > { %v1963_v4 = vor.u32 %v2019_v0, %v1962_v63  ;;  %v1967_v5 = vor.u32 %v2018_v2, %v1964_v3 }
 0x44c   : > { %1306 = vmatpush.bf16.msrb.mxu1 %v1963_v4  ;;  %1319 = vmatpush.bf16.msrb.mxu3 %v1967_v5 }
 0x44f   : > { %1977 = vmatmul.msk.bf16.vlgmr.msrb.gmra.mxu3 %vm1288_vm12, %v1251_v6  ;;  %1976 = vmatmul.msk.bf16.vlgmr.msrb.gmra.mxu1 %vm1288_vm12, %v1251_v6 }
 0x4cc   : > { %v1308_v7 = vpop.f32.mrf.mxu1 }
 0x4cd   : > { %v1309_v8 = vadd.f32 %v1308_v7, %v1261_v51 }
 0x4cf   : > { %vm1325_vm13 = vcmp.gt.f32.partialorder %v1309_v8, 0.0  ;;  %v1327_v11 = vmul.f32 0.1, %v1309_v8 }
 0x4d1   : > { %v1329_v12 = vsel %vm1325_vm13, %v1309_v8, %v1327_v11 }
 0x4d2   : > { %v1321_v13 = vpop.f32.mrf.mxu3  ;;  %1333 = vrot.lane.b32.xlu0 %v1329_v12, %s2196_s11 }
 0x4d3   : > { %v1322_v14 = vadd.f32 %v1321_v13, %v1261_v51 }
 0x4d4   : > { %v1310_v15 = vpop.f32.mrf.mxu1 }
 0x4d5   : > { %v1328_v19 = vmul.f32 0.1, %v1322_v14  ;;  %vm1326_vm9 = vcmp.gt.f32.partialorder %v1322_v14, 0.0 }
 0x4d7   : > { %v1330_v9 = vsel %vm1326_vm9, %v1322_v14, %v1328_v19 }
 0x4d8   : > { %1335 = vrot.lane.b32.xlu1 %v1330_v9, %s2196_s11 }
 0x4da   : > { %v1323_v21 = vpop.f32.mrf.mxu3 }
 0x544   : > { %v1334_v22 = vpop.permute.xlu0 %1333 }
 0x545   : > { %1341 = vst.msk [vmem:[#allocation2] sm:$0xf] %vm339_vm2, %v1334_v22 }
 0x54a   : > { %v1336_v23 = vpop.permute.xlu1 %1335 }
 0x54b   : > { %v1337_v24 = vsel %vm320_vm0, %v1334_v22, %v1336_v23  ;;  %1343 = vst.msk [vmem:[#allocation2 + $0x10] sm:$0xf] %vm342_vm3, %v1336_v23 }
 0x54c   : > { %1342 = vst [vmem:[#allocation2 + $0x8] sm:$0xf] %v1337_v24  ;;  %v1344_v28 = vld [vmem:[#allocation2] sm:$0xf] }
 0x54d   : > { %v1491_v32 = vld [vmem:[#allocation2] sm:$0xf]  ;;  %v1346_v33 = vsel %vm2399_vm8, %v1344_v28, 0.0 }
 0x54e   : > { %v1429_v34 = vld [vmem:[#allocation2] sm:$0xf] }
 0x54f   : > { %v1452_v1 = vld [vmem:[#allocation2] sm:$0xf] }
 0x550   : > { %v1389_v43 = vld [vmem:[#allocation2] sm:$0xf] }
 0x551   : > { %v1472_v49 = vld [vmem:[#allocation2] sm:$0xf] }
 0x552   : > { %v1493_v25 = vld [vmem:[#allocation2 + $0x10] sm:$0xf]  ;;  %v1412_v52 = vld [vmem:[#allocation2] sm:$0xf] }
 0x553   : > { %v1431_v26 = vld [vmem:[#allocation2 + $0x10] sm:$0xf]  ;;  %1501 = vrot.lane.b32.xlu0 %v1493_v25, %s2214_s16  ;;  %v1492_v29 = vld [vmem:[#allocation2 + $0x8] sm:$0xf]  ;;  %v1350_v60 = vld [vmem:[#allocation2] sm:$0xf] }
 0x554   : > { %v1391_v27 = vld [vmem:[#allocation2 + $0x10] sm:$0xf]  ;;  %1439 = vrot.lane.b32.xlu2 %v1431_v26, %s2211_s10  ;;  %v1430_v31 = vld [vmem:[#allocation2 + $0x8] sm:$0xf]  ;;  %v2160_v17 = vpack.i.bf16 %v1492_v29, %v1491_v32  ;;  %v1369_v2 = vld [vmem:[#allocation2] sm:$0xf] }
 0x555   : > { %1399 = vrot.lane.b32.xlu1 %v1391_v27, %s2208_s26  ;;  %v1345_v10 = vld [vmem:[#allocation2 + $0x8] sm:$0xf]  ;;  %v1454_v30 = vld [vmem:[#allocation2 + $0x10] sm:$0xf]  ;;  %v2165_v36 = vpack.i.bf16 %v1430_v31, %v1429_v34 }
 0x556   : > { %v1347_v16 = vsel %vm2395_vm7, %v1345_v10, 0.0  ;;  %v1453_v39 = vld [vmem:[#allocation2 + $0x8] sm:$0xf]  ;;  %v1414_v42 = vld [vmem:[#allocation2 + $0x10] sm:$0xf] }
 0x557   : > { %v1348_v35 = vpack.c.bf16 %v1347_v16, %v1346_v33  ;;  %v1390_v40 = vld [vmem:[#allocation2 + $0x8] sm:$0xf]  ;;  %v2170_v44 = vpack.i.bf16 %v1453_v39, %v1452_v1  ;;  %v1416_v45 = vpack.c.bf16 %v1414_v42, %v1414_v42  ;;  %v1474_v46 = vld [vmem:[#allocation2 + $0x10] sm:$0xf] }
 0x558   : > { %v2175_v37 = vpack.i.bf16 %v1390_v40, %v1389_v43  ;;  %v1473_v47 = vld [vmem:[#allocation2 + $0x8] sm:$0xf]  ;;  %v1476_v48 = vpack.c.bf16 %v1474_v46, %v1474_v46  ;;  %v1352_v56 = vld [vmem:[#allocation2 + $0x10] sm:$0xf] }
 0x559   : > { %1349 = vst [vmem:[#allocation3] sm:$0x33] %v1348_v35  ;;  %v1475_v50 = vpack.c.bf16 %v1473_v47, %v1472_v49  ;;  %v1413_v38 = vld [vmem:[#allocation2 + $0x8] sm:$0xf]  ;;  %v1354_v61 = vpack.c.bf16 %v1352_v56, %v1352_v56  ;;  %v1371_v5 = vld [vmem:[#allocation2 + $0x10] sm:$0xf] }
 0x55a   : > { %v1480_v53 = vrot.slane %v1476_v48, 6  ;;  %v1415_v54 = vpack.c.bf16 %v1413_v38, %v1412_v52  ;;  %v1351_v58 = vld [vmem:[#allocation2 + $0x8] sm:$0xf] }
 0x55b   : > { %1462 = vrot.lane.b32.xlu0 %v1454_v30, %s2209_s30  ;;  %v1479_v55 = vrot.slane %v1475_v50, 6  ;;  %v1353_v62 = vpack.c.bf16 %v1351_v58, %v1350_v60  ;;  %v1370_v63 = vld [vmem:[#allocation2 + $0x8] sm:$0xf]  ;;  %v1358_v0 = vrot.slane %v1354_v61, 6 }
 0x55c   : > { %2161 = vrot.lane.b32.xlu2 %v2160_v17, %s2214_s16  ;;  %v2180_v4 = vpack.i.bf16 %v1370_v63, %v1369_v2 }
 0x55d   : > { %2166 = vrot.lane.b32.xlu1 %v2165_v36, %s2211_s10  ;;  %v1357_v3 = vrot.slane %v1353_v62, 6 }
 0x563   : > { %2176 = vrot.lane.b32.xlu0 %v2175_v37, %s2208_s26 }
 0x564   : > { %2171 = vrot.lane.b32.xlu2 %v2170_v44, %s2209_s30 }
 0x565   : > { %1421 = vrot.lane.b32.xlu1 %v1416_v45, %s2210_s9 }
 0x56b   : > { %1419 = vrot.lane.b32.xlu0 %v1415_v54, %s2210_s9  ;;  %v1517_v54 = vld [vmem:[%s2775_s7] sm:$0xf]  ;;  %s2215_s9 = smov 110  }
 0x56c   : > { %1483 = vrot.lane.b32.xlu2 %v1480_v53, %s2207_s25 }
 0x56d   : > { %1481 = vrot.lane.b32.xlu1 %v1479_v55, %s2207_s25 }
 0x573   : > { %1361 = vrot.lane.b32.xlu0 %v1358_v0, %s2213_s15 }
 0x574   : > { %1359 = vrot.lane.b32.xlu2 %v1357_v3, %s2213_s15 }
 0x575   : > { %2181 = vrot.lane.b32.xlu1 %v2180_v4, %s2212_s12 }
 0x57b   : > { %1520 = vperm.xlu0 %2185, %v1517_v54  }
 0x57c   : > { %1379 = vrot.lane.b32.xlu2 %v1371_v5, %s2212_s12 }
 0x5ae   : > { %v1440_v6 = vpop.permute.xlu2 %1439 }
 0x5b6   : > { %v2162_v51 = vpop.permute.xlu2 %2161 }
 0x5b7   : > { %v2164_v7 = vunpack.i.h.bf16 %v2162_v51  ;;  %v2163_v8 = vunpack.i.l.bf16 %v2162_v51 }
 0x5b9   : > { %v1503_v11 = vsel %vm873_vm5, %v2163_v8, %v2164_v7 }
 0x5ba   : > { %v1507_v19 = vsel %vm2476_vm15, %v1503_v11, 0.0 }
 0x5be   : > { %v2172_v12 = vpop.permute.xlu2 %2171 }
 0x5bf   : > { %v2174_v21 = vunpack.i.h.bf16 %v2172_v12  ;;  %v2173_v22 = vunpack.i.l.bf16 %v2172_v12 }
 0x5c1   : > { %v1464_v24 = vsel %vm797_vm11, %v2173_v22, %v2174_v21 }
 0x5c2   : > { %v1468_v28 = vsel %vm2399_vm8, %v1464_v24, 0.0 }
 0x5c5   : > { %v1502_v13 = vpop.permute.xlu0 %1501 }
 0x5c6   : > { %v1504_v14 = vsel %vm873_vm5, %v2164_v7, %v1502_v13  ;;  %v1484_v40 = vpop.permute.xlu2 %1483  ;;  %vm2795_vm5 = vcmask 769024  }
 0x5c7   : > { %v1400_v15 = vpop.permute.xlu1 %1399  ;;  %v1508_v9 = vsel %vm2481_vm1, %v1504_v14, 0.0  ;;  %v1486_v63 = vrot.slane %v1484_v40, 4 }
 0x5c8   : > { %v1509_v23 = vpack.c.bf16 %v1508_v9, %v1507_v19 }
 0x5ca   : > { %1510 = vst [vmem:[#allocation3 + $0x20] sm:$0x33] %v1509_v23 }
 0x5cd   : > { %v1463_v25 = vpop.permute.xlu0 %1462 }
 0x5ce   : > { %v1465_v26 = vsel %vm797_vm11, %v2174_v21, %v1463_v25  ;;  %v1360_v58 = vpop.permute.xlu2 %1359  ;;  %vm2798_vm11 = vcmask 1014784  }
 0x5cf   : > { %v2167_v27 = vpop.permute.xlu1 %2166  ;;  %v1469_v29 = vsel %vm2395_vm7, %v1465_v26, 0.0  ;;  %v1363_v5 = vrot.slane %v1360_v58, 4 }
 0x5d0   : > { %v2169_v31 = vunpack.i.h.bf16 %v2167_v27  ;;  %v2168_v10 = vunpack.i.l.bf16 %v2167_v27  ;;  %v1470_v32 = vpack.c.bf16 %v1469_v29, %v1468_v28 }
 0x5d1   : > { %v1516_v17 = vld [vmem:[#allocation3 + $0x20] sm:$0x33] }
 0x5d2   : > { %v1442_v33 = vsel %vm756_vm14, %v2169_v31, %v1440_v6  ;;  %v1441_v16 = vsel %vm756_vm14, %v2168_v10, %v2169_v31  ;;  %1471 = vst [vmem:[#allocation3 + $0x18] sm:$0x33] %v1470_v32  ;;  %v1536_v30 = vunpack.c.l.b16 %v1516_v17  ;;  %v1537_v36 = vunpack.c.h.b16 %v1516_v17  ;;  %vm2799_vm14 = vmmov %vm2798_vm11 }
 0x5d3   : > { %v1446_v34 = vsel %vm2481_vm1, %v1442_v33, 0.0  ;;  %v1445_v35 = vsel %vm2476_vm15, %v1441_v16, 0.0 }
 0x5d4   : > { %v1447_v39 = vpack.c.bf16 %v1446_v34, %v1445_v35  ;;  %v1542_v42 = vpack.c.b16 %v1536_v30, %v1536_v30  ;;  %v1543_v1 = vpack.c.b16 %v1537_v36, %v1537_v36 }
 0x5d5   : > { %v2177_v44 = vpop.permute.xlu0 %2176 }
 0x5d6   : > { %v1449_v43 = vrot.slane %v1447_v39, 6  ;;  %v2179_v45 = vunpack.i.h.bf16 %v2177_v44  ;;  %v2178_v46 = vunpack.i.l.bf16 %v2177_v44  ;;  %v1552_v47 = vsel %vm1292_vm6, %v1542_v42, 0  ;;  %v1380_v11 = vpop.permute.xlu2 %1379 }
 0x5d7   : > { %v1422_v37 = vpop.permute.xlu1 %1421  ;;  %v1555_v48 = vsel %vm1292_vm6, %v1543_v1, 0  ;;  %1562 = vmatpush.bf16.msra.mxu1 %v1552_v47 }
 0x5d8   : > { %1451 = vst [vmem:[#allocation3 + $0x10] sm:$0xcc] %v1449_v43  ;;  %1575 = vmatpush.bf16.msra.mxu3 %v1555_v48  ;;  %v1402_v49 = vsel %vm680_vm10, %v2179_v45, %v1400_v15  ;;  %v1401_v50 = vsel %vm680_vm10, %v2178_v46, %v2179_v45  ;;  %v1424_v60 = vrot.slane %v1422_v37, 4  ;;  %v307_v48 = vld [vmem:[%s2768_s0] ss:$2 sm:$0x3] }
 0x5d9   : > { %v1406_v38 = vsel %vm2395_vm7, %v1402_v49, 0.0  ;;  %v1405_v52 = vsel %vm2399_vm8, %v1401_v50, 0.0  ;;  %vm2796_vm7 = vcmask 506880   ;;  %vm2797_vm8 = vcmask 1031168  }
 0x5da   : > { %v1407_v53 = vpack.c.bf16 %v1406_v38, %v1405_v52 }
 0x5dc   : > { %v1409_v55 = vrot.slane %v1407_v53, 6 }
 0x5dd   : > { %v1420_v56 = vpop.permute.xlu0 %1419 }
 0x5de   : > { %1411 = vst [vmem:[#allocation3 + $0x8] sm:$0xcc] %v1409_v55  ;;  %v1423_v62 = vrot.slane %v1420_v56, 4 }
 0x5df   : > { %v1482_v61 = vpop.permute.xlu1 %1481 }
 0x5e0   : > { %v1485_v0 = vrot.slane %v1482_v61, 4  ;;  %v1425_v57 = vsel %vm351_vm4, %v1423_v62, %v1424_v60 }
 0x5e1   : > { %v1426_v2 = vsel %vm2795_vm5, %v1420_v56, %v1425_v57  ;;  %vm1669_vm5 = vcmask 146432  }
 0x5e2   : > { %v1487_v59 = vsel %vm351_vm4, %v1485_v0, %v1486_v63  ;;  %1428 = vst [vmem:[#allocation3 + $0x10] sm:$0x33] %v1426_v2 }
 0x5e3   : > { %v1488_v3 = vsel %vm2796_vm7, %v1482_v61, %v1487_v59  ;;  %vm316_vm7 = vcmp.lt.s32.totalorder %v307_v48, 2 }
 0x5e4   : > { %1490 = vst [vmem:[#allocation3 + $0x18] sm:$0xcc] %v1488_v3 }
 0x5e5   : > { %v1362_v4 = vpop.permute.xlu0 %1361 }
 0x5e6   : > { %v1364_v6 = vrot.slane %v1362_v4, 4 }
 0x5e7   : > { %v2182_v51 = vpop.permute.xlu1 %2181 }
 0x5e8   : > { %v2184_v7 = vunpack.i.h.bf16 %v2182_v51  ;;  %v2183_v8 = vunpack.i.l.bf16 %v2182_v51  ;;  %v1365_v12 = vsel %vm351_vm4, %v1363_v5, %v1364_v6 }
 0x5e9   : > { %v1366_v13 = vsel %vm2797_vm8, %v1360_v58, %v1365_v12  ;;  %v1988_v19 = vld [vmem:[#allocation3 + $0x10] sm:$0xf]  ;;  %v2024_v9 = vld [vmem:[#allocation3 + $0x14] sm:$0xf] }
 0x5ea   : > { %v1381_v14 = vsel %vm2798_vm11, %v2183_v8, %v2184_v7  ;;  %v1382_v15 = vsel %vm2799_vm14, %v2184_v7, %v1380_v11  ;;  %1368 = vst [vmem:[#allocation3] sm:$0xcc] %v1366_v13  ;;  %v1605_v13 = vsel %vm316_vm7, 1, %v2206_v41  ;;  %vm1778_vm7 = vcmask 269312  }
 0x5eb   : > { %v1385_v21 = vsel %vm2476_vm15, %v1381_v14, 0.0  ;;  %v1386_v22 = vsel %vm2481_vm1, %v1382_v15, 0.0  ;;  %v2025_v23 = vld [vmem:[#allocation3 + $0x14] sm:$0xf0]  ;;  %v1990_v26 = vld [vmem:[#allocation3 + $0x18] sm:$0xf0] }
 0x5ec   : > { %v1387_v24 = vpack.c.bf16 %v1386_v22, %v1385_v21  ;;  %v1989_v25 = vor.u32 %v2025_v23, %v1988_v19  ;;  %v1993_v27 = vor.u32 %v2024_v9, %v1990_v26  ;;  %vm317_vm15 = vcmp.ge.s32.totalorder %v307_v48, 15 }
 0x5ed   : > { %v1521_v20 = vpop.permute.xlu0 %1520  ;;  %v1633_v38 = vsel %vm317_vm15, 1, %v2206_v41  ;;  %vm1644_vm1 = vcmask 900096   ;;  %v312_v14 = vand.u32 1, %v307_v48  ;;  %v1606_v15 = vperm.slane %v1605_v13, 0 }
 0x5ee   : > { %1388 = vst [vmem:[#allocation3 + $0x8] sm:$0x33] %v1387_v24  ;;  %1563 = vmatpush.bf16.msra.mxu1 %v1989_v25  ;;  %1576 = vmatpush.bf16.msra.mxu3 %v1993_v27  ;;  %v1635_v52 = vperm.slane %v1633_v38, 1  ;;  %v1634_v62 = vperm.slane %v1633_v38, 0  ;;  %v1607_v19 = vperm.slane %v1605_v13, 1  ;;  %vm2802_vm15 = vcmask 1031168  }
 0x5ef   : > { %vm313_vm8 = vcmp.eq.s32.totalorder %v312_v14, 0  ;;  %vm1608_vm11 = vcmp.eq.s32.totalorder %v1606_v15, 1 }
 0x5f0   : > { %vm1637_vm6 = vcmp.eq.s32.totalorder %v1635_v52, 1  ;;  %vm1636_vm13 = vcmp.eq.s32.totalorder %v1634_v62, 1  ;;  %vm1609_vm14 = vcmp.eq.s32.totalorder %v1607_v19, 1  ;;  %v1677_v25 = vsel %vm313_vm8, 1, %v2206_v41 }
 0x5f1   : > { %v1980_v28 = vld [vmem:[#allocation3] sm:$0xf]  ;;  %v2022_v31 = vld [vmem:[#allocation3 + $0x4] sm:$0xf] }
 0x5f5   : > { %v2023_v29 = vld [vmem:[#allocation3 + $0x4] sm:$0xf0]  ;;  %v1982_v10 = vld [vmem:[#allocation3 + $0x8] sm:$0xf0] }
 0x5f6   : > { %v1981_v32 = vor.u32 %v2023_v29, %v1980_v28  ;;  %v1985_v33 = vor.u32 %v2022_v31, %v1982_v10  ;;  %v1678_v28 = vperm.slane %v1677_v25, 0  ;;  %v1679_v29 = vperm.slane %v1677_v25, 1 }
 0x5f8   : > { %1564 = vmatpush.bf16.msra.mxu1 %v1981_v32  ;;  %1577 = vmatpush.bf16.msra.mxu3 %v1985_v33 }
 0x5fb   : > { %1994 = vmatmul.msk.bf16.vlgmr.msra.gmra.mxu1 %vm1288_vm12, %v1511_v18  ;;  %1995 = vmatmul.msk.bf16.vlgmr.msra.gmra.mxu3 %vm1288_vm12, %v1511_v18  ;;  %vm2800_vm12 = vcmask 637952  }
 0x5fc   : > { %vm2801_vm9 = vmmov %vm2800_vm12 }
 0x678   : > { %v1566_v16 = vpop.f32.mrf.mxu1 }
 0x679   : > { %v1567_v17 = vadd.f32 %v1566_v16, %v1521_v20 }
 0x67b   : > { %v1583_v34 = vmax.f32 %v1567_v17, 0.0 }
 0x67d   : > { %v2677_v35 = vmin.f32 %v1583_v34, 1.0 }
 0x67e   : > { %v1579_v30 = vpop.f32.mrf.mxu3 }
 0x67f   : > { %v1580_v36 = vadd.f32 %v1579_v30, %v1521_v20  ;;  %1589 = vrot.lane.b32.xlu1 %v2677_v35, %s2196_s11  ;;  %v1603_v32 = vmul.f32 0.75, %v2677_v35 }
 0x680   : > { %v1568_v39 = vpop.f32.mrf.mxu1 }
 0x681   : > { %v1584_v40 = vmax.f32 %v1580_v36, 0.0 }
 0x683   : > { %v2681_v42 = vmin.f32 %v1584_v40, 1.0 }
 0x685   : > { %1591 = vrot.lane.b32.xlu2 %v2681_v42, %s2196_s11  ;;  %v1604_v33 = vmul.f32 0.75, %v2681_v42 }
 0x686   : > { %v1581_v1 = vpop.f32.mrf.mxu3 }
 0x6df   : > { %v1592_v43 = vpop.permute.xlu2 %1591 }
 0x6e0   : > { %1599 = vst.msk [vmem:[#allocation2 + $0x10] sm:$0xf] %vm342_vm3, %v1592_v43 }
 0x6e7   : > { %v1602_v44 = vld [vmem:[#allocation2 + $0x10] sm:$0xf] }
 0x6e8   : > { %1642 = vrot.lane.b32.xlu0 %v1602_v44, %s2215_s9  ;;  %v1632_v3 = vmul.f32 0.75, %v1602_v44 }
 0x6f0   : > { %1653 = vrot.lane.b32.xlu0 %v1602_v44, %s2198_s13 }
 0x6f1   : > { %v1590_v37 = vpop.permute.xlu1 %1589 }
 0x6f2   : > { %v1593_v45 = vsel %vm320_vm0, %v1590_v37, %v1592_v43  ;;  %1597 = vst.msk [vmem:[#allocation2] sm:$0xf] %vm339_vm2, %v1590_v37 }
 0x6f3   : > { %1598 = vst [vmem:[#allocation2 + $0x8] sm:$0xf] %v1593_v45  ;;  %v2186_v45 = vld [vmem:[%s2768_s0 + $0x1] ss:$2 sm:$0x3] }
 0x6f4   : > { %vm318_vm8 = vcmp.lt.s32.totalorder %v2186_v45, 2 }
 0x6f9   : > { %v1600_v46 = vld [vmem:[#allocation2] sm:$0xf] }
 0x6fa   : > { %1638 = vrot.lane.b32.xlu1 %v1600_v46, %s2215_s9  ;;  %v1601_v47 = vld [vmem:[#allocation2 + $0x8] sm:$0xf]  ;;  %1613 = vrot.lane.b32.xlu0 %v1600_v46, %s2213_s15  ;;  %v1630_v6 = vmul.f32 0.75, %v1600_v46 }
 0x6fb   : > { %1640 = vrot.lane.b32.xlu2 %v1601_v47, %s2215_s9  ;;  %v1631_v7 = vmul.f32 0.75, %v1601_v47 }
 0x702   : > { %1649 = vrot.lane.b32.xlu1 %v1600_v46, %s2198_s13 }
 0x703   : > { %1651 = vrot.lane.b32.xlu2 %v1601_v47, %s2198_s13  ;;  %s2216_s13 = smov 18  }
 0x755   : > { %v1641_v49 = vpop.permute.xlu2 %1640 }
 0x75a   : > { %v1643_v50 = vpop.permute.xlu0 %1642 }
 0x75b   : > { %v1646_v55 = vsel %vm1644_vm1, %v1641_v49, %v1643_v50 }
 0x75d   : > { %v1652_v53 = vpop.permute.xlu2 %1651 }
 0x762   : > { %v1654_v54 = vpop.permute.xlu0 %1653 }
 0x763   : > { %v1656_v56 = vsel %vm2800_vm12, %v1652_v53, %v1654_v54  ;;  %vm1680_vm12 = vcmp.eq.s32.totalorder %v1678_v28, 1 }
 0x764   : > { %v1660_v58 = vsel %vm1637_vm6, %v1646_v55, %v1656_v56  ;;  %vm2803_vm6 = vmmov %vm2802_vm15 }
 0x765   : > { %v1662_v60 = vmul.f32 0.25, %v1660_v58 }
 0x767   : > { %1667 = vrot.lane.b32.xlu2 %v1662_v60, %s2216_s13 }
 0x76c   : > { %v1639_v61 = vpop.permute.xlu1 %1638  ;;  %v1614_v21 = vpop.permute.xlu0 %1613 }
 0x76d   : > { %v1645_v0 = vsel %vm1644_vm1, %v1639_v61, %v1641_v49 }
 0x76f   : > { %1617 = vrot.lane.b32.xlu2 %v1602_v44, %s2213_s15 }
 0x774   : > { %v1650_v63 = vpop.permute.xlu1 %1649 }
 0x775   : > { %v1655_v57 = vsel %vm2801_vm9, %v1650_v63, %v1652_v53  ;;  %vm2804_vm9 = vcmask 760832  }
 0x776   : > { %v1659_v59 = vsel %vm1636_vm13, %v1645_v0, %v1655_v57  ;;  %vm1681_vm13 = vcmp.eq.s32.totalorder %v1679_v29, 1 }
 0x777   : > { %v1661_v2 = vmul.f32 0.25, %v1659_v59 }
 0x779   : > { %1665 = vrot.lane.b32.xlu1 %v1661_v2, %s2216_s13 }
 0x781   : > { %1615 = vrot.lane.b32.xlu1 %v1601_v47, %s2213_s15  ;;  %s2217_s15 = smov 95  }
 0x7c1   : > { %v1668_v4 = vpop.permute.xlu2 %1667 }
 0x7c2   : > { %v1676_v5 = vadd.f32 %v1668_v4, %v1632_v3 }
 0x7c4   : > { %1689 = vrot.lane.b32.xlu2 %v1676_v5, %s2215_s9 }
 0x7c9   : > { %v1618_v22 = vpop.permute.xlu2 %1617 }
 0x7eb   : > { %v1666_v51 = vpop.permute.xlu1 %1665 }
 0x7ec   : > { %v1670_v8 = vsel %vm1669_vm5, %v1666_v51, %v1668_v4  ;;  %v1674_v11 = vadd.f32 %v1666_v51, %v1630_v6  ;;  %vm2805_vm5 = vmmov %vm2804_vm9 }
 0x7ed   : > { %v1675_v12 = vadd.f32 %v1670_v8, %v1631_v7  ;;  %v1715_v8 = vsel %vm318_vm8, 1, %v2206_v41 }
 0x7ee   : > { %1685 = vrot.lane.b32.xlu0 %v1674_v11, %s2215_s9  ;;  %v314_v11 = vand.u32 1, %v2186_v45  ;;  %v1716_v13 = vperm.slane %v1715_v8, 0 }
 0x7ef   : > { %1687 = vrot.lane.b32.xlu1 %v1675_v12, %s2215_s9  ;;  %v1717_v12 = vperm.slane %v1715_v8, 1 }
 0x7f3   : > { %v1616_v9 = vpop.permute.xlu1 %1615 }
 0x7f4   : > { %v1620_v23 = vsel %vm2802_vm15, %v1614_v21, %v1616_v9  ;;  %v1621_v24 = vsel %vm2803_vm6, %v1616_v9, %v1618_v22  ;;  %vm1718_vm15 = vcmp.eq.s32.totalorder %v1716_v13, 1 }
 0x7f5   : > { %v1624_v26 = vsel %vm1608_vm11, %v2677_v35, %v1620_v23  ;;  %v1625_v27 = vsel %vm1609_vm14, %v2681_v42, %v1621_v24  ;;  %vm315_vm11 = vcmp.eq.s32.totalorder %v314_v11, 0  ;;  %vm1719_vm14 = vcmp.eq.s32.totalorder %v1717_v12, 1 }
 0x7f6   : > { %v1626_v31 = vmul.f32 0.25, %v1624_v26  ;;  %v1627_v10 = vmul.f32 0.25, %v1625_v27  ;;  %v1786_v22 = vsel %vm315_vm11, 1, %v2206_v41 }
 0x7f7   : > { %v1787_v25 = vperm.slane %v1786_v22, 0  ;;  %v1788_v26 = vperm.slane %v1786_v22, 1 }
 0x7f8   : > { %v1628_v17 = vadd.f32 %v1626_v31, %v1603_v32  ;;  %v1629_v34 = vadd.f32 %v1627_v10, %v1604_v33 }
 0x7f9   : > { %vm1789_vm6 = vcmp.eq.s32.totalorder %v1787_v25, 1 }
 0x81e   : > { %v1690_v20 = vpop.permute.xlu2 %1689 }
 0x860   : > { %v1686_v18 = vpop.permute.xlu0 %1685 }
 0x861   : > { %v1688_v16 = vpop.permute.xlu1 %1687 }
 0x862   : > { %v1691_v30 = vsel %vm1644_vm1, %v1686_v18, %v1688_v16  ;;  %v1692_v36 = vsel %vm1644_vm1, %v1688_v16, %v1690_v20 }
 0x863   : > { %v2718_v39 = vsel %vm1680_vm12, %v1628_v17, %v1691_v30  ;;  %v2720_v40 = vsel %vm1681_vm13, %v1629_v34, %v1692_v36  ;;  %vm1790_vm12 = vcmp.eq.s32.totalorder %v1788_v26, 1  ;;  %v1810_v17 = vld.sshfl [vmem:[#allocation1 + $0x8] sm:$0xff pattern:$0x75316420] }
 0x864   : > { %1699 = vrot.lane.b32.xlu0 %v2718_v39, %s2196_s11  ;;  %1701 = vrot.lane.b32.xlu1 %v2720_v40, %s2196_s11  ;;  %v1713_v29 = vmul.f32 0.75, %v2718_v39  ;;  %v1714_v31 = vmul.f32 0.75, %v2720_v40 }
 0x8d6   : > { %v1700_v35 = vpop.permute.xlu0 %1699  ;;  %v1702_v42 = vpop.permute.xlu1 %1701 }
 0x8d7   : > { %1707 = vst.msk [vmem:[#allocation2] sm:$0xf] %vm339_vm2, %v1700_v35  ;;  %v1703_v1 = vsel %vm320_vm0, %v1700_v35, %v1702_v42  ;;  %vm319_vm0 = vcmp.ge.s32.totalorder %v2186_v45, 15  ;;  %vm1753_vm2 = vcmask 777216  }
 0x8d8   : > { %1708 = vst [vmem:[#allocation2 + $0x8] sm:$0xf] %v1703_v1  ;;  %v1742_v48 = vsel %vm319_vm0, 1, %v2206_v41  ;;  %v1809_v35 = vld.sshfl [vmem:[#allocation1] sm:$0xff pattern:$0x75316420] }
 0x8d9   : > { %1709 = vst.msk [vmem:[#allocation2 + $0x10] sm:$0xf] %vm342_vm3, %v1702_v42  ;;  %v1743_v50 = vperm.slane %v1742_v48, 0  ;;  %v1744_v38 = vperm.slane %v1742_v48, 1 }
 0x8db   : > { %vm1745_vm3 = vcmp.eq.s32.totalorder %v1743_v50, 1  ;;  %vm1746_vm1 = vcmp.eq.s32.totalorder %v1744_v38, 1 }
 0x8de   : > { %v1710_v43 = vld [vmem:[#allocation2] sm:$0xf] }
 0x8df   : > { %1747 = vrot.lane.b32.xlu2 %v1710_v43, %s2217_s15  ;;  %v1711_v44 = vld [vmem:[#allocation2 + $0x8] sm:$0xf]  ;;  %v1739_v57 = vmul.f32 0.75, %v1710_v43 }
 0x8e0   : > { %v1712_v37 = vld [vmem:[#allocation2 + $0x10] sm:$0xf]  ;;  %1749 = vrot.lane.b32.xlu0 %v1711_v44, %s2217_s15  ;;  %v1740_v5 = vmul.f32 0.75, %v1711_v44 }
 0x8e1   : > { %1751 = vrot.lane.b32.xlu1 %v1712_v37, %s2217_s15  ;;  %v1741_v3 = vmul.f32 0.75, %v1712_v37 }
 0x8e7   : > { %1758 = vrot.lane.b32.xlu2 %v1710_v43, %s2199_s14 }
 0x8e8   : > { %1760 = vrot.lane.b32.xlu0 %v1711_v44, %s2199_s14 }
 0x8e9   : > { %1762 = vrot.lane.b32.xlu1 %v1712_v37, %s2199_s14  ;;  %s2218_s14 = smov 33  }
 0x8f1   : > { %1725 = vrot.lane.b32.xlu1 %v1711_v44, %s2208_s26 }
 0x939   : > { %v1748_v46 = vpop.permute.xlu2 %1747 }
 0x941   : > { %v1759_v52 = vpop.permute.xlu2 %1758 }
 0x952   : > { %v1750_v47 = vpop.permute.xlu0 %1749 }
 0x953   : > { %v1752_v49 = vpop.permute.xlu1 %1751  ;;  %v1754_v54 = vsel %vm1753_vm2, %v1748_v46, %v1750_v47 }
 0x954   : > { %v1755_v58 = vsel %vm1753_vm2, %v1750_v47, %v1752_v49 }
 0x95a   : > { %v1761_v53 = vpop.permute.xlu0 %1760 }
 0x95b   : > { %v1763_v55 = vpop.permute.xlu1 %1762  ;;  %v1764_v56 = vsel %vm2804_vm9, %v1759_v52, %v1761_v53 }
 0x95c   : > { %v1765_v60 = vsel %vm2805_vm5, %v1761_v53, %v1763_v55  ;;  %v1768_v61 = vsel %vm1745_vm3, %v1754_v54, %v1764_v56 }
 0x95d   : > { %v1769_v62 = vsel %vm1746_vm1, %v1755_v58, %v1765_v60  ;;  %v1770_v63 = vmul.f32 0.25, %v1768_v61 }
 0x95e   : > { %v1771_v0 = vmul.f32 0.25, %v1769_v62 }
 0x95f   : > { %1774 = vrot.lane.b32.xlu2 %v1770_v63, %s2218_s14 }
 0x960   : > { %1776 = vrot.lane.b32.xlu0 %v1771_v0, %s2218_s14 }
 0x963   : > { %v1726_v19 = vpop.permute.xlu1 %1725 }
 0x967   : > { %1727 = vrot.lane.b32.xlu2 %v1712_v37, %s2208_s26 }
 0x968   : > { %1723 = vrot.lane.b32.xlu0 %v1710_v43, %s2208_s26 }
 0x9b9   : > { %v1775_v59 = vpop.permute.xlu2 %1774 }
 0x9ba   : > { %v1783_v2 = vadd.f32 %v1775_v59, %v1739_v57 }
 0x9bc   : > { %1794 = vrot.lane.b32.xlu0 %v1783_v2, %s2217_s15 }
 0x9c1   : > { %v1728_v14 = vpop.permute.xlu2 %1727 }
 0x9c2   : > { %v1730_v9 = vsel %vm680_vm10, %v1726_v19, %v1728_v14 }
 0x9c3   : > { %v1734_v23 = vsel %vm1719_vm14, %v2720_v40, %v1730_v9 }
 0x9c4   : > { %v1736_v27 = vmul.f32 0.25, %v1734_v23 }
 0x9c6   : > { %v1738_v32 = vadd.f32 %v1736_v27, %v1714_v31 }
 0x9d2   : > { %v1777_v4 = vpop.permute.xlu0 %1776 }
 0x9d3   : > { %v1779_v6 = vsel %vm1778_vm7, %v1775_v59, %v1777_v4  ;;  %v1785_v51 = vadd.f32 %v1777_v4, %v1741_v3 }
 0x9d4   : > { %v1784_v7 = vadd.f32 %v1779_v6, %v1740_v5 }
 0x9d5   : > { %1798 = vrot.lane.b32.xlu2 %v1785_v51, %s2217_s15 }
 0x9d6   : > { %1796 = vrot.lane.b32.xlu1 %v1784_v7, %s2217_s15 }
 0x9da   : > { %v1724_v15 = vpop.permute.xlu0 %1723 }
 0x9db   : > { %v1729_v21 = vsel %vm680_vm10, %v1724_v15, %v1726_v19 }
 0x9dc   : > { %v1733_v24 = vsel %vm1718_vm15, %v2718_v39, %v1729_v21 }
 0x9dd   : > { %v1735_v28 = vmul.f32 0.25, %v1733_v24 }
 0x9df   : > { %v1737_v33 = vadd.f32 %v1735_v28, %v1713_v29 }
 0xa2e   : > { %v1795_v10 = vpop.permute.xlu0 %1794 }
 0xa2f   : > { %v1799_v18 = vpop.permute.xlu2 %1798 }
 0xa48   : > { %v1797_v41 = vpop.permute.xlu1 %1796 }
 0xa49   : > { %v1800_v20 = vsel %vm1753_vm2, %v1795_v10, %v1797_v41  ;;  %v1801_v16 = vsel %vm1753_vm2, %v1797_v41, %v1799_v18 }
 0xa4a   : > { %v1804_v34 = vsel %vm1789_vm6, %v1737_v33, %v1800_v20  ;;  %v1805_v30 = vsel %vm1790_vm12, %v1738_v32, %v1801_v16 }
 0xa4b   : > { %v1814_v36 = vmul.f32 %v1810_v17, %v1805_v30  ;;  %v1813_v39 = vmul.f32 %v1809_v35, %v1804_v34 }
 0xa4d   : > { %v1817_v40 = vrot.slane %v1814_v36, 4 }
 0xa4f   : > { %v1818_v42 = vsel %vm351_vm4, %v1813_v39, %v1817_v40 }
 0xa50   : > { %1820 = vst [vmem:[%s305_s18] sm:$0xff] %v1818_v42 }
 0xa51 PF: > { %s18_s27 = sadd.s32 1, %s2193_s27  }
 0xa52   : > { %p15_p4 = scmp.ge.s32.totalorder %s18_s27, 4  }
 0xa54   :  { %17 = sbr.rel (!%p15_p4) target bundleno = 1 (0x1), region = 84 }

</bundles_post_ra>
